<compile_context>
chip_gen: v7x
topology: tpu7x:2x2x1
jax: 0.10.0
libtpu: 0.0.40
codegen_flags: <defaults>
</compile_context>

<pallas_src>
import functools

import jax
import jax.numpy as jnp
from jax.experimental import pallas as pl
from jax.experimental.pallas import tpu as pltpu


def _round_up(x, m):
    return (x + m - 1) // m * m


def _pick_tile(total, candidates):
    for c in candidates:
        if total % c == 0:
            return c
    return candidates[-1]


def _pad_gate_cols(w, h, hp):
    """Pad a (..., 3*h) PyTorch-GRU gate matrix to (..., 3*hp); each gate block lane-aligned."""
    if h == hp:
        return w
    pads = [(0, 0)] * (w.ndim - 1) + [(0, hp - h)]
    return jnp.concatenate(
        [jnp.pad(w[..., g * h:(g + 1) * h], pads) for g in range(3)], axis=-1)


def _vmem_limit_bytes(block_bytes, headroom=4 << 20):
    # Conservative: assume every block is double-buffered, add headroom.
    # Never go below the default 32 MiB scoped limit; cap below physical VMEM.
    need = 2 * int(block_bytes) + headroom
    return int(min(max(need, 32 << 20), 100 << 20))


# ---------------------------------------------------------------------------
# Stage 1: sequential 2-layer GRU recurrence (all gate matmuls in-kernel).
# ---------------------------------------------------------------------------
def gru_recurrence_kernel(
    maxlen_ref,            # SMEM (1,) i32    max(y_lens), scalar-prefetched
    emb_ref,               # (Bh, Tt, E) cdt  embedded tokens (time tile, pipelined)
    h0_ref,                # (L, Bh, Hp) f32  initial hidden (resident)
    lens_ref,              # (Bh, 1)     i32
    wih0_ref, bih0_ref,    # (E,  3Hp) cdt, (1, 3Hp) f32
    whh0_ref, bhh0_ref,    # (Hp, 3Hp) cdt, (1, 3Hp) f32
    wih1_ref, bih1_ref,    # (Hp, 3Hp) cdt, (1, 3Hp) f32
    whh1_ref, bhh1_ref,    # (Hp, 3Hp) cdt, (1, 3Hp) f32
    hs_ref,                # out (Bh, Tt, Hp) cdt   masked layer-1 hidden (pad steps -> 0)
    hn_ref,                # out (L, Bh, Hp)  f32
    h_scr,                 # scratch (L, Bh, Hp) f32, carried across the time grid axis
):
    ti = pl.program_id(1)
    Tt = emb_ref.shape[1]
    Hp = h0_ref.shape[-1]
    cdt = whh0_ref.dtype

    @pl.when(ti == 0)
    def _init():
        h_scr[...] = h0_ref[...]

    active = (ti * Tt) < maxlen_ref[0]

    @pl.when(active)
    def _run():
        lens = lens_ref[...]                                       # (Bh, 1) i32

        def gates(gi, gh, h_prev):
            # gate slices are lane-aligned (Hp is a multiple of 128)
            r = jax.nn.sigmoid(gi[:, 0:Hp] + gh[:, 0:Hp])
            z = jax.nn.sigmoid(gi[:, Hp:2 * Hp] + gh[:, Hp:2 * Hp])
            n = jnp.tanh(gi[:, 2 * Hp:3 * Hp] + r * gh[:, 2 * Hp:3 * Hp])
            return (1.0 - z) * n + z * h_prev

        # Hidden state carried as SSA values across the unrolled time loop;
        # h_scr is read once here and written back once at the end of the tile.
        h0 = h_scr[0]
        h1 = h_scr[1]
        outs = []
        # Tt is small & static: fully unrolled so layer-0 of step t+1 can
        # overlap layer-1 of step t.
        # TODO(synk): switch to lax.fori_loop(..., unroll=k) if B*Hp grows enough
        #             for the unrolled live ranges to spill vregs.
        for tl in range(Tt):
            t = ti * Tt + tl
            mask = (t < lens).astype(jnp.float32)                  # (Bh, 1)

            # ---- layer 0 (input gates computed in-kernel from the emb tile) ----
            x_t = emb_ref[:, tl, :]                                # (Bh, E) cdt
            gi0 = jnp.dot(x_t, wih0_ref[...],
                          preferred_element_type=jnp.float32) + bih0_ref[...]
            gh0 = jnp.dot(h0.astype(cdt), whh0_ref[...],
                          preferred_element_type=jnp.float32) + bhh0_ref[...]
            c0 = gates(gi0, gh0, h0)
            h0 = h0 + mask * (c0 - h0)     # packed-seq: freeze hidden past y_lens

            # ---- layer 1 ----
            gi1 = jnp.dot(h0.astype(cdt), wih1_ref[...],
                          preferred_element_type=jnp.float32) + bih1_ref[...]
            gh1 = jnp.dot(h1.astype(cdt), whh1_ref[...],
                          preferred_element_type=jnp.float32) + bhh1_ref[...]
            c1 = gates(gi1, gh1, h1)
            h1 = h1 + mask * (c1 - h1)

            # pad_packed_sequence zeroes padded steps before the vocab Linear.
            outs.append((h1 * mask).astype(hs_ref.dtype))          # (Bh, Hp)

        h_scr[0] = h0
        h_scr[1] = h1
        # One dense tile store instead of Tt sublane-masked stores.
        hs_ref[...] = jnp.stack(outs, axis=1)                      # (Bh, Tt, Hp)

    @pl.when(jnp.logical_not(active))
    def _dead_tile():
        # Entire tile is past every sequence end: outputs are zeros, hidden frozen.
        hs_ref[...] = jnp.zeros_like(hs_ref)

    @pl.when(ti == pl.num_programs(1) - 1)
    def _finalize():
        hn_ref[...] = h_scr[...]


# ---------------------------------------------------------------------------
# Stage 2: vocab projection over flattened rows, (vocab outer, rows inner) grid.
# ---------------------------------------------------------------------------
def vocab_proj_kernel(hs_ref, wv_ref, bv_ref, out_ref):
    out_ref[...] = (jnp.dot(hs_ref[...], wv_ref[...],
                            preferred_element_type=jnp.float32)
                    + bv_ref[...]).astype(out_ref.dtype)


# ---------------------------------------------------------------------------
# Wrapper: embedding gather, padding to lane-aligned shapes, two pallas_calls.
# ---------------------------------------------------------------------------
@functools.partial(jax.jit,
                   static_argnames=("compute_dtype", "t_tile", "logits_dtype"))
def lstm_lm_decoder_forward(params, y_padded, y_lens, hidden,
                            compute_dtype=jnp.bfloat16, t_tile=None,
                            logits_dtype=jnp.float32):
    """Equivalent of LSTMLMDecoder.forward(batch_package, hidden, teacher_force=False).

    y_padded: (B, T) int32 token ids
    y_lens:   (B,)   int32 valid lengths
    hidden:   (L, B, H) f32 initial GRU hidden
    returns (logits (B, T, V) logits_dtype, h_n (L, B, H) f32)
    """
    B, T = y_padded.shape
    L, _, H = hidden.shape
    E = params["emb"].shape[1]
    V = params["wv"].shape[1]
    cdt = compute_dtype
    f32 = jnp.float32
    csz = jnp.dtype(cdt).itemsize
    lsz = jnp.dtype(logits_dtype).itemsize

    Hp = _round_up(H, 128)
    Vp = _round_up(V, 128)
    # time tile aligned to the sublane packing of the hs dtype (8 f32 / 16 bf16)
    pack = 16 if csz == 2 else 8
    Tt = _round_up(t_tile, pack) if t_tile is not None else pack
    Tp = _round_up(T, Tt)
    n_t = Tp // Tt

    # Batch split across TensorCores (v7x megacore) when halves stay sublane-aligned.
    n_b = 2 if (B % 2 == 0 and (B // 2) % 8 == 0) else 1
    Bh = B // n_b

    # ---- pad / cast parameters (gate blocks stay lane-aligned at Hp) ----
    wih0 = _pad_gate_cols(params["wih0"], H, Hp).astype(cdt)                  # (E, 3Hp)
    bih0 = _pad_gate_cols(params["bih0"], H, Hp).astype(f32)                  # (1, 3Hp)
    whh0 = jnp.pad(_pad_gate_cols(params["whh0"], H, Hp),
                   ((0, Hp - H), (0, 0))).astype(cdt)                         # (Hp, 3Hp)
    bhh0 = _pad_gate_cols(params["bhh0"], H, Hp).astype(f32)
    wih1 = jnp.pad(_pad_gate_cols(params["wih1"], H, Hp),
                   ((0, Hp - H), (0, 0))).astype(cdt)
    bih1 = _pad_gate_cols(params["bih1"], H, Hp).astype(f32)
    whh1 = jnp.pad(_pad_gate_cols(params["whh1"], H, Hp),
                   ((0, Hp - H), (0, 0))).astype(cdt)
    bhh1 = _pad_gate_cols(params["bhh1"], H, Hp).astype(f32)
    wv = jnp.pad(params["wv"], ((0, Hp - H), (0, Vp - V))).astype(cdt)        # (Hp, Vp)
    bv = jnp.pad(params["bv"], ((0, 0), (0, Vp - V))).astype(f32)             # (1, Vp)

    h0p = jnp.pad(hidden.astype(f32), ((0, 0), (0, 0), (0, Hp - H)))          # (L, B, Hp)
    lens2d = y_lens.astype(jnp.int32).reshape(B, 1)
    maxlen = jnp.max(y_lens).astype(jnp.int32).reshape(1)                     # SMEM scalar

    # ---- embedding lookup: the only per-step HBM stream stage 1 consumes ----
    emb = params["emb"][y_padded].astype(cdt)                                 # (B, T, E)
    if Tp != T:
        emb = jnp.pad(emb, ((0, 0), (0, Tp - T), (0, 0)))

    # ---- stage-1 VMEM budget from the actual blocks ----
    s1_bytes = (Bh * Tt * E * csz                       # emb tile
                + 2 * L * Bh * Hp * 4                   # h0 + hn
                + Bh * 4                                # lens
                + (E * 3 * Hp + 3 * Hp * 3 * Hp) * csz  # wih0 + whh0/wih1/whh1
                + 4 * 3 * Hp * 4                        # biases
                + Bh * Tt * Hp * csz                    # hs out tile
                + L * Bh * Hp * 4)                      # scratch

    def _const(shape):
        return pl.BlockSpec(shape, lambda bi, ti, ml: (0, 0))

    # ---- stage 1: sequential GRU recurrence, grid (batch-split, time tiles) ----
    hs, hn = pl.pallas_call(
        gru_recurrence_kernel,
        grid_spec=pltpu.PrefetchScalarGridSpec(
            num_scalar_prefetch=1,
            grid=(n_b, n_t),
            in_specs=[
                pl.BlockSpec((Bh, Tt, E), lambda bi, ti, ml: (bi, ti, 0)),   # emb
                pl.BlockSpec((L, Bh, Hp), lambda bi, ti, ml: (0, bi, 0)),    # h0
                pl.BlockSpec((Bh, 1), lambda bi, ti, ml: (bi, 0)),           # lens
                _const((E, 3 * Hp)), _const((1, 3 * Hp)),                    # wih0, bih0
                _const((Hp, 3 * Hp)), _const((1, 3 * Hp)),                   # whh0, bhh0
                _const((Hp, 3 * Hp)), _const((1, 3 * Hp)),                   # wih1, bih1
                _const((Hp, 3 * Hp)), _const((1, 3 * Hp)),                   # whh1, bhh1
            ],
            out_specs=(
                pl.BlockSpec((Bh, Tt, Hp), lambda bi, ti, ml: (bi, ti, 0)),  # hs
                pl.BlockSpec((L, Bh, Hp), lambda bi, ti, ml: (0, bi, 0)),    # h_n
            ),
            scratch_shapes=[pltpu.VMEM((L, Bh, Hp), jnp.float32)],
        ),
        out_shape=(
            jax.ShapeDtypeStruct((B, Tp, Hp), cdt),
            jax.ShapeDtypeStruct((L, B, Hp), jnp.float32),
        ),
        compiler_params=pltpu.CompilerParams(
            dimension_semantics=("parallel", "arbitrary"),      # batch || , time sequential
            vmem_limit_bytes=_vmem_limit_bytes(s1_bytes)),
    )(maxlen, emb, h0p, lens2d,
      wih0, bih0, whh0, bhh0, wih1, bih1, whh1, bhh1)

    # ---- stage 2: vocab projection over flattened rows ----
    R = B * Tp
    hs2 = hs.reshape(R, Hp)          # free merge of leading dims (batch-first preserved)

    row_cands = (512, 256, 128, 64, 32, 16) if csz == 2 else (512, 256, 128, 64, 32, 16, 8)
    Rt = _pick_tile(R, row_cands)
    Vt = _pick_tile(Vp, (1024, 512, 256, 128))

    s2_bytes = Rt * Hp * csz + Hp * Vt * csz + Vt * 4 + Rt * Vt * lsz

    logits_flat = pl.pallas_call(
        vocab_proj_kernel,
        grid=(Vp // Vt, R // Rt),     # vocab outer, rows inner -> wv streams from HBM once
        in_specs=[
            pl.BlockSpec((Rt, Hp), lambda vi, ri: (ri, 0)),
            pl.BlockSpec((Hp, Vt), lambda vi, ri: (0, vi)),
            pl.BlockSpec((1, Vt), lambda vi, ri: (0, vi)),
        ],
        out_specs=pl.BlockSpec((Rt, Vt), lambda vi, ri: (ri, vi)),
        out_shape=jax.ShapeDtypeStruct((R, Vp), logits_dtype),
        compiler_params=pltpu.CompilerParams(
            dimension_semantics=("parallel", "parallel"),       # megacore on v7x
            vmem_limit_bytes=_vmem_limit_bytes(s2_bytes)),
    )(hs2, wv, bv)

    logits = logits_flat.reshape(B, Tp, Vp)
    if Tp != T or Vp != V:            # skip the extra O(B*T*V) pass when not padded
        logits = logits[:, :T, :V]
    if Hp != H:
        hn = hn[:, :, :H]
    return logits, hn


# ---------------------------------------------------------------------------
# Pure-JAX reference (mirrors PyTorch GRU + packing semantics) for validation.
# ---------------------------------------------------------------------------
def ref_forward(params, y_padded, y_lens, hidden):
    B, T = y_padded.shape
    L, _, H = hidden.shape
    emb = params["emb"][y_padded]
    h = hidden
    outs = []
    for t in range(T):
        x = emb[:, t, :]
        m = (t < y_lens)[:, None].astype(jnp.float32)
        new_h = []
        inp = x
        for l in range(L):
            hl = h[l]
            gi = inp @ params[f"wih{l}"] + params[f"bih{l}"]
            gh = hl @ params[f"whh{l}"] + params[f"bhh{l}"]
            r = jax.nn.sigmoid(gi[:, :H] + gh[:, :H])
            z = jax.nn.sigmoid(gi[:, H:2 * H] + gh[:, H:2 * H])
            n = jnp.tanh(gi[:, 2 * H:] + r * gh[:, 2 * H:])
            hl_new = (1.0 - z) * n + z * hl
            hl_new = m * hl_new + (1.0 - m) * hl
            new_h.append(hl_new)
            inp = hl_new
        h = jnp.stack(new_h)
        outs.append(inp * m)
    seq = jnp.stack(outs, axis=1)                   # (B, T, H)
    logits = seq @ params["wv"] + params["bv"]
    return logits, h


# ---------------------------------------------------------------------------
# Deterministic parameter init + driver.
# ---------------------------------------------------------------------------
def init_params(key, vocab_size, embedding_dim, hidden_size):
    ks = jax.random.split(key, 16)
    E, H, V = embedding_dim, hidden_size, vocab_size
    s = 1.0 / jnp.sqrt(H)
    return {
        "emb":  jax.random.normal(ks[0], (V, E), jnp.float32),
        # layer 0 (input size E)
        "wih0": jax.random.uniform(ks[1], (E, 3 * H), jnp.float32, -s, s),
        "whh0": jax.random.uniform(ks[2], (H, 3 * H), jnp.float32, -s, s),
        "bih0": jax.random.uniform(ks[3], (1, 3 * H), jnp.float32, -s, s),
        "bhh0": jax.random.uniform(ks[4], (1, 3 * H), jnp.float32, -s, s),
        # layer 1 (input size H)
        "wih1": jax.random.uniform(ks[5], (H, 3 * H), jnp.float32, -s, s),
        "whh1": jax.random.uniform(ks[6], (H, 3 * H), jnp.float32, -s, s),
        "bih1": jax.random.uniform(ks[7], (1, 3 * H), jnp.float32, -s, s),
        "bhh1": jax.random.uniform(ks[8], (1, 3 * H), jnp.float32, -s, s),
        # vocab_layer = nn.Linear(H, V)
        "wv":   jax.random.uniform(ks[9], (H, V), jnp.float32, -s, s),
        "bv":   jax.random.uniform(ks[10], (1, V), jnp.float32, -s, s),
    }


if __name__ == "__main__":
    B, T = 4, 12            # batch, sequence length
    E, H, V = 32, 32, 300   # embedding_dim, hidden_size, vocab_size (V pads to 384)
    L = 2                   # num_rnn_layers

    key = jax.random.PRNGKey(0)
    kp, ky, kh = jax.random.split(key, 3)

    params = init_params(kp, V, E, H)
    y_padded = jax.random.randint(ky, (B, T), 0, V, dtype=jnp.int32)
    y_lens = jnp.array([T, 5, 1, 9], dtype=jnp.int32)           # max(len) == T
    hidden = jax.random.normal(kh, (L, B, H), jnp.float32)      # init_hidden()

    ref_logits, ref_hn = ref_forward(params, y_padded, y_lens, hidden)

    # f32 MXU-operand path: tight check.
    logits32, hn32 = lstm_lm_decoder_forward(
        params, y_padded, y_lens, hidden, compute_dtype=jnp.float32)
    logits32, hn32 = jax.block_until_ready(logits32), jax.block_until_ready(hn32)
    assert logits32.shape == (B, T, V) and hn32.shape == (L, B, H)
    assert jnp.allclose(logits32, ref_logits, rtol=1e-2, atol=1e-2)
    assert jnp.allclose(hn32, ref_hn, rtol=1e-2, atol=1e-2)

    # bf16 MXU-operand path (f32 accumulation / f32 hidden carry): relaxed check.
    logits_bf, hn_bf = lstm_lm_decoder_forward(
        params, y_padded, y_lens, hidden, compute_dtype=jnp.bfloat16)
    logits_bf, hn_bf = jax.block_until_ready(logits_bf), jax.block_until_ready(hn_bf)
    assert logits_bf.shape == (B, T, V) and hn_bf.shape == (L, B, H)
    assert jnp.allclose(logits_bf, ref_logits, rtol=5e-2, atol=6e-2)
    assert jnp.allclose(hn_bf, ref_hn, rtol=5e-2, atol=6e-2)

    print("KERNEL_OK")
</pallas_src>

<mosaic_0001>
module attributes {stable_mosaic.version = 11 : i64} {
  func.func @vocab_proj_kernel(%arg0: i32, %arg1: i32, %arg2: memref<64x128xf32, #tpu.memory_space<vmem>>, %arg3: memref<128x128xf32, #tpu.memory_space<vmem>>, %arg4: memref<1x128xf32, #tpu.memory_space<vmem>>, %arg5: memref<64x128xf32, #tpu.memory_space<vmem>>) attributes {dimension_semantics = [#tpu.dimension_semantics<parallel>, #tpu.dimension_semantics<parallel>], iteration_bounds = array<i64: 3, 1>, scalar_prefetch = 0 : i64, scratch_operands = 0 : i64, tpu.core_type = #tpu.core_type<tc>, window_params = [{transform_indices = @transform_0, window_bounds = array<i64: 64, 128>}, {transform_indices = @transform_1, window_bounds = array<i64: 128, 128>}, {transform_indices = @transform_2, window_bounds = array<i64: 1, 128>}, {transform_indices = @transform_3, window_bounds = array<i64: 64, 128>}]} {
    %c0 = arith.constant 0 : index
    %c0_0 = arith.constant 0 : index
    %0 = vector.load %arg2[%c0, %c0_0] : memref<64x128xf32, #tpu.memory_space<vmem>>, vector<64x128xf32>
    %c0_1 = arith.constant 0 : index
    %c0_2 = arith.constant 0 : index
    %1 = vector.load %arg3[%c0_1, %c0_2] : memref<128x128xf32, #tpu.memory_space<vmem>>, vector<128x128xf32>
    %cst = arith.constant dense<0.000000e+00> : vector<64x128xf32>
    %2 = tpu.matmul %0, %1, %cst {dimension_numbers = #tpu.dot_dimension_numbers<[1], [0], [0], [1], [0, 0, 1, 1], [], []>} : vector<64x128xf32>, vector<128x128xf32>, vector<64x128xf32> -> vector<64x128xf32>
    %c0_3 = arith.constant 0 : index
    %c0_4 = arith.constant 0 : index
    %3 = vector.load %arg4[%c0_3, %c0_4] : memref<1x128xf32, #tpu.memory_space<vmem>>, vector<1x128xf32>
    %4 = vector.broadcast %3 : vector<1x128xf32> to vector<64x128xf32>
    %5 = arith.addf %2, %4 : vector<64x128xf32>
    %c0_5 = arith.constant 0 : index
    %c0_6 = arith.constant 0 : index
    %6 = vector.load %arg5[%c0_5, %c0_6] : memref<64x128xf32, #tpu.memory_space<vmem>>, vector<64x128xf32>
    tpu.vector_store %arg5[%c0_5, %c0_6], %5 {strides = array<i32>} : memref<64x128xf32, #tpu.memory_space<vmem>>, vector<64x128xf32>,
    return
  }
  func.func @transform_0(%arg0: i32, %arg1: i32) -> (i32, i32) {
    %c0_i32 = arith.constant 0 : i32
    %c0_i32_0 = arith.constant 0 : i32
    return %arg1, %c0_i32 : i32, i32
  }
  func.func @transform_1(%arg0: i32, %arg1: i32) -> (i32, i32) {
    %c0_i32 = arith.constant 0 : i32
    %c0_i32_0 = arith.constant 0 : i32
    return %c0_i32, %arg0 : i32, i32
  }
  func.func @transform_2(%arg0: i32, %arg1: i32) -> (i32, i32) {
    %c0_i32 = arith.constant 0 : i32
    %c0_i32_0 = arith.constant 0 : i32
    return %c0_i32, %arg0 : i32, i32
  }
  func.func @transform_3(%arg0: i32, %arg1: i32) -> (i32, i32) {
    %c0_i32 = arith.constant 0 : i32
    return %arg1, %arg0 : i32, i32
  }
}

module attributes {stable_mosaic.version = 11 : i64} {
  func.func @gru_recurrence_kernel(%arg0: i32, %arg1: i32, %arg2: memref<1xi32, #tpu.memory_space<smem>>, %arg3: memref<4x8x32xf32, #tpu.memory_space<vmem>>, %arg4: memref<2x4x128xf32, #tpu.memory_space<vmem>>, %arg5: memref<4x1xi32, #tpu.memory_space<vmem>>, %arg6: memref<32x384xf32, #tpu.memory_space<vmem>>, %arg7: memref<1x384xf32, #tpu.memory_space<vmem>>, %arg8: memref<128x384xf32, #tpu.memory_space<vmem>>, %arg9: memref<1x384xf32, #tpu.memory_space<vmem>>, %arg10: memref<128x384xf32, #tpu.memory_space<vmem>>, %arg11: memref<1x384xf32, #tpu.memory_space<vmem>>, %arg12: memref<128x384xf32, #tpu.memory_space<vmem>>, %arg13: memref<1x384xf32, #tpu.memory_space<vmem>>, %arg14: memref<4x8x128xf32, #tpu.memory_space<vmem>>, %arg15: memref<2x4x128xf32, #tpu.memory_space<vmem>>, %arg16: memref<2x4x128xf32, #tpu.memory_space<vmem>>) attributes {dimension_semantics = [#tpu.dimension_semantics<parallel>, #tpu.dimension_semantics<arbitrary>], iteration_bounds = array<i64: 1, 2>, scalar_prefetch = 1 : i64, scratch_operands = 1 : i64, tpu.core_type = #tpu.core_type<tc>, window_params = [{transform_indices = @transform_0, window_bounds = array<i64: 4, 8, 32>}, {transform_indices = @transform_1, window_bounds = array<i64: 2, 4, 128>}, {transform_indices = @transform_2, window_bounds = array<i64: 4, 1>}, {pipeline_mode = #tpu.pipeline_mode<synchronous>, transform_indices = @transform_3, window_bounds = array<i64: 32, 384>}, {pipeline_mode = #tpu.pipeline_mode<synchronous>, transform_indices = @transform_4, window_bounds = array<i64: 1, 384>}, {pipeline_mode = #tpu.pipeline_mode<synchronous>, transform_indices = @transform_5, window_bounds = array<i64: 128, 384>}, {pipeline_mode = #tpu.pipeline_mode<synchronous>, transform_indices = @transform_6, window_bounds = array<i64: 1, 384>}, {pipeline_mode = #tpu.pipeline_mode<synchronous>, transform_indices = @transform_7, window_bounds = array<i64: 128, 384>}, {pipeline_mode = #tpu.pipeline_mode<synchronous>, transform_indices = @transform_8, window_bounds = array<i64: 1, 384>}, {pipeline_mode = #tpu.pipeline_mode<synchronous>, transform_indices = @transform_9, window_bounds = array<i64: 128, 384>}, {pipeline_mode = #tpu.pipeline_mode<synchronous>, transform_indices = @transform_10, window_bounds = array<i64: 1, 384>}, {transform_indices = @transform_11, window_bounds = array<i64: 4, 8, 128>}, {transform_indices = @transform_12, window_bounds = array<i64: 2, 4, 128>}]} {
    %c0_i32 = arith.constant 0 : i32
    %0 = arith.cmpi eq, %arg1, %c0_i32 : i32
    %1 = arith.extui %0 : i1 to i32
    %c0_i32_0 = arith.constant 0 : i32
    %2 = arith.cmpi ne, %1, %c0_i32_0 : i32
    scf.if %2 {
      %c0_4 = arith.constant 0 : index
      %c0_5 = arith.constant 0 : index
      %c0_6 = arith.constant 0 : index
      %14 = vector.load %arg4[%c0_4, %c0_5, %c0_6] : memref<2x4x128xf32, #tpu.memory_space<vmem>>, vector<2x4x128xf32>
      %c0_7 = arith.constant 0 : index
      %c0_8 = arith.constant 0 : index
      %c0_9 = arith.constant 0 : index
      %15 = vector.load %arg16[%c0_7, %c0_8, %c0_9] : memref<2x4x128xf32, #tpu.memory_space<vmem>>, vector<2x4x128xf32>
      tpu.vector_store %arg16[%c0_7, %c0_8, %c0_9], %14 {strides = array<i32>} : memref<2x4x128xf32, #tpu.memory_space<vmem>>, vector<2x4x128xf32>,
    } else {
    }
    %c8_i32 = arith.constant 8 : i32
    %3 = arith.muli %arg1, %c8_i32 : i32
    %c0 = arith.constant 0 : index
    %4 = memref.load %arg2[%c0] : memref<1xi32, #tpu.memory_space<smem>>
    %5 = arith.cmpi slt, %3, %4 : i32
    %6 = arith.extui %5 : i1 to i32
    %c0_i32_1 = arith.constant 0 : i32
    %7 = arith.cmpi ne, %6, %c0_i32_1 : i32
    scf.if %7 {
      %c0_4 = arith.constant 0 : index
      %c0_5 = arith.constant 0 : index
      %14 = vector.load %arg5[%c0_4, %c0_5] : memref<4x1xi32, #tpu.memory_space<vmem>>, vector<4x1xi32>
      %c0_6 = arith.constant 0 : index
      %c0_7 = arith.constant 0 : index
      %c0_8 = arith.constant 0 : index
      %15 = vector.load %arg16[%c0_6, %c0_7, %c0_8] : memref<2x4x128xf32, #tpu.memory_space<vmem>>, vector<1x4x128xf32>
      %16 = vector.shape_cast %15 : vector<1x4x128xf32> to vector<4x128xf32>
      %c1 = arith.constant 1 : index
      %c0_9 = arith.constant 0 : index
      %c0_10 = arith.constant 0 : index
      %17 = vector.load %arg16[%c1, %c0_9, %c0_10] : memref<2x4x128xf32, #tpu.memory_space<vmem>>, vector<1x4x128xf32>
      %18 = vector.shape_cast %17 : vector<1x4x128xf32> to vector<4x128xf32>
      %c8_i32_11 = arith.constant 8 : i32
      %19 = arith.muli %arg1, %c8_i32_11 : i32
      %c0_i32_12 = arith.constant 0 : i32
      %20 = arith.addi %19, %c0_i32_12 : i32
      %21 = vector.broadcast %20 : i32 to vector<4x1xi32>
      %22 = arith.cmpi slt, %21, %14 : vector<4x1xi32>
      %23 = arith.extui %22 : vector<4x1xi1> to vector<4x1xi32>
      %24 = arith.sitofp %23 : vector<4x1xi32> to vector<4x1xf32>
      %c0_13 = arith.constant 0 : index
      %c0_14 = arith.constant 0 : index
      %c0_15 = arith.constant 0 : index
      %25 = vector.load %arg3[%c0_13, %c0_14, %c0_15] : memref<4x8x32xf32, #tpu.memory_space<vmem>>, vector<4x1x32xf32>
      %26 = vector.shape_cast %25 : vector<4x1x32xf32> to vector<4x32xf32>
      %c0_16 = arith.constant 0 : index
      %c0_17 = arith.constant 0 : index
      %27 = vector.load %arg6[%c0_16, %c0_17] : memref<32x384xf32, #tpu.memory_space<vmem>>, vector<32x384xf32>
      %cst = arith.constant dense<0.000000e+00> : vector<4x384xf32>
      %28 = tpu.matmul %26, %27, %cst {dimension_numbers = #tpu.dot_dimension_numbers<[1], [0], [0], [1], [0, 0, 1, 1], [], []>} : vector<4x32xf32>, vector<32x384xf32>, vector<4x384xf32> -> vector<4x384xf32>
      %c0_18 = arith.constant 0 : index
      %c0_19 = arith.constant 0 : index
      %29 = vector.load %arg7[%c0_18, %c0_19] : memref<1x384xf32, #tpu.memory_space<vmem>>, vector<1x384xf32>
      %30 = vector.broadcast %29 : vector<1x384xf32> to vector<4x384xf32>
      %31 = arith.addf %28, %30 : vector<4x384xf32>
      %c0_20 = arith.constant 0 : index
      %c0_21 = arith.constant 0 : index
      %32 = vector.load %arg8[%c0_20, %c0_21] : memref<128x384xf32, #tpu.memory_space<vmem>>, vector<128x384xf32>
      %cst_22 = arith.constant dense<0.000000e+00> : vector<4x384xf32>
      %33 = tpu.matmul %16, %32, %cst_22 {dimension_numbers = #tpu.dot_dimension_numbers<[1], [0], [0], [1], [0, 0, 1, 1], [], []>} : vector<4x128xf32>, vector<128x384xf32>, vector<4x384xf32> -> vector<4x384xf32>
      %c0_23 = arith.constant 0 : index
      %c0_24 = arith.constant 0 : index
      %34 = vector.load %arg9[%c0_23, %c0_24] : memref<1x384xf32, #tpu.memory_space<vmem>>, vector<1x384xf32>
      %35 = vector.broadcast %34 : vector<1x384xf32> to vector<4x384xf32>
      %36 = arith.addf %33, %35 : vector<4x384xf32>
      %37 = vector.extract_strided_slice %31 {offsets = [0, 0], sizes = [4, 128], strides = [1, 1]} : vector<4x384xf32> to vector<4x128xf32>
      %38 = vector.extract_strided_slice %36 {offsets = [0, 0], sizes = [4, 128], strides = [1, 1]} : vector<4x384xf32> to vector<4x128xf32>
      %39 = arith.addf %37, %38 : vector<4x128xf32>
      %40 = arith.negf %39 : vector<4x128xf32>
      %41 = math.exp %40 : vector<4x128xf32>
      %cst_25 = arith.constant 1.000000e+00 : f32
      %42 = vector.broadcast %cst_25 : f32 to vector<4x128xf32>
      %43 = arith.addf %42, %41 : vector<4x128xf32>
      %44 = arith.divf %42, %43 : vector<4x128xf32>
      %45 = vector.extract_strided_slice %31 {offsets = [0, 128], sizes = [4, 128], strides = [1, 1]} : vector<4x384xf32> to vector<4x128xf32>
      %46 = vector.extract_strided_slice %36 {offsets = [0, 128], sizes = [4, 128], strides = [1, 1]} : vector<4x384xf32> to vector<4x128xf32>
      %47 = arith.addf %45, %46 : vector<4x128xf32>
      %48 = arith.negf %47 : vector<4x128xf32>
      %49 = math.exp %48 : vector<4x128xf32>
      %cst_26 = arith.constant 1.000000e+00 : f32
      %50 = vector.broadcast %cst_26 : f32 to vector<4x128xf32>
      %51 = arith.addf %50, %49 : vector<4x128xf32>
      %52 = arith.divf %50, %51 : vector<4x128xf32>
      %53 = vector.extract_strided_slice %31 {offsets = [0, 256], sizes = [4, 128], strides = [1, 1]} : vector<4x384xf32> to vector<4x128xf32>
      %54 = vector.extract_strided_slice %36 {offsets = [0, 256], sizes = [4, 128], strides = [1, 1]} : vector<4x384xf32> to vector<4x128xf32>
      %55 = arith.mulf %44, %54 : vector<4x128xf32>
      %56 = arith.addf %53, %55 : vector<4x128xf32>
      %57 = math.tanh %56 : vector<4x128xf32>
      %cst_27 = arith.constant 1.000000e+00 : f32
      %58 = vector.broadcast %cst_27 : f32 to vector<4x128xf32>
      %59 = arith.subf %58, %52 : vector<4x128xf32>
      %60 = arith.mulf %59, %57 : vector<4x128xf32>
      %61 = arith.mulf %52, %16 : vector<4x128xf32>
      %62 = arith.addf %60, %61 : vector<4x128xf32>
      %63 = arith.subf %62, %16 : vector<4x128xf32>
      %64 = vector.broadcast %24 : vector<4x1xf32> to vector<4x128xf32>
      %65 = arith.mulf %64, %63 : vector<4x128xf32>
      %66 = arith.addf %16, %65 : vector<4x128xf32>
      %c0_28 = arith.constant 0 : index
      %c0_29 = arith.constant 0 : index
      %67 = vector.load %arg10[%c0_28, %c0_29] : memref<128x384xf32, #tpu.memory_space<vmem>>, vector<128x384xf32>
      %cst_30 = arith.constant dense<0.000000e+00> : vector<4x384xf32>
      %68 = tpu.matmul %66, %67, %cst_30 {dimension_numbers = #tpu.dot_dimension_numbers<[1], [0], [0], [1], [0, 0, 1, 1], [], []>} : vector<4x128xf32>, vector<128x384xf32>, vector<4x384xf32> -> vector<4x384xf32>
      %c0_31 = arith.constant 0 : index
      %c0_32 = arith.constant 0 : index
      %69 = vector.load %arg11[%c0_31, %c0_32] : memref<1x384xf32, #tpu.memory_space<vmem>>, vector<1x384xf32>
      %70 = vector.broadcast %69 : vector<1x384xf32> to vector<4x384xf32>
      %71 = arith.addf %68, %70 : vector<4x384xf32>
      %c0_33 = arith.constant 0 : index
      %c0_34 = arith.constant 0 : index
      %72 = vector.load %arg12[%c0_33, %c0_34] : memref<128x384xf32, #tpu.memory_space<vmem>>, vector<128x384xf32>
      %cst_35 = arith.constant dense<0.000000e+00> : vector<4x384xf32>
      %73 = tpu.matmul %18, %72, %cst_35 {dimension_numbers = #tpu.dot_dimension_numbers<[1], [0], [0], [1], [0, 0, 1, 1], [], []>} : vector<4x128xf32>, vector<128x384xf32>, vector<4x384xf32> -> vector<4x384xf32>
      %c0_36 = arith.constant 0 : index
      %c0_37 = arith.constant 0 : index
      %74 = vector.load %arg13[%c0_36, %c0_37] : memref<1x384xf32, #tpu.memory_space<vmem>>, vector<1x384xf32>
      %75 = vector.broadcast %74 : vector<1x384xf32> to vector<4x384xf32>
      %76 = arith.addf %73, %75 : vector<4x384xf32>
      %77 = vector.extract_strided_slice %71 {offsets = [0, 0], sizes = [4, 128], strides = [1, 1]} : vector<4x384xf32> to vector<4x128xf32>
      %78 = vector.extract_strided_slice %76 {offsets = [0, 0], sizes = [4, 128], strides = [1, 1]} : vector<4x384xf32> to vector<4x128xf32>
      %79 = arith.addf %77, %78 : vector<4x128xf32>
      %80 = arith.negf %79 : vector<4x128xf32>
      %81 = math.exp %80 : vector<4x128xf32>
      %cst_38 = arith.constant 1.000000e+00 : f32
      %82 = vector.broadcast %cst_38 : f32 to vector<4x128xf32>
      %83 = arith.addf %82, %81 : vector<4x128xf32>
      %84 = arith.divf %82, %83 : vector<4x128xf32>
      %85 = vector.extract_strided_slice %71 {offsets = [0, 128], sizes = [4, 128], strides = [1, 1]} : vector<4x384xf32> to vector<4x128xf32>
      %86 = vector.extract_strided_slice %76 {offsets = [0, 128], sizes = [4, 128], strides = [1, 1]} : vector<4x384xf32> to vector<4x128xf32>
      %87 = arith.addf %85, %86 : vector<4x128xf32>
      %88 = arith.negf %87 : vector<4x128xf32>
      %89 = math.exp %88 : vector<4x128xf32>
      %cst_39 = arith.constant 1.000000e+00 : f32
      %90 = vector.broadcast %cst_39 : f32 to vector<4x128xf32>
      %91 = arith.addf %90, %89 : vector<4x128xf32>
      %92 = arith.divf %90, %91 : vector<4x128xf32>
      %93 = vector.extract_strided_slice %71 {offsets = [0, 256], sizes = [4, 128], strides = [1, 1]} : vector<4x384xf32> to vector<4x128xf32>
      %94 = vector.extract_strided_slice %76 {offsets = [0, 256], sizes = [4, 128], strides = [1, 1]} : vector<4x384xf32> to vector<4x128xf32>
      %95 = arith.mulf %84, %94 : vector<4x128xf32>
      %96 = arith.addf %93, %95 : vector<4x128xf32>
      %97 = math.tanh %96 : vector<4x128xf32>
      %cst_40 = arith.constant 1.000000e+00 : f32
      %98 = vector.broadcast %cst_40 : f32 to vector<4x128xf32>
      %99 = arith.subf %98, %92 : vector<4x128xf32>
      %100 = arith.mulf %99, %97 : vector<4x128xf32>
      %101 = arith.mulf %92, %18 : vector<4x128xf32>
      %102 = arith.addf %100, %101 : vector<4x128xf32>
      %103 = arith.subf %102, %18 : vector<4x128xf32>
      %104 = vector.broadcast %24 : vector<4x1xf32> to vector<4x128xf32>
      %105 = arith.mulf %104, %103 : vector<4x128xf32>
      %106 = arith.addf %18, %105 : vector<4x128xf32>
      %107 = vector.broadcast %24 : vector<4x1xf32> to vector<4x128xf32>
      %108 = arith.mulf %106, %107 : vector<4x128xf32>
      %c8_i32_41 = arith.constant 8 : i32
      %109 = arith.muli %arg1, %c8_i32_41 : i32
      %c1_i32_42 = arith.constant 1 : i32
      %110 = arith.addi %109, %c1_i32_42 : i32
      %111 = vector.broadcast %110 : i32 to vector<4x1xi32>
      %112 = arith.cmpi slt, %111, %14 : vector<4x1xi32>
      %113 = arith.extui %112 : vector<4x1xi1> to vector<4x1xi32>
      %114 = arith.sitofp %113 : vector<4x1xi32> to vector<4x1xf32>
      %c0_43 = arith.constant 0 : index
      %c1_44 = arith.constant 1 : index
      %c0_45 = arith.constant 0 : index
      %115 = vector.load %arg3[%c0_43, %c1_44, %c0_45] : memref<4x8x32xf32, #tpu.memory_space<vmem>>, vector<4x1x32xf32>
      %116 = vector.shape_cast %115 : vector<4x1x32xf32> to vector<4x32xf32>
      %c0_46 = arith.constant 0 : index
      %c0_47 = arith.constant 0 : index
      %117 = vector.load %arg6[%c0_46, %c0_47] : memref<32x384xf32, #tpu.memory_space<vmem>>, vector<32x384xf32>
      %cst_48 = arith.constant dense<0.000000e+00> : vector<4x384xf32>
      %118 = tpu.matmul %116, %117, %cst_48 {dimension_numbers = #tpu.dot_dimension_numbers<[1], [0], [0], [1], [0, 0, 1, 1], [], []>} : vector<4x32xf32>, vector<32x384xf32>, vector<4x384xf32> -> vector<4x384xf32>
      %c0_49 = arith.constant 0 : index
      %c0_50 = arith.constant 0 : index
      %119 = vector.load %arg7[%c0_49, %c0_50] : memref<1x384xf32, #tpu.memory_space<vmem>>, vector<1x384xf32>
      %120 = vector.broadcast %119 : vector<1x384xf32> to vector<4x384xf32>
      %121 = arith.addf %118, %120 : vector<4x384xf32>
      %c0_51 = arith.constant 0 : index
      %c0_52 = arith.constant 0 : index
      %122 = vector.load %arg8[%c0_51, %c0_52] : memref<128x384xf32, #tpu.memory_space<vmem>>, vector<128x384xf32>
      %cst_53 = arith.constant dense<0.000000e+00> : vector<4x384xf32>
      %123 = tpu.matmul %66, %122, %cst_53 {dimension_numbers = #tpu.dot_dimension_numbers<[1], [0], [0], [1], [0, 0, 1, 1], [], []>} : vector<4x128xf32>, vector<128x384xf32>, vector<4x384xf32> -> vector<4x384xf32>
      %c0_54 = arith.constant 0 : index
      %c0_55 = arith.constant 0 : index
      %124 = vector.load %arg9[%c0_54, %c0_55] : memref<1x384xf32, #tpu.memory_space<vmem>>, vector<1x384xf32>
      %125 = vector.broadcast %124 : vector<1x384xf32> to vector<4x384xf32>
      %126 = arith.addf %123, %125 : vector<4x384xf32>
      %127 = vector.extract_strided_slice %121 {offsets = [0, 0], sizes = [4, 128], strides = [1, 1]} : vector<4x384xf32> to vector<4x128xf32>
      %128 = vector.extract_strided_slice %126 {offsets = [0, 0], sizes = [4, 128], strides = [1, 1]} : vector<4x384xf32> to vector<4x128xf32>
      %129 = arith.addf %127, %128 : vector<4x128xf32>
      %130 = arith.negf %129 : vector<4x128xf32>
      %131 = math.exp %130 : vector<4x128xf32>
      %cst_56 = arith.constant 1.000000e+00 : f32
      %132 = vector.broadcast %cst_56 : f32 to vector<4x128xf32>
      %133 = arith.addf %132, %131 : vector<4x128xf32>
      %134 = arith.divf %132, %133 : vector<4x128xf32>
      %135 = vector.extract_strided_slice %121 {offsets = [0, 128], sizes = [4, 128], strides = [1, 1]} : vector<4x384xf32> to vector<4x128xf32>
      %136 = vector.extract_strided_slice %126 {offsets = [0, 128], sizes = [4, 128], strides = [1, 1]} : vector<4x384xf32> to vector<4x128xf32>
      %137 = arith.addf %135, %136 : vector<4x128xf32>
      %138 = arith.negf %137 : vector<4x128xf32>
      %139 = math.exp %138 : vector<4x128xf32>
      %cst_57 = arith.constant 1.000000e+00 : f32
      %140 = vector.broadcast %cst_57 : f32 to vector<4x128xf32>
      %141 = arith.addf %140, %139 : vector<4x128xf32>
      %142 = arith.divf %140, %141 : vector<4x128xf32>
      %143 = vector.extract_strided_slice %121 {offsets = [0, 256], sizes = [4, 128], strides = [1, 1]} : vector<4x384xf32> to vector<4x128xf32>
      %144 = vector.extract_strided_slice %126 {offsets = [0, 256], sizes = [4, 128], strides = [1, 1]} : vector<4x384xf32> to vector<4x128xf32>
      %145 = arith.mulf %134, %144 : vector<4x128xf32>
      %146 = arith.addf %143, %145 : vector<4x128xf32>
      %147 = math.tanh %146 : vector<4x128xf32>
      %cst_58 = arith.constant 1.000000e+00 : f32
      %148 = vector.broadcast %cst_58 : f32 to vector<4x128xf32>
      %149 = arith.subf %148, %142 : vector<4x128xf32>
      %150 = arith.mulf %149, %147 : vector<4x128xf32>
      %151 = arith.mulf %142, %66 : vector<4x128xf32>
      %152 = arith.addf %150, %151 : vector<4x128xf32>
      %153 = arith.subf %152, %66 : vector<4x128xf32>
      %154 = vector.broadcast %114 : vector<4x1xf32> to vector<4x128xf32>
      %155 = arith.mulf %154, %153 : vector<4x128xf32>
      %156 = arith.addf %66, %155 : vector<4x128xf32>
      %c0_59 = arith.constant 0 : index
      %c0_60 = arith.constant 0 : index
      %157 = vector.load %arg10[%c0_59, %c0_60] : memref<128x384xf32, #tpu.memory_space<vmem>>, vector<128x384xf32>
      %cst_61 = arith.constant dense<0.000000e+00> : vector<4x384xf32>
      %158 = tpu.matmul %156, %157, %cst_61 {dimension_numbers = #tpu.dot_dimension_numbers<[1], [0], [0], [1], [0, 0, 1, 1], [], []>} : vector<4x128xf32>, vector<128x384xf32>, vector<4x384xf32> -> vector<4x384xf32>
      %c0_62 = arith.constant 0 : index
      %c0_63 = arith.constant 0 : index
      %159 = vector.load %arg11[%c0_62, %c0_63] : memref<1x384xf32, #tpu.memory_space<vmem>>, vector<1x384xf32>
      %160 = vector.broadcast %159 : vector<1x384xf32> to vector<4x384xf32>
      %161 = arith.addf %158, %160 : vector<4x384xf32>
      %c0_64 = arith.constant 0 : index
      %c0_65 = arith.constant 0 : index
      %162 = vector.load %arg12[%c0_64, %c0_65] : memref<128x384xf32, #tpu.memory_space<vmem>>, vector<128x384xf32>
      %cst_66 = arith.constant dense<0.000000e+00> : vector<4x384xf32>
      %163 = tpu.matmul %106, %162, %cst_66 {dimension_numbers = #tpu.dot_dimension_numbers<[1], [0], [0], [1], [0, 0, 1, 1], [], []>} : vector<4x128xf32>, vector<128x384xf32>, vector<4x384xf32> -> vector<4x384xf32>
      %c0_67 = arith.constant 0 : index
      %c0_68 = arith.constant 0 : index
      %164 = vector.load %arg13[%c0_67, %c0_68] : memref<1x384xf32, #tpu.memory_space<vmem>>, vector<1x384xf32>
      %165 = vector.broadcast %164 : vector<1x384xf32> to vector<4x384xf32>
      %166 = arith.addf %163, %165 : vector<4x384xf32>
      %167 = vector.extract_strided_slice %161 {offsets = [0, 0], sizes = [4, 128], strides = [1, 1]} : vector<4x384xf32> to vector<4x128xf32>
      %168 = vector.extract_strided_slice %166 {offsets = [0, 0], sizes = [4, 128], strides = [1, 1]} : vector<4x384xf32> to vector<4x128xf32>
      %169 = arith.addf %167, %168 : vector<4x128xf32>
      %170 = arith.negf %169 : vector<4x128xf32>
      %171 = math.exp %170 : vector<4x128xf32>
      %cst_69 = arith.constant 1.000000e+00 : f32
      %172 = vector.broadcast %cst_69 : f32 to vector<4x128xf32>
      %173 = arith.addf %172, %171 : vector<4x128xf32>
      %174 = arith.divf %172, %173 : vector<4x128xf32>
      %175 = vector.extract_strided_slice %161 {offsets = [0, 128], sizes = [4, 128], strides = [1, 1]} : vector<4x384xf32> to vector<4x128xf32>
      %176 = vector.extract_strided_slice %166 {offsets = [0, 128], sizes = [4, 128], strides = [1, 1]} : vector<4x384xf32> to vector<4x128xf32>
      %177 = arith.addf %175, %176 : vector<4x128xf32>
      %178 = arith.negf %177 : vector<4x128xf32>
      %179 = math.exp %178 : vector<4x128xf32>
      %cst_70 = arith.constant 1.000000e+00 : f32
      %180 = vector.broadcast %cst_70 : f32 to vector<4x128xf32>
      %181 = arith.addf %180, %179 : vector<4x128xf32>
      %182 = arith.divf %180, %181 : vector<4x128xf32>
      %183 = vector.extract_strided_slice %161 {offsets = [0, 256], sizes = [4, 128], strides = [1, 1]} : vector<4x384xf32> to vector<4x128xf32>
      %184 = vector.extract_strided_slice %166 {offsets = [0, 256], sizes = [4, 128], strides = [1, 1]} : vector<4x384xf32> to vector<4x128xf32>
      %185 = arith.mulf %174, %184 : vector<4x128xf32>
      %186 = arith.addf %183, %185 : vector<4x128xf32>
      %187 = math.tanh %186 : vector<4x128xf32>
      %cst_71 = arith.constant 1.000000e+00 : f32
      %188 = vector.broadcast %cst_71 : f32 to vector<4x128xf32>
      %189 = arith.subf %188, %182 : vector<4x128xf32>
      %190 = arith.mulf %189, %187 : vector<4x128xf32>
      %191 = arith.mulf %182, %106 : vector<4x128xf32>
      %192 = arith.addf %190, %191 : vector<4x128xf32>
      %193 = arith.subf %192, %106 : vector<4x128xf32>
      %194 = vector.broadcast %114 : vector<4x1xf32> to vector<4x128xf32>
      %195 = arith.mulf %194, %193 : vector<4x128xf32>
      %196 = arith.addf %106, %195 : vector<4x128xf32>
      %197 = vector.broadcast %114 : vector<4x1xf32> to vector<4x128xf32>
      %198 = arith.mulf %196, %197 : vector<4x128xf32>
      %c8_i32_72 = arith.constant 8 : i32
      %199 = arith.muli %arg1, %c8_i32_72 : i32
      %c2_i32 = arith.constant 2 : i32
      %200 = arith.addi %199, %c2_i32 : i32
      %201 = vector.broadcast %200 : i32 to vector<4x1xi32>
      %202 = arith.cmpi slt, %201, %14 : vector<4x1xi32>
      %203 = arith.extui %202 : vector<4x1xi1> to vector<4x1xi32>
      %204 = arith.sitofp %203 : vector<4x1xi32> to vector<4x1xf32>
      %c0_73 = arith.constant 0 : index
      %c2 = arith.constant 2 : index
      %c0_74 = arith.constant 0 : index
      %205 = vector.load %arg3[%c0_73, %c2, %c0_74] : memref<4x8x32xf32, #tpu.memory_space<vmem>>, vector<4x1x32xf32>
      %206 = vector.shape_cast %205 : vector<4x1x32xf32> to vector<4x32xf32>
      %c0_75 = arith.constant 0 : index
      %c0_76 = arith.constant 0 : index
      %207 = vector.load %arg6[%c0_75, %c0_76] : memref<32x384xf32, #tpu.memory_space<vmem>>, vector<32x384xf32>
      %cst_77 = arith.constant dense<0.000000e+00> : vector<4x384xf32>
      %208 = tpu.matmul %206, %207, %cst_77 {dimension_numbers = #tpu.dot_dimension_numbers<[1], [0], [0], [1], [0, 0, 1, 1], [], []>} : vector<4x32xf32>, vector<32x384xf32>, vector<4x384xf32> -> vector<4x384xf32>
      %c0_78 = arith.constant 0 : index
      %c0_79 = arith.constant 0 : index
      %209 = vector.load %arg7[%c0_78, %c0_79] : memref<1x384xf32, #tpu.memory_space<vmem>>, vector<1x384xf32>
      %210 = vector.broadcast %209 : vector<1x384xf32> to vector<4x384xf32>
      %211 = arith.addf %208, %210 : vector<4x384xf32>
      %c0_80 = arith.constant 0 : index
      %c0_81 = arith.constant 0 : index
      %212 = vector.load %arg8[%c0_80, %c0_81] : memref<128x384xf32, #tpu.memory_space<vmem>>, vector<128x384xf32>
      %cst_82 = arith.constant dense<0.000000e+00> : vector<4x384xf32>
      %213 = tpu.matmul %156, %212, %cst_82 {dimension_numbers = #tpu.dot_dimension_numbers<[1], [0], [0], [1], [0, 0, 1, 1], [], []>} : vector<4x128xf32>, vector<128x384xf32>, vector<4x384xf32> -> vector<4x384xf32>
      %c0_83 = arith.constant 0 : index
      %c0_84 = arith.constant 0 : index
      %214 = vector.load %arg9[%c0_83, %c0_84] : memref<1x384xf32, #tpu.memory_space<vmem>>, vector<1x384xf32>
      %215 = vector.broadcast %214 : vector<1x384xf32> to vector<4x384xf32>
      %216 = arith.addf %213, %215 : vector<4x384xf32>
      %217 = vector.extract_strided_slice %211 {offsets = [0, 0], sizes = [4, 128], strides = [1, 1]} : vector<4x384xf32> to vector<4x128xf32>
      %218 = vector.extract_strided_slice %216 {offsets = [0, 0], sizes = [4, 128], strides = [1, 1]} : vector<4x384xf32> to vector<4x128xf32>
      %219 = arith.addf %217, %218 : vector<4x128xf32>
      %220 = arith.negf %219 : vector<4x128xf32>
      %221 = math.exp %220 : vector<4x128xf32>
      %cst_85 = arith.constant 1.000000e+00 : f32
      %222 = vector.broadcast %cst_85 : f32 to vector<4x128xf32>
      %223 = arith.addf %222, %221 : vector<4x128xf32>
      %224 = arith.divf %222, %223 : vector<4x128xf32>
      %225 = vector.extract_strided_slice %211 {offsets = [0, 128], sizes = [4, 128], strides = [1, 1]} : vector<4x384xf32> to vector<4x128xf32>
      %226 = vector.extract_strided_slice %216 {offsets = [0, 128], sizes = [4, 128], strides = [1, 1]} : vector<4x384xf32> to vector<4x128xf32>
      %227 = arith.addf %225, %226 : vector<4x128xf32>
      %228 = arith.negf %227 : vector<4x128xf32>
      %229 = math.exp %228 : vector<4x128xf32>
      %cst_86 = arith.constant 1.000000e+00 : f32
      %230 = vector.broadcast %cst_86 : f32 to vector<4x128xf32>
      %231 = arith.addf %230, %229 : vector<4x128xf32>
      %232 = arith.divf %230, %231 : vector<4x128xf32>
      %233 = vector.extract_strided_slice %211 {offsets = [0, 256], sizes = [4, 128], strides = [1, 1]} : vector<4x384xf32> to vector<4x128xf32>
      %234 = vector.extract_strided_slice %216 {offsets = [0, 256], sizes = [4, 128], strides = [1, 1]} : vector<4x384xf32> to vector<4x128xf32>
      %235 = arith.mulf %224, %234 : vector<4x128xf32>
      %236 = arith.addf %233, %235 : vector<4x128xf32>
      %237 = math.tanh %236 : vector<4x128xf32>
      %cst_87 = arith.constant 1.000000e+00 : f32
      %238 = vector.broadcast %cst_87 : f32 to vector<4x128xf32>
      %239 = arith.subf %238, %232 : vector<4x128xf32>
      %240 = arith.mulf %239, %237 : vector<4x128xf32>
      %241 = arith.mulf %232, %156 : vector<4x128xf32>
      %242 = arith.addf %240, %241 : vector<4x128xf32>
      %243 = arith.subf %242, %156 : vector<4x128xf32>
      %244 = vector.broadcast %204 : vector<4x1xf32> to vector<4x128xf32>
      %245 = arith.mulf %244, %243 : vector<4x128xf32>
      %246 = arith.addf %156, %245 : vector<4x128xf32>
      %c0_88 = arith.constant 0 : index
      %c0_89 = arith.constant 0 : index
      %247 = vector.load %arg10[%c0_88, %c0_89] : memref<128x384xf32, #tpu.memory_space<vmem>>, vector<128x384xf32>
      %cst_90 = arith.constant dense<0.000000e+00> : vector<4x384xf32>
      %248 = tpu.matmul %246, %247, %cst_90 {dimension_numbers = #tpu.dot_dimension_numbers<[1], [0], [0], [1], [0, 0, 1, 1], [], []>} : vector<4x128xf32>, vector<128x384xf32>, vector<4x384xf32> -> vector<4x384xf32>
      %c0_91 = arith.constant 0 : index
      %c0_92 = arith.constant 0 : index
      %249 = vector.load %arg11[%c0_91, %c0_92] : memref<1x384xf32, #tpu.memory_space<vmem>>, vector<1x384xf32>
      %250 = vector.broadcast %249 : vector<1x384xf32> to vector<4x384xf32>
      %251 = arith.addf %248, %250 : vector<4x384xf32>
      %c0_93 = arith.constant 0 : index
      %c0_94 = arith.constant 0 : index
      %252 = vector.load %arg12[%c0_93, %c0_94] : memref<128x384xf32, #tpu.memory_space<vmem>>, vector<128x384xf32>
      %cst_95 = arith.constant dense<0.000000e+00> : vector<4x384xf32>
      %253 = tpu.matmul %196, %252, %cst_95 {dimension_numbers = #tpu.dot_dimension_numbers<[1], [0], [0], [1], [0, 0, 1, 1], [], []>} : vector<4x128xf32>, vector<128x384xf32>, vector<4x384xf32> -> vector<4x384xf32>
      %c0_96 = arith.constant 0 : index
      %c0_97 = arith.constant 0 : index
      %254 = vector.load %arg13[%c0_96, %c0_97] : memref<1x384xf32, #tpu.memory_space<vmem>>, vector<1x384xf32>
      %255 = vector.broadcast %254 : vector<1x384xf32> to vector<4x384xf32>
      %256 = arith.addf %253, %255 : vector<4x384xf32>
      %257 = vector.extract_strided_slice %251 {offsets = [0, 0], sizes = [4, 128], strides = [1, 1]} : vector<4x384xf32> to vector<4x128xf32>
      %258 = vector.extract_strided_slice %256 {offsets = [0, 0], sizes = [4, 128], strides = [1, 1]} : vector<4x384xf32> to vector<4x128xf32>
      %259 = arith.addf %257, %258 : vector<4x128xf32>
      %260 = arith.negf %259 : vector<4x128xf32>
      %261 = math.exp %260 : vector<4x128xf32>
      %cst_98 = arith.constant 1.000000e+00 : f32
      %262 = vector.broadcast %cst_98 : f32 to vector<4x128xf32>
      %263 = arith.addf %262, %261 : vector<4x128xf32>
      %264 = arith.divf %262, %263 : vector<4x128xf32>
      %265 = vector.extract_strided_slice %251 {offsets = [0, 128], sizes = [4, 128], strides = [1, 1]} : vector<4x384xf32> to vector<4x128xf32>
      %266 = vector.extract_strided_slice %256 {offsets = [0, 128], sizes = [4, 128], strides = [1, 1]} : vector<4x384xf32> to vector<4x128xf32>
      %267 = arith.addf %265, %266 : vector<4x128xf32>
      %268 = arith.negf %267 : vector<4x128xf32>
      %269 = math.exp %268 : vector<4x128xf32>
      %cst_99 = arith.constant 1.000000e+00 : f32
      %270 = vector.broadcast %cst_99 : f32 to vector<4x128xf32>
      %271 = arith.addf %270, %269 : vector<4x128xf32>
      %272 = arith.divf %270, %271 : vector<4x128xf32>
      %273 = vector.extract_strided_slice %251 {offsets = [0, 256], sizes = [4, 128], strides = [1, 1]} : vector<4x384xf32> to vector<4x128xf32>
      %274 = vector.extract_strided_slice %256 {offsets = [0, 256], sizes = [4, 128], strides = [1, 1]} : vector<4x384xf32> to vector<4x128xf32>
      %275 = arith.mulf %264, %274 : vector<4x128xf32>
      %276 = arith.addf %273, %275 : vector<4x128xf32>
      %277 = math.tanh %276 : vector<4x128xf32>
      %cst_100 = arith.constant 1.000000e+00 : f32
      %278 = vector.broadcast %cst_100 : f32 to vector<4x128xf32>
      %279 = arith.subf %278, %272 : vector<4x128xf32>
      %280 = arith.mulf %279, %277 : vector<4x128xf32>
      %281 = arith.mulf %272, %196 : vector<4x128xf32>
      %282 = arith.addf %280, %281 : vector<4x128xf32>
      %283 = arith.subf %282, %196 : vector<4x128xf32>
      %284 = vector.broadcast %204 : vector<4x1xf32> to vector<4x128xf32>
      %285 = arith.mulf %284, %283 : vector<4x128xf32>
      %286 = arith.addf %196, %285 : vector<4x128xf32>
      %287 = vector.broadcast %204 : vector<4x1xf32> to vector<4x128xf32>
      %288 = arith.mulf %286, %287 : vector<4x128xf32>
      %c8_i32_101 = arith.constant 8 : i32
      %289 = arith.muli %arg1, %c8_i32_101 : i32
      %c3_i32 = arith.constant 3 : i32
      %290 = arith.addi %289, %c3_i32 : i32
      %291 = vector.broadcast %290 : i32 to vector<4x1xi32>
      %292 = arith.cmpi slt, %291, %14 : vector<4x1xi32>
      %293 = arith.extui %292 : vector<4x1xi1> to vector<4x1xi32>
      %294 = arith.sitofp %293 : vector<4x1xi32> to vector<4x1xf32>
      %c0_102 = arith.constant 0 : index
      %c3 = arith.constant 3 : index
      %c0_103 = arith.constant 0 : index
      %295 = vector.load %arg3[%c0_102, %c3, %c0_103] : memref<4x8x32xf32, #tpu.memory_space<vmem>>, vector<4x1x32xf32>
      %296 = vector.shape_cast %295 : vector<4x1x32xf32> to vector<4x32xf32>
      %c0_104 = arith.constant 0 : index
      %c0_105 = arith.constant 0 : index
      %297 = vector.load %arg6[%c0_104, %c0_105] : memref<32x384xf32, #tpu.memory_space<vmem>>, vector<32x384xf32>
      %cst_106 = arith.constant dense<0.000000e+00> : vector<4x384xf32>
      %298 = tpu.matmul %296, %297, %cst_106 {dimension_numbers = #tpu.dot_dimension_numbers<[1], [0], [0], [1], [0, 0, 1, 1], [], []>} : vector<4x32xf32>, vector<32x384xf32>, vector<4x384xf32> -> vector<4x384xf32>
      %c0_107 = arith.constant 0 : index
      %c0_108 = arith.constant 0 : index
      %299 = vector.load %arg7[%c0_107, %c0_108] : memref<1x384xf32, #tpu.memory_space<vmem>>, vector<1x384xf32>
      %300 = vector.broadcast %299 : vector<1x384xf32> to vector<4x384xf32>
      %301 = arith.addf %298, %300 : vector<4x384xf32>
      %c0_109 = arith.constant 0 : index
      %c0_110 = arith.constant 0 : index
      %302 = vector.load %arg8[%c0_109, %c0_110] : memref<128x384xf32, #tpu.memory_space<vmem>>, vector<128x384xf32>
      %cst_111 = arith.constant dense<0.000000e+00> : vector<4x384xf32>
      %303 = tpu.matmul %246, %302, %cst_111 {dimension_numbers = #tpu.dot_dimension_numbers<[1], [0], [0], [1], [0, 0, 1, 1], [], []>} : vector<4x128xf32>, vector<128x384xf32>, vector<4x384xf32> -> vector<4x384xf32>
      %c0_112 = arith.constant 0 : index
      %c0_113 = arith.constant 0 : index
      %304 = vector.load %arg9[%c0_112, %c0_113] : memref<1x384xf32, #tpu.memory_space<vmem>>, vector<1x384xf32>
      %305 = vector.broadcast %304 : vector<1x384xf32> to vector<4x384xf32>
      %306 = arith.addf %303, %305 : vector<4x384xf32>
      %307 = vector.extract_strided_slice %301 {offsets = [0, 0], sizes = [4, 128], strides = [1, 1]} : vector<4x384xf32> to vector<4x128xf32>
      %308 = vector.extract_strided_slice %306 {offsets = [0, 0], sizes = [4, 128], strides = [1, 1]} : vector<4x384xf32> to vector<4x128xf32>
      %309 = arith.addf %307, %308 : vector<4x128xf32>
      %310 = arith.negf %309 : vector<4x128xf32>
      %311 = math.exp %310 : vector<4x128xf32>
      %cst_114 = arith.constant 1.000000e+00 : f32
      %312 = vector.broadcast %cst_114 : f32 to vector<4x128xf32>
      %313 = arith.addf %312, %311 : vector<4x128xf32>
      %314 = arith.divf %312, %313 : vector<4x128xf32>
      %315 = vector.extract_strided_slice %301 {offsets = [0, 128], sizes = [4, 128], strides = [1, 1]} : vector<4x384xf32> to vector<4x128xf32>
      %316 = vector.extract_strided_slice %306 {offsets = [0, 128], sizes = [4, 128], strides = [1, 1]} : vector<4x384xf32> to vector<4x128xf32>
      %317 = arith.addf %315, %316 : vector<4x128xf32>
      %318 = arith.negf %317 : vector<4x128xf32>
      %319 = math.exp %318 : vector<4x128xf32>
      %cst_115 = arith.constant 1.000000e+00 : f32
      %320 = vector.broadcast %cst_115 : f32 to vector<4x128xf32>
      %321 = arith.addf %320, %319 : vector<4x128xf32>
      %322 = arith.divf %320, %321 : vector<4x128xf32>
      %323 = vector.extract_strided_slice %301 {offsets = [0, 256], sizes = [4, 128], strides = [1, 1]} : vector<4x384xf32> to vector<4x128xf32>
      %324 = vector.extract_strided_slice %306 {offsets = [0, 256], sizes = [4, 128], strides = [1, 1]} : vector<4x384xf32> to vector<4x128xf32>
      %325 = arith.mulf %314, %324 : vector<4x128xf32>
      %326 = arith.addf %323, %325 : vector<4x128xf32>
      %327 = math.tanh %326 : vector<4x128xf32>
      %cst_116 = arith.constant 1.000000e+00 : f32
      %328 = vector.broadcast %cst_116 : f32 to vector<4x128xf32>
      %329 = arith.subf %328, %322 : vector<4x128xf32>
      %330 = arith.mulf %329, %327 : vector<4x128xf32>
      %331 = arith.mulf %322, %246 : vector<4x128xf32>
      %332 = arith.addf %330, %331 : vector<4x128xf32>
      %333 = arith.subf %332, %246 : vector<4x128xf32>
      %334 = vector.broadcast %294 : vector<4x1xf32> to vector<4x128xf32>
      %335 = arith.mulf %334, %333 : vector<4x128xf32>
      %336 = arith.addf %246, %335 : vector<4x128xf32>
      %c0_117 = arith.constant 0 : index
      %c0_118 = arith.constant 0 : index
      %337 = vector.load %arg10[%c0_117, %c0_118] : memref<128x384xf32, #tpu.memory_space<vmem>>, vector<128x384xf32>
      %cst_119 = arith.constant dense<0.000000e+00> : vector<4x384xf32>
      %338 = tpu.matmul %336, %337, %cst_119 {dimension_numbers = #tpu.dot_dimension_numbers<[1], [0], [0], [1], [0, 0, 1, 1], [], []>} : vector<4x128xf32>, vector<128x384xf32>, vector<4x384xf32> -> vector<4x384xf32>
      %c0_120 = arith.constant 0 : index
      %c0_121 = arith.constant 0 : index
      %339 = vector.load %arg11[%c0_120, %c0_121] : memref<1x384xf32, #tpu.memory_space<vmem>>, vector<1x384xf32>
      %340 = vector.broadcast %339 : vector<1x384xf32> to vector<4x384xf32>
      %341 = arith.addf %338, %340 : vector<4x384xf32>
      %c0_122 = arith.constant 0 : index
      %c0_123 = arith.constant 0 : index
      %342 = vector.load %arg12[%c0_122, %c0_123] : memref<128x384xf32, #tpu.memory_space<vmem>>, vector<128x384xf32>
      %cst_124 = arith.constant dense<0.000000e+00> : vector<4x384xf32>
      %343 = tpu.matmul %286, %342, %cst_124 {dimension_numbers = #tpu.dot_dimension_numbers<[1], [0], [0], [1], [0, 0, 1, 1], [], []>} : vector<4x128xf32>, vector<128x384xf32>, vector<4x384xf32> -> vector<4x384xf32>
      %c0_125 = arith.constant 0 : index
      %c0_126 = arith.constant 0 : index
      %344 = vector.load %arg13[%c0_125, %c0_126] : memref<1x384xf32, #tpu.memory_space<vmem>>, vector<1x384xf32>
      %345 = vector.broadcast %344 : vector<1x384xf32> to vector<4x384xf32>
      %346 = arith.addf %343, %345 : vector<4x384xf32>
      %347 = vector.extract_strided_slice %341 {offsets = [0, 0], sizes = [4, 128], strides = [1, 1]} : vector<4x384xf32> to vector<4x128xf32>
      %348 = vector.extract_strided_slice %346 {offsets = [0, 0], sizes = [4, 128], strides = [1, 1]} : vector<4x384xf32> to vector<4x128xf32>
      %349 = arith.addf %347, %348 : vector<4x128xf32>
      %350 = arith.negf %349 : vector<4x128xf32>
      %351 = math.exp %350 : vector<4x128xf32>
      %cst_127 = arith.constant 1.000000e+00 : f32
      %352 = vector.broadcast %cst_127 : f32 to vector<4x128xf32>
      %353 = arith.addf %352, %351 : vector<4x128xf32>
      %354 = arith.divf %352, %353 : vector<4x128xf32>
      %355 = vector.extract_strided_slice %341 {offsets = [0, 128], sizes = [4, 128], strides = [1, 1]} : vector<4x384xf32> to vector<4x128xf32>
      %356 = vector.extract_strided_slice %346 {offsets = [0, 128], sizes = [4, 128], strides = [1, 1]} : vector<4x384xf32> to vector<4x128xf32>
      %357 = arith.addf %355, %356 : vector<4x128xf32>
      %358 = arith.negf %357 : vector<4x128xf32>
      %359 = math.exp %358 : vector<4x128xf32>
      %cst_128 = arith.constant 1.000000e+00 : f32
      %360 = vector.broadcast %cst_128 : f32 to vector<4x128xf32>
      %361 = arith.addf %360, %359 : vector<4x128xf32>
      %362 = arith.divf %360, %361 : vector<4x128xf32>
      %363 = vector.extract_strided_slice %341 {offsets = [0, 256], sizes = [4, 128], strides = [1, 1]} : vector<4x384xf32> to vector<4x128xf32>
      %364 = vector.extract_strided_slice %346 {offsets = [0, 256], sizes = [4, 128], strides = [1, 1]} : vector<4x384xf32> to vector<4x128xf32>
      %365 = arith.mulf %354, %364 : vector<4x128xf32>
      %366 = arith.addf %363, %365 : vector<4x128xf32>
      %367 = math.tanh %366 : vector<4x128xf32>
      %cst_129 = arith.constant 1.000000e+00 : f32
      %368 = vector.broadcast %cst_129 : f32 to vector<4x128xf32>
      %369 = arith.subf %368, %362 : vector<4x128xf32>
      %370 = arith.mulf %369, %367 : vector<4x128xf32>
      %371 = arith.mulf %362, %286 : vector<4x128xf32>
      %372 = arith.addf %370, %371 : vector<4x128xf32>
      %373 = arith.subf %372, %286 : vector<4x128xf32>
      %374 = vector.broadcast %294 : vector<4x1xf32> to vector<4x128xf32>
      %375 = arith.mulf %374, %373 : vector<4x128xf32>
      %376 = arith.addf %286, %375 : vector<4x128xf32>
      %377 = vector.broadcast %294 : vector<4x1xf32> to vector<4x128xf32>
      %378 = arith.mulf %376, %377 : vector<4x128xf32>
      %c8_i32_130 = arith.constant 8 : i32
      %379 = arith.muli %arg1, %c8_i32_130 : i32
      %c4_i32 = arith.constant 4 : i32
      %380 = arith.addi %379, %c4_i32 : i32
      %381 = vector.broadcast %380 : i32 to vector<4x1xi32>
      %382 = arith.cmpi slt, %381, %14 : vector<4x1xi32>
      %383 = arith.extui %382 : vector<4x1xi1> to vector<4x1xi32>
      %384 = arith.sitofp %383 : vector<4x1xi32> to vector<4x1xf32>
      %c0_131 = arith.constant 0 : index
      %c4 = arith.constant 4 : index
      %c0_132 = arith.constant 0 : index
      %385 = vector.load %arg3[%c0_131, %c4, %c0_132] : memref<4x8x32xf32, #tpu.memory_space<vmem>>, vector<4x1x32xf32>
      %386 = vector.shape_cast %385 : vector<4x1x32xf32> to vector<4x32xf32>
      %c0_133 = arith.constant 0 : index
      %c0_134 = arith.constant 0 : index
      %387 = vector.load %arg6[%c0_133, %c0_134] : memref<32x384xf32, #tpu.memory_space<vmem>>, vector<32x384xf32>
      %cst_135 = arith.constant dense<0.000000e+00> : vector<4x384xf32>
      %388 = tpu.matmul %386, %387, %cst_135 {dimension_numbers = #tpu.dot_dimension_numbers<[1], [0], [0], [1], [0, 0, 1, 1], [], []>} : vector<4x32xf32>, vector<32x384xf32>, vector<4x384xf32> -> vector<4x384xf32>
      %c0_136 = arith.constant 0 : index
      %c0_137 = arith.constant 0 : index
      %389 = vector.load %arg7[%c0_136, %c0_137] : memref<1x384xf32, #tpu.memory_space<vmem>>, vector<1x384xf32>
      %390 = vector.broadcast %389 : vector<1x384xf32> to vector<4x384xf32>
      %391 = arith.addf %388, %390 : vector<4x384xf32>
      %c0_138 = arith.constant 0 : index
      %c0_139 = arith.constant 0 : index
      %392 = vector.load %arg8[%c0_138, %c0_139] : memref<128x384xf32, #tpu.memory_space<vmem>>, vector<128x384xf32>
      %cst_140 = arith.constant dense<0.000000e+00> : vector<4x384xf32>
      %393 = tpu.matmul %336, %392, %cst_140 {dimension_numbers = #tpu.dot_dimension_numbers<[1], [0], [0], [1], [0, 0, 1, 1], [], []>} : vector<4x128xf32>, vector<128x384xf32>, vector<4x384xf32> -> vector<4x384xf32>
      %c0_141 = arith.constant 0 : index
      %c0_142 = arith.constant 0 : index
      %394 = vector.load %arg9[%c0_141, %c0_142] : memref<1x384xf32, #tpu.memory_space<vmem>>, vector<1x384xf32>
      %395 = vector.broadcast %394 : vector<1x384xf32> to vector<4x384xf32>
      %396 = arith.addf %393, %395 : vector<4x384xf32>
      %397 = vector.extract_strided_slice %391 {offsets = [0, 0], sizes = [4, 128], strides = [1, 1]} : vector<4x384xf32> to vector<4x128xf32>
      %398 = vector.extract_strided_slice %396 {offsets = [0, 0], sizes = [4, 128], strides = [1, 1]} : vector<4x384xf32> to vector<4x128xf32>
      %399 = arith.addf %397, %398 : vector<4x128xf32>
      %400 = arith.negf %399 : vector<4x128xf32>
      %401 = math.exp %400 : vector<4x128xf32>
      %cst_143 = arith.constant 1.000000e+00 : f32
      %402 = vector.broadcast %cst_143 : f32 to vector<4x128xf32>
      %403 = arith.addf %402, %401 : vector<4x128xf32>
      %404 = arith.divf %402, %403 : vector<4x128xf32>
      %405 = vector.extract_strided_slice %391 {offsets = [0, 128], sizes = [4, 128], strides = [1, 1]} : vector<4x384xf32> to vector<4x128xf32>
      %406 = vector.extract_strided_slice %396 {offsets = [0, 128], sizes = [4, 128], strides = [1, 1]} : vector<4x384xf32> to vector<4x128xf32>
      %407 = arith.addf %405, %406 : vector<4x128xf32>
      %408 = arith.negf %407 : vector<4x128xf32>
      %409 = math.exp %408 : vector<4x128xf32>
      %cst_144 = arith.constant 1.000000e+00 : f32
      %410 = vector.broadcast %cst_144 : f32 to vector<4x128xf32>
      %411 = arith.addf %410, %409 : vector<4x128xf32>
      %412 = arith.divf %410, %411 : vector<4x128xf32>
      %413 = vector.extract_strided_slice %391 {offsets = [0, 256], sizes = [4, 128], strides = [1, 1]} : vector<4x384xf32> to vector<4x128xf32>
      %414 = vector.extract_strided_slice %396 {offsets = [0, 256], sizes = [4, 128], strides = [1, 1]} : vector<4x384xf32> to vector<4x128xf32>
      %415 = arith.mulf %404, %414 : vector<4x128xf32>
      %416 = arith.addf %413, %415 : vector<4x128xf32>
      %417 = math.tanh %416 : vector<4x128xf32>
      %cst_145 = arith.constant 1.000000e+00 : f32
      %418 = vector.broadcast %cst_145 : f32 to vector<4x128xf32>
      %419 = arith.subf %418, %412 : vector<4x128xf32>
      %420 = arith.mulf %419, %417 : vector<4x128xf32>
      %421 = arith.mulf %412, %336 : vector<4x128xf32>
      %422 = arith.addf %420, %421 : vector<4x128xf32>
      %423 = arith.subf %422, %336 : vector<4x128xf32>
      %424 = vector.broadcast %384 : vector<4x1xf32> to vector<4x128xf32>
      %425 = arith.mulf %424, %423 : vector<4x128xf32>
      %426 = arith.addf %336, %425 : vector<4x128xf32>
      %c0_146 = arith.constant 0 : index
      %c0_147 = arith.constant 0 : index
      %427 = vector.load %arg10[%c0_146, %c0_147] : memref<128x384xf32, #tpu.memory_space<vmem>>, vector<128x384xf32>
      %cst_148 = arith.constant dense<0.000000e+00> : vector<4x384xf32>
      %428 = tpu.matmul %426, %427, %cst_148 {dimension_numbers = #tpu.dot_dimension_numbers<[1], [0], [0], [1], [0, 0, 1, 1], [], []>} : vector<4x128xf32>, vector<128x384xf32>, vector<4x384xf32> -> vector<4x384xf32>
      %c0_149 = arith.constant 0 : index
      %c0_150 = arith.constant 0 : index
      %429 = vector.load %arg11[%c0_149, %c0_150] : memref<1x384xf32, #tpu.memory_space<vmem>>, vector<1x384xf32>
      %430 = vector.broadcast %429 : vector<1x384xf32> to vector<4x384xf32>
      %431 = arith.addf %428, %430 : vector<4x384xf32>
      %c0_151 = arith.constant 0 : index
      %c0_152 = arith.constant 0 : index
      %432 = vector.load %arg12[%c0_151, %c0_152] : memref<128x384xf32, #tpu.memory_space<vmem>>, vector<128x384xf32>
      %cst_153 = arith.constant dense<0.000000e+00> : vector<4x384xf32>
      %433 = tpu.matmul %376, %432, %cst_153 {dimension_numbers = #tpu.dot_dimension_numbers<[1], [0], [0], [1], [0, 0, 1, 1], [], []>} : vector<4x128xf32>, vector<128x384xf32>, vector<4x384xf32> -> vector<4x384xf32>
      %c0_154 = arith.constant 0 : index
      %c0_155 = arith.constant 0 : index
      %434 = vector.load %arg13[%c0_154, %c0_155] : memref<1x384xf32, #tpu.memory_space<vmem>>, vector<1x384xf32>
      %435 = vector.broadcast %434 : vector<1x384xf32> to vector<4x384xf32>
      %436 = arith.addf %433, %435 : vector<4x384xf32>
      %437 = vector.extract_strided_slice %431 {offsets = [0, 0], sizes = [4, 128], strides = [1, 1]} : vector<4x384xf32> to vector<4x128xf32>
      %438 = vector.extract_strided_slice %436 {offsets = [0, 0], sizes = [4, 128], strides = [1, 1]} : vector<4x384xf32> to vector<4x128xf32>
      %439 = arith.addf %437, %438 : vector<4x128xf32>
      %440 = arith.negf %439 : vector<4x128xf32>
      %441 = math.exp %440 : vector<4x128xf32>
      %cst_156 = arith.constant 1.000000e+00 : f32
      %442 = vector.broadcast %cst_156 : f32 to vector<4x128xf32>
      %443 = arith.addf %442, %441 : vector<4x128xf32>
      %444 = arith.divf %442, %443 : vector<4x128xf32>
      %445 = vector.extract_strided_slice %431 {offsets = [0, 128], sizes = [4, 128], strides = [1, 1]} : vector<4x384xf32> to vector<4x128xf32>
      %446 = vector.extract_strided_slice %436 {offsets = [0, 128], sizes = [4, 128], strides = [1, 1]} : vector<4x384xf32> to vector<4x128xf32>
      %447 = arith.addf %445, %446 : vector<4x128xf32>
      %448 = arith.negf %447 : vector<4x128xf32>
      %449 = math.exp %448 : vector<4x128xf32>
      %cst_157 = arith.constant 1.000000e+00 : f32
      %450 = vector.broadcast %cst_157 : f32 to vector<4x128xf32>
      %451 = arith.addf %450, %449 : vector<4x128xf32>
      %452 = arith.divf %450, %451 : vector<4x128xf32>
      %453 = vector.extract_strided_slice %431 {offsets = [0, 256], sizes = [4, 128], strides = [1, 1]} : vector<4x384xf32> to vector<4x128xf32>
      %454 = vector.extract_strided_slice %436 {offsets = [0, 256], sizes = [4, 128], strides = [1, 1]} : vector<4x384xf32> to vector<4x128xf32>
      %455 = arith.mulf %444, %454 : vector<4x128xf32>
      %456 = arith.addf %453, %455 : vector<4x128xf32>
      %457 = math.tanh %456 : vector<4x128xf32>
      %cst_158 = arith.constant 1.000000e+00 : f32
      %458 = vector.broadcast %cst_158 : f32 to vector<4x128xf32>
      %459 = arith.subf %458, %452 : vector<4x128xf32>
      %460 = arith.mulf %459, %457 : vector<4x128xf32>
      %461 = arith.mulf %452, %376 : vector<4x128xf32>
      %462 = arith.addf %460, %461 : vector<4x128xf32>
      %463 = arith.subf %462, %376 : vector<4x128xf32>
      %464 = vector.broadcast %384 : vector<4x1xf32> to vector<4x128xf32>
      %465 = arith.mulf %464, %463 : vector<4x128xf32>
      %466 = arith.addf %376, %465 : vector<4x128xf32>
      %467 = vector.broadcast %384 : vector<4x1xf32> to vector<4x128xf32>
      %468 = arith.mulf %466, %467 : vector<4x128xf32>
      %c8_i32_159 = arith.constant 8 : i32
      %469 = arith.muli %arg1, %c8_i32_159 : i32
      %c5_i32 = arith.constant 5 : i32
      %470 = arith.addi %469, %c5_i32 : i32
      %471 = vector.broadcast %470 : i32 to vector<4x1xi32>
      %472 = arith.cmpi slt, %471, %14 : vector<4x1xi32>
      %473 = arith.extui %472 : vector<4x1xi1> to vector<4x1xi32>
      %474 = arith.sitofp %473 : vector<4x1xi32> to vector<4x1xf32>
      %c0_160 = arith.constant 0 : index
      %c5 = arith.constant 5 : index
      %c0_161 = arith.constant 0 : index
      %475 = vector.load %arg3[%c0_160, %c5, %c0_161] : memref<4x8x32xf32, #tpu.memory_space<vmem>>, vector<4x1x32xf32>
      %476 = vector.shape_cast %475 : vector<4x1x32xf32> to vector<4x32xf32>
      %c0_162 = arith.constant 0 : index
      %c0_163 = arith.constant 0 : index
      %477 = vector.load %arg6[%c0_162, %c0_163] : memref<32x384xf32, #tpu.memory_space<vmem>>, vector<32x384xf32>
      %cst_164 = arith.constant dense<0.000000e+00> : vector<4x384xf32>
      %478 = tpu.matmul %476, %477, %cst_164 {dimension_numbers = #tpu.dot_dimension_numbers<[1], [0], [0], [1], [0, 0, 1, 1], [], []>} : vector<4x32xf32>, vector<32x384xf32>, vector<4x384xf32> -> vector<4x384xf32>
      %c0_165 = arith.constant 0 : index
      %c0_166 = arith.constant 0 : index
      %479 = vector.load %arg7[%c0_165, %c0_166] : memref<1x384xf32, #tpu.memory_space<vmem>>, vector<1x384xf32>
      %480 = vector.broadcast %479 : vector<1x384xf32> to vector<4x384xf32>
      %481 = arith.addf %478, %480 : vector<4x384xf32>
      %c0_167 = arith.constant 0 : index
      %c0_168 = arith.constant 0 : index
      %482 = vector.load %arg8[%c0_167, %c0_168] : memref<128x384xf32, #tpu.memory_space<vmem>>, vector<128x384xf32>
      %cst_169 = arith.constant dense<0.000000e+00> : vector<4x384xf32>
      %483 = tpu.matmul %426, %482, %cst_169 {dimension_numbers = #tpu.dot_dimension_numbers<[1], [0], [0], [1], [0, 0, 1, 1], [], []>} : vector<4x128xf32>, vector<128x384xf32>, vector<4x384xf32> -> vector<4x384xf32>
      %c0_170 = arith.constant 0 : index
      %c0_171 = arith.constant 0 : index
      %484 = vector.load %arg9[%c0_170, %c0_171] : memref<1x384xf32, #tpu.memory_space<vmem>>, vector<1x384xf32>
      %485 = vector.broadcast %484 : vector<1x384xf32> to vector<4x384xf32>
      %486 = arith.addf %483, %485 : vector<4x384xf32>
      %487 = vector.extract_strided_slice %481 {offsets = [0, 0], sizes = [4, 128], strides = [1, 1]} : vector<4x384xf32> to vector<4x128xf32>
      %488 = vector.extract_strided_slice %486 {offsets = [0, 0], sizes = [4, 128], strides = [1, 1]} : vector<4x384xf32> to vector<4x128xf32>
      %489 = arith.addf %487, %488 : vector<4x128xf32>
      %490 = arith.negf %489 : vector<4x128xf32>
      %491 = math.exp %490 : vector<4x128xf32>
      %cst_172 = arith.constant 1.000000e+00 : f32
      %492 = vector.broadcast %cst_172 : f32 to vector<4x128xf32>
      %493 = arith.addf %492, %491 : vector<4x128xf32>
      %494 = arith.divf %492, %493 : vector<4x128xf32>
      %495 = vector.extract_strided_slice %481 {offsets = [0, 128], sizes = [4, 128], strides = [1, 1]} : vector<4x384xf32> to vector<4x128xf32>
      %496 = vector.extract_strided_slice %486 {offsets = [0, 128], sizes = [4, 128], strides = [1, 1]} : vector<4x384xf32> to vector<4x128xf32>
      %497 = arith.addf %495, %496 : vector<4x128xf32>
      %498 = arith.negf %497 : vector<4x128xf32>
      %499 = math.exp %498 : vector<4x128xf32>
      %cst_173 = arith.constant 1.000000e+00 : f32
      %500 = vector.broadcast %cst_173 : f32 to vector<4x128xf32>
      %501 = arith.addf %500, %499 : vector<4x128xf32>
      %502 = arith.divf %500, %501 : vector<4x128xf32>
      %503 = vector.extract_strided_slice %481 {offsets = [0, 256], sizes = [4, 128], strides = [1, 1]} : vector<4x384xf32> to vector<4x128xf32>
      %504 = vector.extract_strided_slice %486 {offsets = [0, 256], sizes = [4, 128], strides = [1, 1]} : vector<4x384xf32> to vector<4x128xf32>
      %505 = arith.mulf %494, %504 : vector<4x128xf32>
      %506 = arith.addf %503, %505 : vector<4x128xf32>
      %507 = math.tanh %506 : vector<4x128xf32>
      %cst_174 = arith.constant 1.000000e+00 : f32
      %508 = vector.broadcast %cst_174 : f32 to vector<4x128xf32>
      %509 = arith.subf %508, %502 : vector<4x128xf32>
      %510 = arith.mulf %509, %507 : vector<4x128xf32>
      %511 = arith.mulf %502, %426 : vector<4x128xf32>
      %512 = arith.addf %510, %511 : vector<4x128xf32>
      %513 = arith.subf %512, %426 : vector<4x128xf32>
      %514 = vector.broadcast %474 : vector<4x1xf32> to vector<4x128xf32>
      %515 = arith.mulf %514, %513 : vector<4x128xf32>
      %516 = arith.addf %426, %515 : vector<4x128xf32>
      %c0_175 = arith.constant 0 : index
      %c0_176 = arith.constant 0 : index
      %517 = vector.load %arg10[%c0_175, %c0_176] : memref<128x384xf32, #tpu.memory_space<vmem>>, vector<128x384xf32>
      %cst_177 = arith.constant dense<0.000000e+00> : vector<4x384xf32>
      %518 = tpu.matmul %516, %517, %cst_177 {dimension_numbers = #tpu.dot_dimension_numbers<[1], [0], [0], [1], [0, 0, 1, 1], [], []>} : vector<4x128xf32>, vector<128x384xf32>, vector<4x384xf32> -> vector<4x384xf32>
      %c0_178 = arith.constant 0 : index
      %c0_179 = arith.constant 0 : index
      %519 = vector.load %arg11[%c0_178, %c0_179] : memref<1x384xf32, #tpu.memory_space<vmem>>, vector<1x384xf32>
      %520 = vector.broadcast %519 : vector<1x384xf32> to vector<4x384xf32>
      %521 = arith.addf %518, %520 : vector<4x384xf32>
      %c0_180 = arith.constant 0 : index
      %c0_181 = arith.constant 0 : index
      %522 = vector.load %arg12[%c0_180, %c0_181] : memref<128x384xf32, #tpu.memory_space<vmem>>, vector<128x384xf32>
      %cst_182 = arith.constant dense<0.000000e+00> : vector<4x384xf32>
      %523 = tpu.matmul %466, %522, %cst_182 {dimension_numbers = #tpu.dot_dimension_numbers<[1], [0], [0], [1], [0, 0, 1, 1], [], []>} : vector<4x128xf32>, vector<128x384xf32>, vector<4x384xf32> -> vector<4x384xf32>
      %c0_183 = arith.constant 0 : index
      %c0_184 = arith.constant 0 : index
      %524 = vector.load %arg13[%c0_183, %c0_184] : memref<1x384xf32, #tpu.memory_space<vmem>>, vector<1x384xf32>
      %525 = vector.broadcast %524 : vector<1x384xf32> to vector<4x384xf32>
      %526 = arith.addf %523, %525 : vector<4x384xf32>
      %527 = vector.extract_strided_slice %521 {offsets = [0, 0], sizes = [4, 128], strides = [1, 1]} : vector<4x384xf32> to vector<4x128xf32>
      %528 = vector.extract_strided_slice %526 {offsets = [0, 0], sizes = [4, 128], strides = [1, 1]} : vector<4x384xf32> to vector<4x128xf32>
      %529 = arith.addf %527, %528 : vector<4x128xf32>
      %530 = arith.negf %529 : vector<4x128xf32>
      %531 = math.exp %530 : vector<4x128xf32>
      %cst_185 = arith.constant 1.000000e+00 : f32
      %532 = vector.broadcast %cst_185 : f32 to vector<4x128xf32>
      %533 = arith.addf %532, %531 : vector<4x128xf32>
      %534 = arith.divf %532, %533 : vector<4x128xf32>
      %535 = vector.extract_strided_slice %521 {offsets = [0, 128], sizes = [4, 128], strides = [1, 1]} : vector<4x384xf32> to vector<4x128xf32>
      %536 = vector.extract_strided_slice %526 {offsets = [0, 128], sizes = [4, 128], strides = [1, 1]} : vector<4x384xf32> to vector<4x128xf32>
      %537 = arith.addf %535, %536 : vector<4x128xf32>
      %538 = arith.negf %537 : vector<4x128xf32>
      %539 = math.exp %538 : vector<4x128xf32>
      %cst_186 = arith.constant 1.000000e+00 : f32
      %540 = vector.broadcast %cst_186 : f32 to vector<4x128xf32>
      %541 = arith.addf %540, %539 : vector<4x128xf32>
      %542 = arith.divf %540, %541 : vector<4x128xf32>
      %543 = vector.extract_strided_slice %521 {offsets = [0, 256], sizes = [4, 128], strides = [1, 1]} : vector<4x384xf32> to vector<4x128xf32>
      %544 = vector.extract_strided_slice %526 {offsets = [0, 256], sizes = [4, 128], strides = [1, 1]} : vector<4x384xf32> to vector<4x128xf32>
      %545 = arith.mulf %534, %544 : vector<4x128xf32>
      %546 = arith.addf %543, %545 : vector<4x128xf32>
      %547 = math.tanh %546 : vector<4x128xf32>
      %cst_187 = arith.constant 1.000000e+00 : f32
      %548 = vector.broadcast %cst_187 : f32 to vector<4x128xf32>
      %549 = arith.subf %548, %542 : vector<4x128xf32>
      %550 = arith.mulf %549, %547 : vector<4x128xf32>
      %551 = arith.mulf %542, %466 : vector<4x128xf32>
      %552 = arith.addf %550, %551 : vector<4x128xf32>
      %553 = arith.subf %552, %466 : vector<4x128xf32>
      %554 = vector.broadcast %474 : vector<4x1xf32> to vector<4x128xf32>
      %555 = arith.mulf %554, %553 : vector<4x128xf32>
      %556 = arith.addf %466, %555 : vector<4x128xf32>
      %557 = vector.broadcast %474 : vector<4x1xf32> to vector<4x128xf32>
      %558 = arith.mulf %556, %557 : vector<4x128xf32>
      %c8_i32_188 = arith.constant 8 : i32
      %559 = arith.muli %arg1, %c8_i32_188 : i32
      %c6_i32 = arith.constant 6 : i32
      %560 = arith.addi %559, %c6_i32 : i32
      %561 = vector.broadcast %560 : i32 to vector<4x1xi32>
      %562 = arith.cmpi slt, %561, %14 : vector<4x1xi32>
      %563 = arith.extui %562 : vector<4x1xi1> to vector<4x1xi32>
      %564 = arith.sitofp %563 : vector<4x1xi32> to vector<4x1xf32>
      %c0_189 = arith.constant 0 : index
      %c6 = arith.constant 6 : index
      %c0_190 = arith.constant 0 : index
      %565 = vector.load %arg3[%c0_189, %c6, %c0_190] : memref<4x8x32xf32, #tpu.memory_space<vmem>>, vector<4x1x32xf32>
      %566 = vector.shape_cast %565 : vector<4x1x32xf32> to vector<4x32xf32>
      %c0_191 = arith.constant 0 : index
      %c0_192 = arith.constant 0 : index
      %567 = vector.load %arg6[%c0_191, %c0_192] : memref<32x384xf32, #tpu.memory_space<vmem>>, vector<32x384xf32>
      %cst_193 = arith.constant dense<0.000000e+00> : vector<4x384xf32>
      %568 = tpu.matmul %566, %567, %cst_193 {dimension_numbers = #tpu.dot_dimension_numbers<[1], [0], [0], [1], [0, 0, 1, 1], [], []>} : vector<4x32xf32>, vector<32x384xf32>, vector<4x384xf32> -> vector<4x384xf32>
      %c0_194 = arith.constant 0 : index
      %c0_195 = arith.constant 0 : index
      %569 = vector.load %arg7[%c0_194, %c0_195] : memref<1x384xf32, #tpu.memory_space<vmem>>, vector<1x384xf32>
      %570 = vector.broadcast %569 : vector<1x384xf32> to vector<4x384xf32>
      %571 = arith.addf %568, %570 : vector<4x384xf32>
      %c0_196 = arith.constant 0 : index
      %c0_197 = arith.constant 0 : index
      %572 = vector.load %arg8[%c0_196, %c0_197] : memref<128x384xf32, #tpu.memory_space<vmem>>, vector<128x384xf32>
      %cst_198 = arith.constant dense<0.000000e+00> : vector<4x384xf32>
      %573 = tpu.matmul %516, %572, %cst_198 {dimension_numbers = #tpu.dot_dimension_numbers<[1], [0], [0], [1], [0, 0, 1, 1], [], []>} : vector<4x128xf32>, vector<128x384xf32>, vector<4x384xf32> -> vector<4x384xf32>
      %c0_199 = arith.constant 0 : index
      %c0_200 = arith.constant 0 : index
      %574 = vector.load %arg9[%c0_199, %c0_200] : memref<1x384xf32, #tpu.memory_space<vmem>>, vector<1x384xf32>
      %575 = vector.broadcast %574 : vector<1x384xf32> to vector<4x384xf32>
      %576 = arith.addf %573, %575 : vector<4x384xf32>
      %577 = vector.extract_strided_slice %571 {offsets = [0, 0], sizes = [4, 128], strides = [1, 1]} : vector<4x384xf32> to vector<4x128xf32>
      %578 = vector.extract_strided_slice %576 {offsets = [0, 0], sizes = [4, 128], strides = [1, 1]} : vector<4x384xf32> to vector<4x128xf32>
      %579 = arith.addf %577, %578 : vector<4x128xf32>
      %580 = arith.negf %579 : vector<4x128xf32>
      %581 = math.exp %580 : vector<4x128xf32>
      %cst_201 = arith.constant 1.000000e+00 : f32
      %582 = vector.broadcast %cst_201 : f32 to vector<4x128xf32>
      %583 = arith.addf %582, %581 : vector<4x128xf32>
      %584 = arith.divf %582, %583 : vector<4x128xf32>
      %585 = vector.extract_strided_slice %571 {offsets = [0, 128], sizes = [4, 128], strides = [1, 1]} : vector<4x384xf32> to vector<4x128xf32>
      %586 = vector.extract_strided_slice %576 {offsets = [0, 128], sizes = [4, 128], strides = [1, 1]} : vector<4x384xf32> to vector<4x128xf32>
      %587 = arith.addf %585, %586 : vector<4x128xf32>
      %588 = arith.negf %587 : vector<4x128xf32>
      %589 = math.exp %588 : vector<4x128xf32>
      %cst_202 = arith.constant 1.000000e+00 : f32
      %590 = vector.broadcast %cst_202 : f32 to vector<4x128xf32>
      %591 = arith.addf %590, %589 : vector<4x128xf32>
      %592 = arith.divf %590, %591 : vector<4x128xf32>
      %593 = vector.extract_strided_slice %571 {offsets = [0, 256], sizes = [4, 128], strides = [1, 1]} : vector<4x384xf32> to vector<4x128xf32>
      %594 = vector.extract_strided_slice %576 {offsets = [0, 256], sizes = [4, 128], strides = [1, 1]} : vector<4x384xf32> to vector<4x128xf32>
      %595 = arith.mulf %584, %594 : vector<4x128xf32>
      %596 = arith.addf %593, %595 : vector<4x128xf32>
      %597 = math.tanh %596 : vector<4x128xf32>
      %cst_203 = arith.constant 1.000000e+00 : f32
      %598 = vector.broadcast %cst_203 : f32 to vector<4x128xf32>
      %599 = arith.subf %598, %592 : vector<4x128xf32>
      %600 = arith.mulf %599, %597 : vector<4x128xf32>
      %601 = arith.mulf %592, %516 : vector<4x128xf32>
      %602 = arith.addf %600, %601 : vector<4x128xf32>
      %603 = arith.subf %602, %516 : vector<4x128xf32>
      %604 = vector.broadcast %564 : vector<4x1xf32> to vector<4x128xf32>
      %605 = arith.mulf %604, %603 : vector<4x128xf32>
      %606 = arith.addf %516, %605 : vector<4x128xf32>
      %c0_204 = arith.constant 0 : index
      %c0_205 = arith.constant 0 : index
      %607 = vector.load %arg10[%c0_204, %c0_205] : memref<128x384xf32, #tpu.memory_space<vmem>>, vector<128x384xf32>
      %cst_206 = arith.constant dense<0.000000e+00> : vector<4x384xf32>
      %608 = tpu.matmul %606, %607, %cst_206 {dimension_numbers = #tpu.dot_dimension_numbers<[1], [0], [0], [1], [0, 0, 1, 1], [], []>} : vector<4x128xf32>, vector<128x384xf32>, vector<4x384xf32> -> vector<4x384xf32>
      %c0_207 = arith.constant 0 : index
      %c0_208 = arith.constant 0 : index
      %609 = vector.load %arg11[%c0_207, %c0_208] : memref<1x384xf32, #tpu.memory_space<vmem>>, vector<1x384xf32>
      %610 = vector.broadcast %609 : vector<1x384xf32> to vector<4x384xf32>
      %611 = arith.addf %608, %610 : vector<4x384xf32>
      %c0_209 = arith.constant 0 : index
      %c0_210 = arith.constant 0 : index
      %612 = vector.load %arg12[%c0_209, %c0_210] : memref<128x384xf32, #tpu.memory_space<vmem>>, vector<128x384xf32>
      %cst_211 = arith.constant dense<0.000000e+00> : vector<4x384xf32>
      %613 = tpu.matmul %556, %612, %cst_211 {dimension_numbers = #tpu.dot_dimension_numbers<[1], [0], [0], [1], [0, 0, 1, 1], [], []>} : vector<4x128xf32>, vector<128x384xf32>, vector<4x384xf32> -> vector<4x384xf32>
      %c0_212 = arith.constant 0 : index
      %c0_213 = arith.constant 0 : index
      %614 = vector.load %arg13[%c0_212, %c0_213] : memref<1x384xf32, #tpu.memory_space<vmem>>, vector<1x384xf32>
      %615 = vector.broadcast %614 : vector<1x384xf32> to vector<4x384xf32>
      %616 = arith.addf %613, %615 : vector<4x384xf32>
      %617 = vector.extract_strided_slice %611 {offsets = [0, 0], sizes = [4, 128], strides = [1, 1]} : vector<4x384xf32> to vector<4x128xf32>
      %618 = vector.extract_strided_slice %616 {offsets = [0, 0], sizes = [4, 128], strides = [1, 1]} : vector<4x384xf32> to vector<4x128xf32>
      %619 = arith.addf %617, %618 : vector<4x128xf32>
      %620 = arith.negf %619 : vector<4x128xf32>
      %621 = math.exp %620 : vector<4x128xf32>
      %cst_214 = arith.constant 1.000000e+00 : f32
      %622 = vector.broadcast %cst_214 : f32 to vector<4x128xf32>
      %623 = arith.addf %622, %621 : vector<4x128xf32>
      %624 = arith.divf %622, %623 : vector<4x128xf32>
      %625 = vector.extract_strided_slice %611 {offsets = [0, 128], sizes = [4, 128], strides = [1, 1]} : vector<4x384xf32> to vector<4x128xf32>
      %626 = vector.extract_strided_slice %616 {offsets = [0, 128], sizes = [4, 128], strides = [1, 1]} : vector<4x384xf32> to vector<4x128xf32>
      %627 = arith.addf %625, %626 : vector<4x128xf32>
      %628 = arith.negf %627 : vector<4x128xf32>
      %629 = math.exp %628 : vector<4x128xf32>
      %cst_215 = arith.constant 1.000000e+00 : f32
      %630 = vector.broadcast %cst_215 : f32 to vector<4x128xf32>
      %631 = arith.addf %630, %629 : vector<4x128xf32>
      %632 = arith.divf %630, %631 : vector<4x128xf32>
      %633 = vector.extract_strided_slice %611 {offsets = [0, 256], sizes = [4, 128], strides = [1, 1]} : vector<4x384xf32> to vector<4x128xf32>
      %634 = vector.extract_strided_slice %616 {offsets = [0, 256], sizes = [4, 128], strides = [1, 1]} : vector<4x384xf32> to vector<4x128xf32>
      %635 = arith.mulf %624, %634 : vector<4x128xf32>
      %636 = arith.addf %633, %635 : vector<4x128xf32>
      %637 = math.tanh %636 : vector<4x128xf32>
      %cst_216 = arith.constant 1.000000e+00 : f32
      %638 = vector.broadcast %cst_216 : f32 to vector<4x128xf32>
      %639 = arith.subf %638, %632 : vector<4x128xf32>
      %640 = arith.mulf %639, %637 : vector<4x128xf32>
      %641 = arith.mulf %632, %556 : vector<4x128xf32>
      %642 = arith.addf %640, %641 : vector<4x128xf32>
      %643 = arith.subf %642, %556 : vector<4x128xf32>
      %644 = vector.broadcast %564 : vector<4x1xf32> to vector<4x128xf32>
      %645 = arith.mulf %644, %643 : vector<4x128xf32>
      %646 = arith.addf %556, %645 : vector<4x128xf32>
      %647 = vector.broadcast %564 : vector<4x1xf32> to vector<4x128xf32>
      %648 = arith.mulf %646, %647 : vector<4x128xf32>
      %c8_i32_217 = arith.constant 8 : i32
      %649 = arith.muli %arg1, %c8_i32_217 : i32
      %c7_i32 = arith.constant 7 : i32
      %650 = arith.addi %649, %c7_i32 : i32
      %651 = vector.broadcast %650 : i32 to vector<4x1xi32>
      %652 = arith.cmpi slt, %651, %14 : vector<4x1xi32>
      %653 = arith.extui %652 : vector<4x1xi1> to vector<4x1xi32>
      %654 = arith.sitofp %653 : vector<4x1xi32> to vector<4x1xf32>
      %c0_218 = arith.constant 0 : index
      %c7 = arith.constant 7 : index
      %c0_219 = arith.constant 0 : index
      %655 = vector.load %arg3[%c0_218, %c7, %c0_219] : memref<4x8x32xf32, #tpu.memory_space<vmem>>, vector<4x1x32xf32>
      %656 = vector.shape_cast %655 : vector<4x1x32xf32> to vector<4x32xf32>
      %c0_220 = arith.constant 0 : index
      %c0_221 = arith.constant 0 : index
      %657 = vector.load %arg6[%c0_220, %c0_221] : memref<32x384xf32, #tpu.memory_space<vmem>>, vector<32x384xf32>
      %cst_222 = arith.constant dense<0.000000e+00> : vector<4x384xf32>
      %658 = tpu.matmul %656, %657, %cst_222 {dimension_numbers = #tpu.dot_dimension_numbers<[1], [0], [0], [1], [0, 0, 1, 1], [], []>} : vector<4x32xf32>, vector<32x384xf32>, vector<4x384xf32> -> vector<4x384xf32>
      %c0_223 = arith.constant 0 : index
      %c0_224 = arith.constant 0 : index
      %659 = vector.load %arg7[%c0_223, %c0_224] : memref<1x384xf32, #tpu.memory_space<vmem>>, vector<1x384xf32>
      %660 = vector.broadcast %659 : vector<1x384xf32> to vector<4x384xf32>
      %661 = arith.addf %658, %660 : vector<4x384xf32>
      %c0_225 = arith.constant 0 : index
      %c0_226 = arith.constant 0 : index
      %662 = vector.load %arg8[%c0_225, %c0_226] : memref<128x384xf32, #tpu.memory_space<vmem>>, vector<128x384xf32>
      %cst_227 = arith.constant dense<0.000000e+00> : vector<4x384xf32>
      %663 = tpu.matmul %606, %662, %cst_227 {dimension_numbers = #tpu.dot_dimension_numbers<[1], [0], [0], [1], [0, 0, 1, 1], [], []>} : vector<4x128xf32>, vector<128x384xf32>, vector<4x384xf32> -> vector<4x384xf32>
      %c0_228 = arith.constant 0 : index
      %c0_229 = arith.constant 0 : index
      %664 = vector.load %arg9[%c0_228, %c0_229] : memref<1x384xf32, #tpu.memory_space<vmem>>, vector<1x384xf32>
      %665 = vector.broadcast %664 : vector<1x384xf32> to vector<4x384xf32>
      %666 = arith.addf %663, %665 : vector<4x384xf32>
      %667 = vector.extract_strided_slice %661 {offsets = [0, 0], sizes = [4, 128], strides = [1, 1]} : vector<4x384xf32> to vector<4x128xf32>
      %668 = vector.extract_strided_slice %666 {offsets = [0, 0], sizes = [4, 128], strides = [1, 1]} : vector<4x384xf32> to vector<4x128xf32>
      %669 = arith.addf %667, %668 : vector<4x128xf32>
      %670 = arith.negf %669 : vector<4x128xf32>
      %671 = math.exp %670 : vector<4x128xf32>
      %cst_230 = arith.constant 1.000000e+00 : f32
      %672 = vector.broadcast %cst_230 : f32 to vector<4x128xf32>
      %673 = arith.addf %672, %671 : vector<4x128xf32>
      %674 = arith.divf %672, %673 : vector<4x128xf32>
      %675 = vector.extract_strided_slice %661 {offsets = [0, 128], sizes = [4, 128], strides = [1, 1]} : vector<4x384xf32> to vector<4x128xf32>
      %676 = vector.extract_strided_slice %666 {offsets = [0, 128], sizes = [4, 128], strides = [1, 1]} : vector<4x384xf32> to vector<4x128xf32>
      %677 = arith.addf %675, %676 : vector<4x128xf32>
      %678 = arith.negf %677 : vector<4x128xf32>
      %679 = math.exp %678 : vector<4x128xf32>
      %cst_231 = arith.constant 1.000000e+00 : f32
      %680 = vector.broadcast %cst_231 : f32 to vector<4x128xf32>
      %681 = arith.addf %680, %679 : vector<4x128xf32>
      %682 = arith.divf %680, %681 : vector<4x128xf32>
      %683 = vector.extract_strided_slice %661 {offsets = [0, 256], sizes = [4, 128], strides = [1, 1]} : vector<4x384xf32> to vector<4x128xf32>
      %684 = vector.extract_strided_slice %666 {offsets = [0, 256], sizes = [4, 128], strides = [1, 1]} : vector<4x384xf32> to vector<4x128xf32>
      %685 = arith.mulf %674, %684 : vector<4x128xf32>
      %686 = arith.addf %683, %685 : vector<4x128xf32>
      %687 = math.tanh %686 : vector<4x128xf32>
      %cst_232 = arith.constant 1.000000e+00 : f32
      %688 = vector.broadcast %cst_232 : f32 to vector<4x128xf32>
      %689 = arith.subf %688, %682 : vector<4x128xf32>
      %690 = arith.mulf %689, %687 : vector<4x128xf32>
      %691 = arith.mulf %682, %606 : vector<4x128xf32>
      %692 = arith.addf %690, %691 : vector<4x128xf32>
      %693 = arith.subf %692, %606 : vector<4x128xf32>
      %694 = vector.broadcast %654 : vector<4x1xf32> to vector<4x128xf32>
      %695 = arith.mulf %694, %693 : vector<4x128xf32>
      %696 = arith.addf %606, %695 : vector<4x128xf32>
      %c0_233 = arith.constant 0 : index
      %c0_234 = arith.constant 0 : index
      %697 = vector.load %arg10[%c0_233, %c0_234] : memref<128x384xf32, #tpu.memory_space<vmem>>, vector<128x384xf32>
      %cst_235 = arith.constant dense<0.000000e+00> : vector<4x384xf32>
      %698 = tpu.matmul %696, %697, %cst_235 {dimension_numbers = #tpu.dot_dimension_numbers<[1], [0], [0], [1], [0, 0, 1, 1], [], []>} : vector<4x128xf32>, vector<128x384xf32>, vector<4x384xf32> -> vector<4x384xf32>
      %c0_236 = arith.constant 0 : index
      %c0_237 = arith.constant 0 : index
      %699 = vector.load %arg11[%c0_236, %c0_237] : memref<1x384xf32, #tpu.memory_space<vmem>>, vector<1x384xf32>
      %700 = vector.broadcast %699 : vector<1x384xf32> to vector<4x384xf32>
      %701 = arith.addf %698, %700 : vector<4x384xf32>
      %c0_238 = arith.constant 0 : index
      %c0_239 = arith.constant 0 : index
      %702 = vector.load %arg12[%c0_238, %c0_239] : memref<128x384xf32, #tpu.memory_space<vmem>>, vector<128x384xf32>
      %cst_240 = arith.constant dense<0.000000e+00> : vector<4x384xf32>
      %703 = tpu.matmul %646, %702, %cst_240 {dimension_numbers = #tpu.dot_dimension_numbers<[1], [0], [0], [1], [0, 0, 1, 1], [], []>} : vector<4x128xf32>, vector<128x384xf32>, vector<4x384xf32> -> vector<4x384xf32>
      %c0_241 = arith.constant 0 : index
      %c0_242 = arith.constant 0 : index
      %704 = vector.load %arg13[%c0_241, %c0_242] : memref<1x384xf32, #tpu.memory_space<vmem>>, vector<1x384xf32>
      %705 = vector.broadcast %704 : vector<1x384xf32> to vector<4x384xf32>
      %706 = arith.addf %703, %705 : vector<4x384xf32>
      %707 = vector.extract_strided_slice %701 {offsets = [0, 0], sizes = [4, 128], strides = [1, 1]} : vector<4x384xf32> to vector<4x128xf32>
      %708 = vector.extract_strided_slice %706 {offsets = [0, 0], sizes = [4, 128], strides = [1, 1]} : vector<4x384xf32> to vector<4x128xf32>
      %709 = arith.addf %707, %708 : vector<4x128xf32>
      %710 = arith.negf %709 : vector<4x128xf32>
      %711 = math.exp %710 : vector<4x128xf32>
      %cst_243 = arith.constant 1.000000e+00 : f32
      %712 = vector.broadcast %cst_243 : f32 to vector<4x128xf32>
      %713 = arith.addf %712, %711 : vector<4x128xf32>
      %714 = arith.divf %712, %713 : vector<4x128xf32>
      %715 = vector.extract_strided_slice %701 {offsets = [0, 128], sizes = [4, 128], strides = [1, 1]} : vector<4x384xf32> to vector<4x128xf32>
      %716 = vector.extract_strided_slice %706 {offsets = [0, 128], sizes = [4, 128], strides = [1, 1]} : vector<4x384xf32> to vector<4x128xf32>
      %717 = arith.addf %715, %716 : vector<4x128xf32>
      %718 = arith.negf %717 : vector<4x128xf32>
      %719 = math.exp %718 : vector<4x128xf32>
      %cst_244 = arith.constant 1.000000e+00 : f32
      %720 = vector.broadcast %cst_244 : f32 to vector<4x128xf32>
      %721 = arith.addf %720, %719 : vector<4x128xf32>
      %722 = arith.divf %720, %721 : vector<4x128xf32>
      %723 = vector.extract_strided_slice %701 {offsets = [0, 256], sizes = [4, 128], strides = [1, 1]} : vector<4x384xf32> to vector<4x128xf32>
      %724 = vector.extract_strided_slice %706 {offsets = [0, 256], sizes = [4, 128], strides = [1, 1]} : vector<4x384xf32> to vector<4x128xf32>
      %725 = arith.mulf %714, %724 : vector<4x128xf32>
      %726 = arith.addf %723, %725 : vector<4x128xf32>
      %727 = math.tanh %726 : vector<4x128xf32>
      %cst_245 = arith.constant 1.000000e+00 : f32
      %728 = vector.broadcast %cst_245 : f32 to vector<4x128xf32>
      %729 = arith.subf %728, %722 : vector<4x128xf32>
      %730 = arith.mulf %729, %727 : vector<4x128xf32>
      %731 = arith.mulf %722, %646 : vector<4x128xf32>
      %732 = arith.addf %730, %731 : vector<4x128xf32>
      %733 = arith.subf %732, %646 : vector<4x128xf32>
      %734 = vector.broadcast %654 : vector<4x1xf32> to vector<4x128xf32>
      %735 = arith.mulf %734, %733 : vector<4x128xf32>
      %736 = arith.addf %646, %735 : vector<4x128xf32>
      %737 = vector.broadcast %654 : vector<4x1xf32> to vector<4x128xf32>
      %738 = arith.mulf %736, %737 : vector<4x128xf32>
      %c0_246 = arith.constant 0 : index
      %c0_247 = arith.constant 0 : index
      %c0_248 = arith.constant 0 : index
      %739 = vector.load %arg16[%c0_246, %c0_247, %c0_248] : memref<2x4x128xf32, #tpu.memory_space<vmem>>, vector<1x4x128xf32>
      %740 = vector.shape_cast %739 : vector<1x4x128xf32> to vector<4x128xf32>
      %741 = vector.shape_cast %696 : vector<4x128xf32> to vector<1x4x128xf32>
      tpu.vector_store %arg16[%c0_246, %c0_247, %c0_248], %741 {strides = array<i32>} : memref<2x4x128xf32, #tpu.memory_space<vmem>>, vector<1x4x128xf32>,
      %c1_249 = arith.constant 1 : index
      %c0_250 = arith.constant 0 : index
      %c0_251 = arith.constant 0 : index
      %742 = vector.load %arg16[%c1_249, %c0_250, %c0_251] : memref<2x4x128xf32, #tpu.memory_space<vmem>>, vector<1x4x128xf32>
      %743 = vector.shape_cast %742 : vector<1x4x128xf32> to vector<4x128xf32>
      %744 = vector.shape_cast %736 : vector<4x128xf32> to vector<1x4x128xf32>
      tpu.vector_store %arg16[%c1_249, %c0_250, %c0_251], %744 {strides = array<i32>} : memref<2x4x128xf32, #tpu.memory_space<vmem>>, vector<1x4x128xf32>,
      %745 = vector.shape_cast %108 : vector<4x128xf32> to vector<4x1x128xf32>
      %746 = vector.shape_cast %198 : vector<4x128xf32> to vector<4x1x128xf32>
      %747 = vector.shape_cast %288 : vector<4x128xf32> to vector<4x1x128xf32>
      %748 = vector.shape_cast %378 : vector<4x128xf32> to vector<4x1x128xf32>
      %749 = vector.shape_cast %468 : vector<4x128xf32> to vector<4x1x128xf32>
      %750 = vector.shape_cast %558 : vector<4x128xf32> to vector<4x1x128xf32>
      %751 = vector.shape_cast %648 : vector<4x128xf32> to vector<4x1x128xf32>
      %752 = vector.shape_cast %738 : vector<4x128xf32> to vector<4x1x128xf32>
      %753 = tpu.concatenate %745, %746, %747, %748, %749, %750, %751, %752 in 1 : vector<4x1x128xf32>, vector<4x1x128xf32>, vector<4x1x128xf32>, vector<4x1x128xf32>, vector<4x1x128xf32>, vector<4x1x128xf32>, vector<4x1x128xf32>, vector<4x1x128xf32> -> vector<4x8x128xf32>
      %c0_252 = arith.constant 0 : index
      %c0_253 = arith.constant 0 : index
      %c0_254 = arith.constant 0 : index
      %754 = vector.load %arg14[%c0_252, %c0_253, %c0_254] : memref<4x8x128xf32, #tpu.memory_space<vmem>>, vector<4x8x128xf32>
      tpu.vector_store %arg14[%c0_252, %c0_253, %c0_254], %753 {strides = array<i32>} : memref<4x8x128xf32, #tpu.memory_space<vmem>>, vector<4x8x128xf32>,
    } else {
    }
    %true = arith.constant true
    %8 = arith.xori %5, %true : i1
    %9 = arith.extui %8 : i1 to i32
    %c0_i32_2 = arith.constant 0 : i32
    %10 = arith.cmpi ne, %9, %c0_i32_2 : i32
    scf.if %10 {
      %cst = arith.constant 0.000000e+00 : f32
      %14 = vector.broadcast %cst : f32 to vector<4x8x128xf32>
      %c0_4 = arith.constant 0 : index
      %c0_5 = arith.constant 0 : index
      %c0_6 = arith.constant 0 : index
      %15 = vector.load %arg14[%c0_4, %c0_5, %c0_6] : memref<4x8x128xf32, #tpu.memory_space<vmem>>, vector<4x8x128xf32>
      tpu.vector_store %arg14[%c0_4, %c0_5, %c0_6], %14 {strides = array<i32>} : memref<4x8x128xf32, #tpu.memory_space<vmem>>, vector<4x8x128xf32>,
    } else {
    }
    %c1_i32 = arith.constant 1 : i32
    %11 = arith.cmpi eq, %arg1, %c1_i32 : i32
    %12 = arith.extui %11 : i1 to i32
    %c0_i32_3 = arith.constant 0 : i32
    %13 = arith.cmpi ne, %12, %c0_i32_3 : i32
    scf.if %13 {
      %c0_4 = arith.constant 0 : index
      %c0_5 = arith.constant 0 : index
      %c0_6 = arith.constant 0 : index
      %14 = vector.load %arg16[%c0_4, %c0_5, %c0_6] : memref<2x4x128xf32, #tpu.memory_space<vmem>>, vector<2x4x128xf32>
      %c0_7 = arith.constant 0 : index
      %c0_8 = arith.constant 0 : index
      %c0_9 = arith.constant 0 : index
      %15 = vector.load %arg15[%c0_7, %c0_8, %c0_9] : memref<2x4x128xf32, #tpu.memory_space<vmem>>, vector<2x4x128xf32>
      tpu.vector_store %arg15[%c0_7, %c0_8, %c0_9], %14 {strides = array<i32>} : memref<2x4x128xf32, #tpu.memory_space<vmem>>, vector<2x4x128xf32>,
    } else {
    }
    return
  }
  func.func @transform_0(%arg0: i32, %arg1: i32, %arg2: memref<1xi32, #tpu.memory_space<smem>>) -> (i32, i32, i32) {
    %c0_i32 = arith.constant 0 : i32
    %c0_i32_0 = arith.constant 0 : i32
    return %arg0, %arg1, %c0_i32 : i32, i32, i32
  }
  func.func @transform_1(%arg0: i32, %arg1: i32, %arg2: memref<1xi32, #tpu.memory_space<smem>>) -> (i32, i32, i32) {
    %c0_i32 = arith.constant 0 : i32
    %c0_i32_0 = arith.constant 0 : i32
    %c0_i32_1 = arith.constant 0 : i32
    return %c0_i32, %arg0, %c0_i32_0 : i32, i32, i32
  }
  func.func @transform_2(%arg0: i32, %arg1: i32, %arg2: memref<1xi32, #tpu.memory_space<smem>>) -> (i32, i32) {
    %c0_i32 = arith.constant 0 : i32
    %c0_i32_0 = arith.constant 0 : i32
    return %arg0, %c0_i32 : i32, i32
  }
  func.func @transform_3(%arg0: i32, %arg1: i32, %arg2: memref<1xi32, #tpu.memory_space<smem>>) -> (i32, i32) {
    %c0_i32 = arith.constant 0 : i32
    %c0_i32_0 = arith.constant 0 : i32
    %c0_i32_1 = arith.constant 0 : i32
    return %c0_i32, %c0_i32_0 : i32, i32
  }
  func.func @transform_4(%arg0: i32, %arg1: i32, %arg2: memref<1xi32, #tpu.memory_space<smem>>) -> (i32, i32) {
    %c0_i32 = arith.constant 0 : i32
    %c0_i32_0 = arith.constant 0 : i32
    %c0_i32_1 = arith.constant 0 : i32
    return %c0_i32, %c0_i32_0 : i32, i32
  }
  func.func @transform_5(%arg0: i32, %arg1: i32, %arg2: memref<1xi32, #tpu.memory_space<smem>>) -> (i32, i32) {
    %c0_i32 = arith.constant 0 : i32
    %c0_i32_0 = arith.constant 0 : i32
    %c0_i32_1 = arith.constant 0 : i32
    return %c0_i32, %c0_i32_0 : i32, i32
  }
  func.func @transform_6(%arg0: i32, %arg1: i32, %arg2: memref<1xi32, #tpu.memory_space<smem>>) -> (i32, i32) {
    %c0_i32 = arith.constant 0 : i32
    %c0_i32_0 = arith.constant 0 : i32
    %c0_i32_1 = arith.constant 0 : i32
    return %c0_i32, %c0_i32_0 : i32, i32
  }
  func.func @transform_7(%arg0: i32, %arg1: i32, %arg2: memref<1xi32, #tpu.memory_space<smem>>) -> (i32, i32) {
    %c0_i32 = arith.constant 0 : i32
    %c0_i32_0 = arith.constant 0 : i32
    %c0_i32_1 = arith.constant 0 : i32
    return %c0_i32, %c0_i32_0 : i32, i32
  }
  func.func @transform_8(%arg0: i32, %arg1: i32, %arg2: memref<1xi32, #tpu.memory_space<smem>>) -> (i32, i32) {
    %c0_i32 = arith.constant 0 : i32
    %c0_i32_0 = arith.constant 0 : i32
    %c0_i32_1 = arith.constant 0 : i32
    return %c0_i32, %c0_i32_0 : i32, i32
  }
  func.func @transform_9(%arg0: i32, %arg1: i32, %arg2: memref<1xi32, #tpu.memory_space<smem>>) -> (i32, i32) {
    %c0_i32 = arith.constant 0 : i32
    %c0_i32_0 = arith.constant 0 : i32
    %c0_i32_1 = arith.constant 0 : i32
    return %c0_i32, %c0_i32_0 : i32, i32
  }
  func.func @transform_10(%arg0: i32, %arg1: i32, %arg2: memref<1xi32, #tpu.memory_space<smem>>) -> (i32, i32) {
    %c0_i32 = arith.constant 0 : i32
    %c0_i32_0 = arith.constant 0 : i32
    %c0_i32_1 = arith.constant 0 : i32
    return %c0_i32, %c0_i32_0 : i32, i32
  }
  func.func @transform_11(%arg0: i32, %arg1: i32, %arg2: memref<1xi32, #tpu.memory_space<smem>>) -> (i32, i32, i32) {
    %c0_i32 = arith.constant 0 : i32
    %c0_i32_0 = arith.constant 0 : i32
    return %arg0, %arg1, %c0_i32 : i32, i32, i32
  }
  func.func @transform_12(%arg0: i32, %arg1: i32, %arg2: memref<1xi32, #tpu.memory_space<smem>>) -> (i32, i32, i32) {
    %c0_i32 = arith.constant 0 : i32
    %c0_i32_0 = arith.constant 0 : i32
    %c0_i32_1 = arith.constant 0 : i32
    return %c0_i32, %arg0, %c0_i32_0 : i32, i32, i32
  }
}

</mosaic_0001>

<bundles_post_ra>
// kernel: lstm_lm_decoder_forward.3
= control target key start
LH: loop header
LB: loop body
LE: loop exit
PB: predicated region body
PF: predicated region fallthrough
CT: control target
= control target key end

     0   :  { %s848_s12 = smov 0   ;;  %s850_s13 = smov 0   ;;  %s1007_s0 = inlined_call_operand.vmem [shape: f32[64,128], index: 0, kind: input, shape index: {}]   ;;  %s1008_s1 = inlined_call_operand.vmem [shape: f32[128,384], index: 1, kind: input, shape index: {}]   ;;  %s1009_s2 = inlined_call_operand.vmem [shape: f32[1,384], index: 2, kind: input, shape index: {}]   ;;  %s1010_s3 = inlined_call_operand.vmem [shape: f32[64,384], index: 3, kind: output, shape index: {}]  }
   0x1   :  { %s852_s14 = smov 0   ;;  %s854_s15 = smov 0  }
   0x2   :  { %s856_s16 = smov 0  }
   0x3 LB: > { %s25_s17 = sadd.s32 1, %s822_s15  ;;  %s617_s18 = sadd.s32 4294967295, %s826_s16   ;;  %s826_s16 = sphi %s856_s16, %s13_s16   ;;  %s822_s15 = sphi %s854_s15, %s1015_s15   ;;  %s818_s14 = sphi %s852_s14, %s1014_s14   ;;  %s814_s13 = sphi %s850_s13, %s1013_s13   ;;  %s810_s12 = sphi %s848_s12, %s1012_s12  }
   0x4   : > { %p27_p0 = scmp.ge.s32.totalorder %s25_s17, 3  ;;  %p65_p1 = scmp.ne.s32.totalorder %s814_s13, %s810_s12 }
   0x5   : > { %p66_p2 = scmp.eq.s32.totalorder %s826_s16, 0  ;;  %p123_p4 = scmp.eq.s32.totalorder %s617_s18, 2 }
   0x6   : > { %s1017_s17 = smov (%p27_p0, %s25_s17), 0  ;;  %s58_s20 = sadd.s32 1, %s814_s13 }
   0x7   : > { %p67_p3 = por %p66_p2, %p65_p1  ;;  %s55_s19 = ssub.s32 %s822_s15, %s1017_s17 }
   0x8   : > { %p56_p5 = scmp.eq.s32.totalorder %s55_s19, 0  ;;  %p883_p6 = por %p123_p4, %p65_p1 }
   0x9   : > { %p621_p7 = scmp.ge.s32.totalorder %s826_s16, 3 }
   0xa   : > { %s888_s22 = scalar_select %p56_p5, %s814_s13, %s58_s20  }
   0xb   : > { %154 = sbr.rel (%p621_p7) target bundleno = 30 (0x1e), region = 20 }
  0x12   : > { %157 = sbr.rel (!%p67_p3) target bundleno = 30 (0x1e), region = 24  ;;  %s159_s23 = sand.u32 (%p67_p3), 1, %s814_s13  }
  0x13   : > { %s623_s24 = sshll.u32 (%p67_p3), %s822_s15, 3  ;;  %s622_s25 = sshll.u32 (%p67_p3), %s159_s23, 7 }
  0x14   : > { %s896_s28 = scalar_lea.vmem (%p67_p3), %s1008_s1, %s623_s24  ;;  %s161_s29 = scalar_lea.vmem (%p67_p3), [#allocation2], %s622_s25 }
  0x15   : > { %v221_v0 = vld [vmem:[%s896_s28] sm:$0xff] (%p67_p3)  ;;  %v223_v1 = vld [vmem:[%s896_s28 + $0x18] sm:$0xff] (%p67_p3)  ;;  %v225_v2 = vld [vmem:[%s896_s28 + $0x30] sm:$0xff] (%p67_p3) }
  0x16   : > { %222 = vst [vmem:[%s161_s29] sm:$0xff] (%p67_p3), %v221_v0  ;;  %224 = vst [vmem:[%s161_s29 + $0x8] sm:$0xff] (%p67_p3), %v223_v1  ;;  %v227_v3 = vld [vmem:[%s896_s28 + $0x48] sm:$0xff] (%p67_p3)  ;;  %v229_v4 = vld [vmem:[%s896_s28 + $0x60] sm:$0xff] (%p67_p3) }
  0x17   : > { %226 = vst [vmem:[%s161_s29 + $0x10] sm:$0xff] (%p67_p3), %v225_v2  ;;  %v231_v5 = vld [vmem:[%s896_s28 + $0x78] sm:$0xff] (%p67_p3)  ;;  %228 = vst [vmem:[%s161_s29 + $0x18] sm:$0xff] (%p67_p3), %v227_v3  ;;  %v233_v6 = vld [vmem:[%s896_s28 + $0x90] sm:$0xff] (%p67_p3) }
  0x18   : > { %230 = vst [vmem:[%s161_s29 + $0x20] sm:$0xff] (%p67_p3), %v229_v4  ;;  %232 = vst [vmem:[%s161_s29 + $0x28] sm:$0xff] (%p67_p3), %v231_v5  ;;  %v235_v7 = vld [vmem:[%s896_s28 + $0xa8] sm:$0xff] (%p67_p3)  ;;  %v237_v8 = vld [vmem:[%s896_s28 + $0xc0] sm:$0xff] (%p67_p3) }
  0x19   : > { %234 = vst [vmem:[%s161_s29 + $0x30] sm:$0xff] %v233_v6  ;;  %236 = vst [vmem:[%s161_s29 + $0x38] sm:$0xff] %v235_v7  ;;  %v239_v9 = vld [vmem:[%s896_s28 + $0xd8] sm:$0xff]  ;;  %v241_v10 = vld [vmem:[%s896_s28 + $0xf0] sm:$0xff] }
  0x1a   : > { %238 = vst [vmem:[%s161_s29 + $0x40] sm:$0xff] %v237_v8  ;;  %v243_v11 = vld [vmem:[%s896_s28 + $0x108] sm:$0xff]  ;;  %240 = vst [vmem:[%s161_s29 + $0x48] sm:$0xff] %v239_v9  ;;  %v245_v12 = vld [vmem:[%s896_s28 + $0x120] sm:$0xff] }
  0x1b   : > { %242 = vst [vmem:[%s161_s29 + $0x50] sm:$0xff] %v241_v10  ;;  %244 = vst [vmem:[%s161_s29 + $0x58] sm:$0xff] %v243_v11  ;;  %v247_v13 = vld [vmem:[%s896_s28 + $0x138] sm:$0xff]  ;;  %v249_v14 = vld [vmem:[%s896_s28 + $0x150] sm:$0xff] }
  0x1c   : > { %246 = vst [vmem:[%s161_s29 + $0x60] sm:$0xff] %v245_v12  ;;  %248 = vst [vmem:[%s161_s29 + $0x68] sm:$0xff] %v247_v13  ;;  %v251_v15 = vld [vmem:[%s896_s28 + $0x168] sm:$0xff] }
  0x1d   : > { %250 = vst [vmem:[%s161_s29 + $0x70] sm:$0xff] %v249_v14  ;;  %252 = vst [vmem:[%s161_s29 + $0x78] sm:$0xff] %v251_v15 }
  0x1e PF: > { %p624_p8 = scmp.ge.s32.totalorder %s826_s16, 1  ;;  %p263_p9 = scmp.lt.s32.totalorder %s826_s16, 4 }
  0x20   : > { %p264_p10 = pnand %p624_p8, %p263_p9 }
  0x21   : > { %s270_s30 = sand.u32 (!%p264_p10), 1, %s810_s12   ;;  %v310_v16 = vld [vmem:[%s1007_s0] sm:$0xff] (!%p264_p10)  ;;  %v311_v42 = vld [vmem:[%s1007_s0 + $0x8] sm:$0xff] (!%p264_p10)  ;;  %v312_v44 = vld [vmem:[%s1007_s0 + $0x10] sm:$0xff] (!%p264_p10)  ;;  %p306_p11 = scmp.lt.s32.totalorder (!%p264_p10), %s818_s14, 2 }
  0x22   : > { %267 = sbr.rel (%p264_p10) target bundleno = 300 (0x12c), region = 66  ;;  %v314_v17 = vld [vmem:[%s1007_s0 + $0x20] sm:$0xff] (!%p264_p10)  ;;  %s625_s8 = sshll.u32 (!%p264_p10), %s270_s30, 7  ;;  %688 = vmatprep.mubr.f32.mxu0 (!%p264_p10), %v310_v16  ;;  %v315_v43 = vld [vmem:[%s1007_s0 + $0x28] sm:$0xff] (!%p264_p10)  ;;  %v316_v45 = vld [vmem:[%s1007_s0 + $0x30] sm:$0xff] (!%p264_p10) }
  0x23   : > { %694 = vmatprep.mubr.f32.mxu1 (!%p264_p10), %v314_v17  ;;  %s925_s9 = scalar_lea.vmem (!%p264_p10), [#allocation2], %s625_s8  ;;  %v313_v46 = vld [vmem:[%s1007_s0 + $0x18] sm:$0xff] (!%p264_p10)  ;;  %s626_s8 = sshll.u32 (!%p264_p10), %s270_s30, 6 }
  0x24   : > { %v318_v18 = vld [vmem:[%s925_s9] sm:$0xff] (!%p264_p10)  ;;  %v319_v19 = vld [vmem:[%s925_s9 + $0x8] sm:$0xff] (!%p264_p10)  ;;  %v320_v20 = vld [vmem:[%s925_s9 + $0x10] sm:$0xff] (!%p264_p10) }
  0x25   : > { %v700_v21 = vpack.c.bf16 (!%p264_p10), %v319_v19, %v318_v18  ;;  %v321_v22 = vld [vmem:[%s925_s9 + $0x18] sm:$0xff] (!%p264_p10)  ;;  %v322_v24 = vld [vmem:[%s925_s9 + $0x20] sm:$0xff] (!%p264_p10)  ;;  %v323_v25 = vld [vmem:[%s925_s9 + $0x28] sm:$0xff] (!%p264_p10) }
  0x26   : > { %v704_v23 = vpack.c.bf16 (!%p264_p10), %v321_v22, %v320_v20  ;;  %v708_v26 = vpack.c.bf16 (!%p264_p10), %v323_v25, %v322_v24  ;;  %v324_v27 = vld [vmem:[%s925_s9 + $0x30] sm:$0xff] (!%p264_p10)  ;;  %v325_v28 = vld [vmem:[%s925_s9 + $0x38] sm:$0xff] (!%p264_p10)  ;;  %v326_v30 = vld [vmem:[%s925_s9 + $0x40] sm:$0xff] (!%p264_p10) }
  0x27   : > { %701 = vmatprep.subr.bf16.mxu0 (!%p264_p10), %v700_v21  ;;  %732 = vmatprep.subr.bf16.mxu1 (!%p264_p10), %v700_v21  ;;  %v712_v29 = vpack.c.bf16 (!%p264_p10), %v325_v28, %v324_v27  ;;  %v327_v31 = vld [vmem:[%s925_s9 + $0x48] sm:$0xff] (!%p264_p10)  ;;  %v328_v33 = vld [vmem:[%s925_s9 + $0x50] sm:$0xff] (!%p264_p10)  ;;  %v329_v34 = vld [vmem:[%s925_s9 + $0x58] sm:$0xff] (!%p264_p10) }
  0x28   : > { %703 = vmatpush3.bf16.msra.mxu0 (!%p264_p10), %v700_v21  ;;  %740 = vmatpush3.bf16.msra.mxu1 (!%p264_p10), %v700_v21  ;;  %v716_v32 = vpack.c.bf16 (!%p264_p10), %v327_v31, %v326_v30  ;;  %v720_v35 = vpack.c.bf16 (!%p264_p10), %v329_v34, %v328_v33  ;;  %v330_v36 = vld [vmem:[%s925_s9 + $0x60] sm:$0xff] (!%p264_p10)  ;;  %v331_v37 = vld [vmem:[%s925_s9 + $0x68] sm:$0xff] (!%p264_p10)  ;;  %v332_v39 = vld [vmem:[%s925_s9 + $0x70] sm:$0xff] (!%p264_p10) }
  0x29   : > { %705 = vmatprep.subr.bf16.mxu0 %v704_v23  ;;  %733 = vmatprep.subr.bf16.mxu1 %v704_v23  ;;  %v724_v38 = vpack.c.bf16 %v331_v37, %v330_v36  ;;  %v333_v40 = vld [vmem:[%s925_s9 + $0x78] sm:$0xff]  ;;  %s307_s4 = scalar_select %p306_p11, %s818_s14, 2 }
  0x2a   : > { %v728_v41 = vpack.c.bf16 %v333_v40, %v332_v39  ;;  %v317_v47 = vld [vmem:[%s1007_s0 + $0x38] sm:$0xff]  ;;  %s968_s9 = scalar_lea.vmem [#allocation3], %s626_s8  ;;  %s629_s12 = sshll.u32 (%p883_p6), %s818_s14, 3 }
  0x2b   : > { %s308_s7 = scalar_lea.vmem %s1009_s2, %s307_s4  ;;  %s465_s11 = scalar_lea.vmem (%p883_p6), %s1010_s3, %s629_s12 }
  0x2c   : > { %707 = vmatpush3.bf16.msra.mxu0 %v704_v23  ;;  %741 = vmatpush3.bf16.msra.mxu1 %v704_v23  ;;  %v627_v48 = vld [vmem:[%s308_s7] ss:$0 sm:$0xff] }
  0x2d   : > { %709 = vmatprep.subr.bf16.mxu0 %v708_v26  ;;  %734 = vmatprep.subr.bf16.mxu1 %v708_v26 }
  0x30   : > { %711 = vmatpush3.bf16.msra.mxu0 %v708_v26  ;;  %742 = vmatpush3.bf16.msra.mxu1 %v708_v26 }
  0x31   : > { %713 = vmatprep.subr.bf16.mxu0 %v712_v29  ;;  %735 = vmatprep.subr.bf16.mxu1 %v712_v29 }
  0x34   : > { %715 = vmatpush3.bf16.msra.mxu0 %v712_v29  ;;  %743 = vmatpush3.bf16.msra.mxu1 %v712_v29 }
  0x35   : > { %717 = vmatprep.subr.bf16.mxu0 %v716_v32  ;;  %736 = vmatprep.subr.bf16.mxu1 %v716_v32 }
  0x38   : > { %719 = vmatpush3.bf16.msra.mxu0 %v716_v32  ;;  %744 = vmatpush3.bf16.msra.mxu1 %v716_v32 }
  0x39   : > { %721 = vmatprep.subr.bf16.mxu0 %v720_v35  ;;  %737 = vmatprep.subr.bf16.mxu1 %v720_v35 }
  0x3c   : > { %723 = vmatpush3.bf16.msra.mxu0 %v720_v35  ;;  %745 = vmatpush3.bf16.msra.mxu1 %v720_v35 }
  0x3d   : > { %725 = vmatprep.subr.bf16.mxu0 %v724_v38  ;;  %738 = vmatprep.subr.bf16.mxu1 %v724_v38 }
  0x40   : > { %727 = vmatpush3.bf16.msra.mxu0 %v724_v38  ;;  %746 = vmatpush3.bf16.msra.mxu1 %v724_v38 }
  0x41   : > { %729 = vmatprep.subr.bf16.mxu0 %v728_v41  ;;  %739 = vmatprep.subr.bf16.mxu1 %v728_v41 }
  0x44   : > { %731 = vmatpush3.bf16.msra.mxu0 %v728_v41  ;;  %747 = vmatpush3.bf16.msra.mxu1 %v728_v41 }
  0x47   : > { %689 = vmatmul.mubr.f32.vlgmr.msra.gmra.mrb[0].mxu0 %v311_v42  ;;  %695 = vmatmul.mubr.f32.vlgmr.msra.gmra.mrb[0].mxu1 %v315_v43 }
  0x48   : > { %691 = vmatprep.mubr.f32.mxu0 %v312_v44  ;;  %697 = vmatprep.mubr.f32.mxu1 %v316_v45 }
  0x4b   : > { %692 = vmatmul.mubr.f32.gmra.mrb[2].mxu0 %v313_v46  ;;  %698 = vmatmul.mubr.f32.gmra.mrb[2].mxu1 %v317_v47 }
 0x11a   : > { %v690_v49 = vpop.f32.mrb[0].mxu0  ;;  %v696_v50 = vpop.f32.mrb[0].mxu1 }
 0x11b   : > { %v413_v51 = vadd.f32 %v690_v49, %v627_v48  ;;  %v433_v52 = vadd.f32 %v696_v50, %v627_v48  ;;  %v407_v53 = vpop.f32.mrb[1].mxu0  ;;  %v427_v54 = vpop.f32.mrb[1].mxu1 }
 0x11c   : > { %v408_v55 = vadd.f32 %v627_v48, %v407_v53  ;;  %v428_v56 = vadd.f32 %v627_v48, %v427_v54  ;;  %460 = sbr.rel (!%p883_p6) target bundleno = 300 (0x12c), region = 74 }
 0x11d   : > { %447 = vst [vmem:[%s968_s9 + $0x8] sm:$0xff] %v413_v51  ;;  %451 = vst [vmem:[%s968_s9 + $0x28] sm:$0xff] %v433_v52 }
 0x11e   : > { %446 = vst [vmem:[%s968_s9] sm:$0xff] %v408_v55  ;;  %450 = vst [vmem:[%s968_s9 + $0x20] sm:$0xff] %v428_v56  ;;  %v693_v57 = vpop.f32.mrb[2].mxu0  ;;  %v699_v58 = vpop.f32.mrb[2].mxu1 }
 0x11f   : > { %v423_v59 = vadd.f32 %v693_v57, %v627_v48  ;;  %v443_v60 = vadd.f32 %v699_v58, %v627_v48  ;;  %v417_v61 = vpop.f32.mrb[3].mxu0  ;;  %v437_v62 = vpop.f32.mrb[3].mxu1 }
 0x120   : > { %v418_v63 = vadd.f32 %v627_v48, %v417_v61  ;;  %v438_v0 = vadd.f32 %v627_v48, %v437_v62 }
 0x121   : > { %449 = vst [vmem:[%s968_s9 + $0x18] sm:$0xff] %v423_v59  ;;  %453 = vst [vmem:[%s968_s9 + $0x38] sm:$0xff] %v443_v60 }
 0x122   : > { %448 = vst [vmem:[%s968_s9 + $0x10] sm:$0xff] %v418_v63  ;;  %452 = vst [vmem:[%s968_s9 + $0x30] sm:$0xff] %v438_v0 }
 0x124   : > { %v509_v2 = vld [vmem:[%s968_s9 + $0x8] sm:$0xff] }
 0x125   : > { %v507_v1 = vld [vmem:[%s968_s9] sm:$0xff]  ;;  %v517_v6 = vld [vmem:[%s968_s9 + $0x28] sm:$0xff]  ;;  %510 = vst [vmem:[%s465_s11 + $0x18] sm:$0xff] %v509_v2 }
 0x126   : > { %v515_v5 = vld [vmem:[%s968_s9 + $0x20] sm:$0xff]  ;;  %508 = vst [vmem:[%s465_s11] sm:$0xff] %v507_v1  ;;  %518 = vst [vmem:[%s465_s11 + $0x78] sm:$0xff] %v517_v6 }
 0x127   : > { %516 = vst [vmem:[%s465_s11 + $0x60] sm:$0xff] %v515_v5 }
 0x128   : > { %v513_v4 = vld [vmem:[%s968_s9 + $0x18] sm:$0xff] }
 0x129   : > { %v511_v3 = vld [vmem:[%s968_s9 + $0x10] sm:$0xff]  ;;  %514 = vst [vmem:[%s465_s11 + $0x48] sm:$0xff] %v513_v4  ;;  %v521_v8 = vld [vmem:[%s968_s9 + $0x38] sm:$0xff] }
 0x12a   : > { %512 = vst [vmem:[%s465_s11 + $0x30] sm:$0xff] %v511_v3  ;;  %v519_v7 = vld [vmem:[%s968_s9 + $0x30] sm:$0xff]  ;;  %522 = vst [vmem:[%s465_s11 + $0xa8] sm:$0xff] %v521_v8 }
 0x12b   : > { %520 = vst [vmem:[%s465_s11 + $0x90] sm:$0xff] %v519_v7 }
 0x12c PF: > { %s13_s16 = sadd.s32 1, %s826_s16   ;;  %s1012_s12 = smov %s814_s13 }
 0x12d   : > { %p10_p12 = scmp.ge.s32.totalorder %s13_s16, 5   ;;  %s1013_s13 = smov %s888_s22 }
 0x12e   : > { %s1014_s14 = smov %s822_s15  ;;  %s1015_s15 = smov %s1017_s17 }
 0x12f   :  { %12 = sbr.rel (!%p10_p12) target bundleno = 3 (0x3), region = 149 }

// kernel: lstm_lm_decoder_forward.2
= control target key start
LH: loop header
LB: loop body
LE: loop exit
PB: predicated region body
PF: predicated region fallthrough
CT: control target
= control target key end

     0   :  { %s11990_s0 = inlined_call_operand.<no memory space> [shape: s32[1], index: 0, kind: input, shape index: {}]   ;;  %s11991_s1 = inlined_call_operand.vmem [shape: f32[4,16,32], index: 1, kind: input, shape index: {}]   ;;  %s11992_s2 = inlined_call_operand.vmem [shape: f32[2,4,128], index: 2, kind: input, shape index: {}]   ;;  %s11993_s3 = inlined_call_operand.vmem [shape: s32[4,1], index: 3, kind: input, shape index: {}]   ;;  %s11994_s4 = inlined_call_operand.vmem [shape: f32[32,384], index: 4, kind: input, shape index: {}]   ;;  %s11995_s5 = inlined_call_operand.vmem [shape: f32[1,384], index: 5, kind: input, shape index: {}]   ;;  %s11996_s6 = inlined_call_operand.vmem [shape: f32[128,384], index: 6, kind: input, shape index: {}]   ;;  %s11997_s7 = inlined_call_operand.vmem [shape: f32[1,384], index: 7, kind: input, shape index: {}]   ;;  %s11998_s8 = inlined_call_operand.vmem [shape: f32[128,384], index: 8, kind: input, shape index: {}]   ;;  %s11999_s9 = inlined_call_operand.vmem [shape: f32[1,384], index: 9, kind: input, shape index: {}]   ;;  %s12000_s10 = inlined_call_operand.vmem [shape: f32[128,384], index: 10, kind: input, shape index: {}]   ;;  %s12001_s11 = inlined_call_operand.vmem [shape: f32[1,384], index: 11, kind: input, shape index: {}]   ;;  %s12002_s12 = inlined_call_operand.vmem [shape: f32[4,16,128], index: 12, kind: output, shape index: {0}]   ;;  %s12003_s13 = inlined_call_operand.hbm [shape: f32[2,4,128], index: 13, kind: output, shape index: {1}]  }
   0x1   :  { %12168 = sst [smem:[#allocation86_spill]] %s11991_s1 }
   0x2   :  { %12169 = sst [smem:[#allocation87_spill]] %s11992_s2 }
   0x3   :  { %12170 = sst [smem:[#allocation88_spill]] %s11994_s4 }
   0x4   :  { %19 = sst [smem:[#allocation4]] %s11990_s0 }
   0x5   :  { %20 = vsyncpa [#allocation8], 0  ;;  %s9833_s27 = smov 0   ;;  %s9835_s28 = smov 0  }
   0x6   :  { %s9837_s29 = smov 0   ;;  %s9839_s30 = smov 0  }
   0x7   :  { %s9841_s14 = smov 0  }
   0x8 LB: > { %12171 = sst [smem:[#allocation10_spill]] %s9745_s30  ;;  %s35_s0 = sadd.s32 1, %s9745_s30  ;;  %s9749_s14 = sphi %s9841_s14, %s26_s14   ;;  %s9745_s30 = sphi %s9839_s30, %s12570_s30   ;;  %s9741_s29 = sphi %s9837_s29, %s12569_s29   ;;  %s9737_s28 = sphi %s9835_s28, %s12572_s28   ;;  %s9733_s27 = sphi %s9833_s27, %s12571_s27  }
   0x9   : > { %s6458_s15 = sadd.s32 4294967295, %s9749_s14   ;;  %p36_p0 = scmp.ge.s32.totalorder %s35_s0, 2 }
   0xa   : > { %p54_p1 = scmp.ne.s32.totalorder %s9737_s28, %s9733_s27  ;;  %p55_p2 = scmp.eq.s32.totalorder %s9749_s14, 0 }
   0xb   : > { %s12574_s0 = smov (%p36_p0, %s35_s0), 0  ;;  %p9865_p4 = scmp.eq.s32.totalorder %s6458_s15, 1 }
   0xc   : > { %12172 = sst [smem:[#allocation11_spill]] %s12574_s0  ;;  %p56_p3 = por %p55_p2, %p54_p1 }
   0xd   : > { %s43_s17 = ssub.s32 %s9745_s30, %s12574_s0  ;;  %s47_s18 = sadd.s32 1, %s9737_s28 }
   0xe   : > { %p45_p5 = scmp.eq.s32.totalorder %s43_s17, 0  ;;  %p9874_p6 = por %p9865_p4, %p54_p1 }
   0xf   : > { %p6463_p7 = scmp.ge.s32.totalorder %s9749_s14, 2 }
  0x10   : > { %s9879_s20 = scalar_select %p45_p5, %s9737_s28, %s47_s18  }
  0x11   : > { %392 = sbr.rel (%p6463_p7) target bundleno = 36 (0x24), region = 56 }
  0x18   : > { %395 = sbr.rel (!%p56_p3) target bundleno = 36 (0x24), region = 60  ;;  %s397_s21 = sand.u32 (%p56_p3), 1, %s9737_s28  }
  0x19   : > { %s6465_s22 = sshll.u32 (%p56_p3), %s9745_s30, 3  ;;  %s6464_s23 = sshll.u32 (%p56_p3), %s397_s21, 5 }
  0x1a   : > { %s12175_s1 = sld [smem:[#allocation86_spill]] (%p56_p3)  ;;  %s399_s15 = scalar_lea.vmem (%p56_p3), [#allocation5], %s6464_s23 }
  0x20   : > { %s404_s26 = scalar_lea.vmem %s12175_s1, %s6465_s22 }
  0x21   : > { %v438_v0 = vld [vmem:[%s404_s26] sm:$0xff]  ;;  %v440_v1 = vld [vmem:[%s404_s26 + $0x10] sm:$0xff] }
  0x22   : > { %v442_v2 = vld [vmem:[%s404_s26 + $0x20] sm:$0xff]  ;;  %439 = vst [vmem:[%s399_s15] sm:$0xff] %v438_v0  ;;  %441 = vst [vmem:[%s399_s15 + $0x8] sm:$0xff] %v440_v1  ;;  %v444_v3 = vld [vmem:[%s404_s26 + $0x30] sm:$0xff] }
  0x23   : > { %443 = vst [vmem:[%s399_s15 + $0x10] sm:$0xff] %v442_v2  ;;  %445 = vst [vmem:[%s399_s15 + $0x18] sm:$0xff] %v444_v3 }
  0x24 PF: > { %p6466_p8 = scmp.ge.s32.totalorder %s9749_s14, 1  ;;  %p450_p9 = scmp.lt.s32.totalorder %s9749_s14, 3 }
  0x26   : > { %p451_p10 = pnand %p6466_p8, %p450_p9 }
  0x27   : > { %s457_s17 = sand.u32 (!%p451_p10), 1, %s9733_s27   ;;  %p6469_p11 = scmp.ne.s32.totalorder (!%p451_p10), %s9741_s29, 0 }
  0x28   : > { %454 = sbr.rel (%p451_p10) target bundleno = 3105 (0xc21), region = 98  ;;  %s6467_s18 = sshll.u32 (!%p451_p10), %s457_s17, 5 }
  0x29   : > { %s9890_s21 = scalar_lea.vmem (!%p451_p10), [#allocation5], %s6467_s18  ;;  %s9892_s22 = scalar_lea.vmem (!%p451_p10), [#allocation6], %s6467_s18 }
  0x2f   : > { %518 = sbr.rel (%p6469_p11) target bundleno = 55 (0x37), region = 106  ;;  %s12176_s2 = sld [smem:[#allocation87_spill]] (!%p6469_p11) }
  0x35   : > { %v519_v4 = vld [vmem:[%s12176_s2] sm:$0xff] (!%p6469_p11)  }
  0x36   : > { %521 = vst [vmem:[#allocation2] sm:$0xff] %v519_v4  }
  0x37 PF: > { %s9899_s25 = sshll.u32 %s9741_s29, 3  ;;  %s9901_s26 = sld [smem:[#allocation4]] }
  0x3d   : > { %p6471_p12 = scmp.ge.s32.totalorder %s9899_s25, %s9901_s26 }
  0x3f   : > { %528 = sbr.rel (%p6471_p12) target bundleno = 3054 (0xbee), region = 110 }
  0x46   : > { %s12177_s4 = sld [smem:[#allocation88_spill]]  ;;  %v12006_v12 = vmov 0.0   ;;  %v728_v17 = vld [vmem:[%s11996_s6 + $0x8] sm:$0xff]  ;;  %v12012_v18 = vmov 0.0|0.0   ;;  %v731_v19 = vld [vmem:[%s11996_s6 + $0x20] sm:$0xff]  ;;  %vm575_vm0 = vcmask 1041409   ;;  %v533_v2 = vstv %s9899_s25 }
  0x47   : > { %650 = vmatprep.mubr.f32.mxu0 %v12006_v12  ;;  %7920 = vmatprep.subr.bf16.mxu1 %v12012_v18  ;;  %v537_v20 = vld [vmem:[%s9890_s21] sm:$0x1]  ;;  %v538_v21 = vld [vmem:[%s9890_s21 + $0x8] sm:$0x1]  ;;  %vm9753_vm1 = vmmov 0   ;;  %vm578_vm2 = vcmask 1042434   ;;  %v9954_v27 = vpack.c.bf16 %v731_v19, %v728_v17 }
  0x48   : > { %6992 = vmatprep.mubr.msk.f32.mxu1 %vm9753_vm1, %v12006_v12  ;;  %v539_v23 = vld [vmem:[%s9890_s21 + $0x10] sm:$0x1]  ;;  %v540_v24 = vld [vmem:[%s9890_s21 + $0x18] sm:$0x1]  ;;  %v574_v25 = vrot.slane %v538_v21, 7  ;;  %v9754_v26 = vmov 0  }
  0x49   : > { %9519 = vset.pattern.permute.xlu0 %v9754_v26  ;;  %v577_v28 = vrot.slane %v539_v23, 6  ;;  %v580_v29 = vrot.slane %v540_v24, 5  ;;  %vm581_vm3 = vcmask 1043459   ;;  %v727_v30 = vld [vmem:[%s11996_s6] sm:$0xff]  ;;  %v730_v31 = vld [vmem:[%s11996_s6 + $0x18] sm:$0xff]  ;;  %9520 = vset.pattern.permute.xlu1 %v9754_v26  ;;  %v737_v34 = vld [vmem:[%s11996_s6 + $0x50] sm:$0xff] }
  0x4a   : > { %v576_v32 = vsel %vm575_vm0, %v574_v25, %v537_v20  ;;  %v734_v33 = vld [vmem:[%s11996_s6 + $0x38] sm:$0xff]  ;;  %vm583_vm4 = vcmask 261120   ;;  %v9972_v37 = vpack.c.bf16 %v730_v31, %v727_v30  ;;  %v733_v39 = vld [vmem:[%s11996_s6 + $0x30] sm:$0xff]  ;;  %v736_v40 = vld [vmem:[%s11996_s6 + $0x48] sm:$0xff]  ;;  %s1399_s0 = sadd.s32 1, %s9899_s25  ;;  %s3316_s27 = sadd.s32 4, %s9899_s25 }
  0x4b   : > { %v579_v35 = vsel %vm578_vm2, %v577_v28, %v576_v32  ;;  %v9975_v38 = vpack.c.bf16 %v737_v34, %v734_v33  ;;  %v740_v41 = vld [vmem:[%s11996_s6 + $0x68] sm:$0xff]  ;;  %v743_v42 = vld [vmem:[%s11996_s6 + $0x80] sm:$0xff]  ;;  %v9997_v45 = vpack.c.bf16 %v736_v40, %v733_v39  ;;  %v742_v50 = vld [vmem:[%s11996_s6 + $0x78] sm:$0xff]  ;;  %v1400_v3 = vstv %s1399_s0  ;;  %s4594_s2 = sadd.s32 6, %s9899_s25  ;;  %s2677_s0 = sadd.s32 3, %s9899_s25 }
  0x4c   : > { %v542_v5 = vld [vmem:[%s12177_s4 + $0x8] sm:$0xff]  ;;  %v545_v6 = vld [vmem:[%s12177_s4 + $0x20] sm:$0xff]  ;;  %v544_v9 = vld [vmem:[%s12177_s4 + $0x18] sm:$0xff]  ;;  %v582_v36 = vsel %vm581_vm3, %v580_v29, %v579_v35  ;;  %v10006_v48 = vpack.c.bf16 %v743_v42, %v740_v41  ;;  %v3317_v20 = vstv %s3316_s27  ;;  %s3955_s30 = sadd.s32 5, %s9899_s25  ;;  %s5233_s18 = sadd.s32 7, %s9899_s25  ;;  %vm6218_vm13 = vcmask 1040384  }
  0x4d   : > { %v541_v7 = vld [vmem:[%s12177_s4] sm:$0xff]  ;;  %v9914_v8 = vpack.c.bf16 %v545_v6, %v542_v5  ;;  %v548_v10 = vld [vmem:[%s12177_s4 + $0x38] sm:$0xff]  ;;  %v551_v11 = vld [vmem:[%s12177_s4 + $0x50] sm:$0xff]  ;;  %v4595_v33 = vstv %s4594_s2  ;;  %vm6223_vm14 = vcmask 1041408   ;;  %vm6228_vm15 = vcmask 1042432  }
  0x4e   : > { %v9926_v13 = vpack.c.bf16 %v544_v9, %v541_v7  ;;  %v9928_v14 = vpack.c.bf16 %v551_v11, %v548_v10  ;;  %v547_v15 = vld [vmem:[%s12177_s4 + $0x30] sm:$0xff]  ;;  %v550_v16 = vld [vmem:[%s12177_s4 + $0x48] sm:$0xff]  ;;  %v549_v47 = vld [vmem:[%s12177_s4 + $0x40] sm:$0xff]  ;;  %12178 = vst [vmem:[#allocation12_spill] sm:$0xff] %v10006_v48 }
  0x4f   : > { %7913 = vmatprep.subr.bf16.mxu0 %v9914_v8  ;;  %v9949_v22 = vpack.c.bf16 %v550_v16, %v547_v15  ;;  %v543_v43 = vld [vmem:[%s12177_s4 + $0x10] sm:$0xff]  ;;  %v546_v44 = vld [vmem:[%s12177_s4 + $0x28] sm:$0xff]  ;;  %v739_v49 = vld [vmem:[%s11996_s6 + $0x60] sm:$0xff] }
  0x50   : > { %7915 = vmatpush1.bf16.msra.mxu0 %v9926_v13  ;;  %v9999_v46 = vpack.c.bf16 %v546_v44, %v543_v43  ;;  %v552_v51 = vld [vmem:[%s12177_s4 + $0x58] sm:$0xff]  ;;  %v749_v53 = vld [vmem:[%s11996_s6 + $0xb0] sm:$0xff]  ;;  %v732_v56 = vld [vmem:[%s11996_s6 + $0x28] sm:$0xff]  ;;  %v10034_v57 = vpack.c.bf16 %v742_v50, %v739_v49  ;;  %s2038_s4 = sadd.s32 2, %s9899_s25 }
  0x51   : > { %7917 = vmatprep.subr.bf16.mxu0 %v9928_v14  ;;  %v746_v52 = vld [vmem:[%s11996_s6 + $0x98] sm:$0xff]  ;;  %v10024_v54 = vpack.c.bf16 %v552_v51, %v549_v47  ;;  %v729_v55 = vld [vmem:[%s11996_s6 + $0x10] sm:$0xff]  ;;  %v748_v60 = vld [vmem:[%s11996_s6 + $0xa8] sm:$0xff] }
  0x52   : > { %7922 = vmatpush3.bf16.msra.mxu1 %v9999_v46  ;;  %12179 = vst [vmem:[#allocation13_spill] sm:$0xff] %v10034_v57  ;;  %v10038_v58 = vpack.c.bf16 %v749_v53, %v746_v52  ;;  %v745_v59 = vld [vmem:[%s11996_s6 + $0x90] sm:$0xff]  ;;  %v752_v61 = vld [vmem:[%s11996_s6 + $0xc8] sm:$0xff]  ;;  %v755_v62 = vld [vmem:[%s11996_s6 + $0xe0] sm:$0xff]  ;;  %v10053_v63 = vpack.c.bf16 %v732_v56, %v729_v55 }
  0x53   : > { %7923 = vmatprep.subr.bf16.mxu1 %v12012_v18  ;;  %v735_v0 = vld [vmem:[%s11996_s6 + $0x40] sm:$0xff]  ;;  %v738_v1 = vld [vmem:[%s11996_s6 + $0x58] sm:$0xff]  ;;  %v10064_v4 = vpack.c.bf16 %v748_v60, %v745_v59  ;;  %v10068_v5 = vpack.c.bf16 %v755_v62, %v752_v61  ;;  %v761_v11 = vld [vmem:[%s11996_s6 + $0x110] sm:$0xff] }
  0x54   : > { %7919 = vmatpush1.bf16.msra.mxu0 %v9949_v22  ;;  %12180 = vst [vmem:[#allocation14_spill] sm:$0xff] %v10038_v58  ;;  %v751_v6 = vld [vmem:[%s11996_s6 + $0xc0] sm:$0xff]  ;;  %v754_v7 = vld [vmem:[%s11996_s6 + $0xd8] sm:$0xff]  ;;  %v10089_v15 = vpack.c.bf16 %v738_v1, %v735_v0  ;;  %v741_v16 = vld [vmem:[%s11996_s6 + $0x70] sm:$0xff] }
  0x55   : > { %7927 = vmatprep.subr.bf16.mxu0 %v9954_v27  ;;  %12181 = vst [vmem:[#allocation15_spill] sm:$0xff] %v10064_v4  ;;  %12182 = vst [vmem:[#allocation16_spill] sm:$0xff] %v10068_v5  ;;  %v10080_v9 = vld [vmem:[%s11993_s3] sm:$0xf]  ;;  %v758_v10 = vld [vmem:[%s11996_s6 + $0xf8] sm:$0xff]  ;;  %v10104_v21 = vpack.c.bf16 %v754_v7, %v751_v6 }
  0x56   : > { %7925 = vmatpush3.bf16.msra.mxu1 %v10024_v54  ;;  %12183 = vst [vmem:[#allocation17_spill] sm:$0xff] %v10080_v9  ;;  %12184 = vst [vmem:[#allocation18_spill] sm:$0xff] %v10089_v15  ;;  %vm534_vm5 = vcmp.lt.s32.totalorder %v533_v2, %v10080_v9  ;;  %vm1401_vm6 = vcmp.lt.s32.totalorder %v1400_v3, %v10080_v9  ;;  %v744_v17 = vld [vmem:[%s11996_s6 + $0x88] sm:$0xff]  ;;  %v10108_v23 = vpack.c.bf16 %v761_v11, %v758_v10  ;;  %v757_v24 = vld [vmem:[%s11996_s6 + $0xf0] sm:$0xff] }
  0x57   : > { %6473 = vmatmul.mubr.msk.f32.vlgmr.msra.gmra.mrb[0].mxu0 %vm583_vm4, %v582_v36  ;;  %7958 = vmatprep.subr.bf16.mxu1 %v12012_v18  ;;  %v6472_v19 = vsel %vm534_vm5, 1.0, %v12006_v12  ;;  %12185 = vst [vmem:[#allocation19_spill] sm:$0xff] %v10104_v21  ;;  %v760_v25 = vld [vmem:[%s11996_s6 + $0x108] sm:$0xff]  ;;  %v6479_v26 = vsel %vm1401_vm6, 1.0, %v12006_v12  ;;  %v767_v29 = vld [vmem:[%s11996_s6 + $0x140] sm:$0xff]  ;;  %v10124_v30 = vpack.c.bf16 %v744_v17, %v741_v16  ;;  %vm3318_vm7 = vcmp.lt.s32.totalorder %v3317_v20, %v10080_v9  ;;  %v750_v32 = vld [vmem:[%s11996_s6 + $0xb8] sm:$0xff] }
  0x58   : > { %7929 = vmatpush1.bf16.msra.mxu0 %v9972_v37  ;;  %856 = vmatprep.mubr.f32.mxu0 %v12006_v12  ;;  %12186 = vst [vmem:[#allocation20_spill] sm:$0xff] %v10108_v23  ;;  %v764_v28 = vld [vmem:[%s11996_s6 + $0x128] sm:$0xff]  ;;  %v747_v31 = vld [vmem:[%s11996_s6 + $0xa0] sm:$0xff]  ;;  %v10135_v34 = vpack.c.bf16 %v760_v25, %v757_v24  ;;  %v766_v39 = vld [vmem:[%s11996_s6 + $0x138] sm:$0xff]  ;;  %v6500_v40 = vsel %vm3318_vm7, 1.0, %v12006_v12  ;;  %vm4596_vm8 = vcmp.lt.s32.totalorder %v4595_v33, %v10080_v9 }
  0x59   : > { %7931 = vmatprep.subr.bf16.mxu0 %v9975_v38  ;;  %6993 = vmatmul.mubr.msk.f32.vlgmr.msra.gmra.mrb[0].mxu1 %vm583_vm4, %v582_v36  ;;  %12187 = vst [vmem:[#allocation21_spill] sm:$0xff] %v10124_v30  ;;  %v10138_v35 = vpack.c.bf16 %v767_v29, %v764_v28  ;;  %v763_v36 = vld [vmem:[%s11996_s6 + $0x120] sm:$0xff]  ;;  %v770_v41 = vld [vmem:[%s11996_s6 + $0x158] sm:$0xff]  ;;  %v773_v42 = vld [vmem:[%s11996_s6 + $0x170] sm:$0xff]  ;;  %v10154_v43 = vpack.c.bf16 %v750_v32, %v747_v31  ;;  %v6514_v53 = vsel %vm4596_vm8, 1.0, %v12006_v12 }
  0x5a   : > { %7960 = vmatpush3.bf16.msra.mxu1 %v10053_v63  ;;  %7027 = vmatprep.mubr.msk.f32.mxu1 %vm9753_vm1, %v12006_v12  ;;  %12188 = vst [vmem:[#allocation22_spill] sm:$0xff] %v10135_v34  ;;  %v753_v44 = vld [vmem:[%s11996_s6 + $0xd0] sm:$0xff]  ;;  %v756_v47 = vld [vmem:[%s11996_s6 + $0xe8] sm:$0xff]  ;;  %v10165_v49 = vpack.c.bf16 %v766_v39, %v763_v36  ;;  %v10168_v50 = vpack.c.bf16 %v773_v42, %v770_v41  ;;  %v759_v56 = vld [vmem:[%s11996_s6 + $0x100] sm:$0xff] }
  0x5b   : > { %7961 = vmatprep.subr.bf16.mxu1 %v12012_v18  ;;  %957 = vperm.xlu0 %9519, %v6472_v19   ;;  %12189 = vst [vmem:[#allocation23_spill] sm:$0xff] %v10138_v35  ;;  %12190 = vst [vmem:[#allocation24_spill] sm:$0xff] %v10154_v43  ;;  %v769_v51 = vld [vmem:[%s11996_s6 + $0x150] sm:$0xff]  ;;  %v772_v52 = vld [vmem:[%s11996_s6 + $0x168] sm:$0xff]  ;;  %v10178_v55 = vpack.c.bf16 %v756_v47, %v753_v44 }
  0x5c   : > { %7933 = vmatpush1.bf16.msra.mxu0 %v9997_v45  ;;  %12191 = vst [vmem:[#allocation25_spill] sm:$0xff] %v10165_v49  ;;  %12192 = vst [vmem:[#allocation26_spill] sm:$0xff] %v10168_v50  ;;  %v762_v59 = vld [vmem:[%s11996_s6 + $0x118] sm:$0xff]  ;;  %v10188_v60 = vpack.c.bf16 %v772_v52, %v769_v51  ;;  %v765_v62 = vld [vmem:[%s11996_s6 + $0x130] sm:$0xff] }
  0x5d   : > { %7935 = vmatprep.subr.bf16.mxu0 %v10006_v48  ;;  %12193 = vst [vmem:[#allocation27_spill] sm:$0xff] %v10178_v55  ;;  %v10192_v61 = vpack.c.bf16 %v762_v59, %v759_v56  ;;  %v768_v0 = vld [vmem:[%s11996_s6 + $0x148] sm:$0xff]  ;;  %v10202_v1 = vld [vmem:[#allocation2] sm:$0xf]  ;;  %v774_v6 = vld [vmem:[%s11996_s6 + $0x178] sm:$0xff] }
  0x5e   : > { %7963 = vmatpush3.bf16.msra.mxu1 %v10089_v15  ;;  %12194 = vst [vmem:[#allocation28_spill] sm:$0xff] %v10188_v60  ;;  %v10205_v2 = vpack.c.bf16 %v768_v0, %v765_v62  ;;  %v771_v3 = vld [vmem:[%s11996_s6 + $0x160] sm:$0xff]  ;;  %v963_v10 = vld [vmem:[%s11998_s8 + $0x8] sm:$0xff]  ;;  %v965_v19 = vld [vmem:[%s11998_s8 + $0x18] sm:$0xff] }
  0x5f   : > { %7964 = vmatprep.subr.bf16.mxu1 %v12012_v18  ;;  %1726 = vperm.xlu0 %9519, %v6479_v26   ;;  %12195 = vst [vmem:[#allocation29_spill] sm:$0xff] %v10192_v61  ;;  %v10217_v7 = vpack.c.bf16 %v774_v6, %v771_v3  ;;  %v966_v11 = vld [vmem:[%s11998_s8 + $0x20] sm:$0xff]  ;;  %v964_v20 = vld [vmem:[%s11998_s8 + $0x10] sm:$0xff]  ;;  %v967_v25 = vld [vmem:[%s11998_s8 + $0x28] sm:$0xff] }
  0x60   : > { %7937 = vmatpush1.bf16.msra.mxu0 %v10034_v57  ;;  %12196 = vst [vmem:[#allocation30_spill] sm:$0xff] %v10205_v2  ;;  %v10231_v16 = vpack.c.bf16 %v966_v11, %v963_v10  ;;  %v962_v17 = vld [vmem:[%s11998_s8] sm:$0xff]  ;;  %v10248_v26 = vpack.c.bf16 %v967_v25, %v964_v20  ;;  %v969_v28 = vld [vmem:[%s11998_s8 + $0x38] sm:$0xff]  ;;  %v972_v29 = vld [vmem:[%s11998_s8 + $0x50] sm:$0xff] }
  0x61   : > { %7939 = vmatprep.subr.bf16.mxu0 %v10038_v58  ;;  %12197 = vst [vmem:[#allocation31_spill] sm:$0xff] %v10217_v7  ;;  %v10242_v24 = vpack.c.bf16 %v965_v19, %v962_v17  ;;  %v10258_v31 = vpack.c.bf16 %v972_v29, %v969_v28  ;;  %v968_v32 = vld [vmem:[%s11998_s8 + $0x30] sm:$0xff]  ;;  %v971_v33 = vld [vmem:[%s11998_s8 + $0x48] sm:$0xff]  ;;  %v970_v36 = vld [vmem:[%s11998_s8 + $0x40] sm:$0xff] }
  0x62   : > { %7966 = vmatpush3.bf16.msra.mxu1 %v10124_v30  ;;  %12198 = vst [vmem:[#allocation32_spill] sm:$0xff] %v10231_v16  ;;  %12200 = vst [vmem:[#allocation34_spill] sm:$0xff] %v10248_v26  ;;  %v10270_v39 = vpack.c.bf16 %v971_v33, %v968_v32  ;;  %v975_v42 = vld [vmem:[%s11998_s8 + $0x68] sm:$0xff]  ;;  %v978_v44 = vld [vmem:[%s11998_s8 + $0x80] sm:$0xff] }
  0x63   : > { %7967 = vmatprep.subr.bf16.mxu1 %v12012_v18  ;;  %3643 = vperm.xlu0 %9519, %v6500_v40   ;;  %12199 = vst [vmem:[#allocation33_spill] sm:$0xff] %v10242_v24  ;;  %12201 = vst [vmem:[#allocation35_spill] sm:$0xff] %v10258_v31  ;;  %v973_v40 = vld [vmem:[%s11998_s8 + $0x58] sm:$0xff]  ;;  %v10286_v47 = vpack.c.bf16 %v978_v44, %v975_v42  ;;  %v974_v51 = vld [vmem:[%s11998_s8 + $0x60] sm:$0xff] }
  0x64   : > { %7941 = vmatpush1.bf16.msra.mxu0 %v10064_v4  ;;  %12202 = vst [vmem:[#allocation36_spill] sm:$0xff] %v10270_v39  ;;  %v10276_v41 = vpack.c.bf16 %v973_v40, %v970_v36  ;;  %v977_v52 = vld [vmem:[%s11998_s8 + $0x78] sm:$0xff]  ;;  %v979_v59 = vld [vmem:[%s11998_s8 + $0x88] sm:$0xff]  ;;  %v984_v3 = vld [vmem:[%s11998_s8 + $0xb0] sm:$0xff] }
  0x65   : > { %7943 = vmatprep.subr.bf16.mxu0 %v10068_v5  ;;  %12204 = vst [vmem:[#allocation38_spill] sm:$0xff] %v10286_v47  ;;  %v10298_v56 = vpack.c.bf16 %v977_v52, %v974_v51  ;;  %v981_v0 = vld [vmem:[%s11998_s8 + $0x98] sm:$0xff]  ;;  %v980_v10 = vld [vmem:[%s11998_s8 + $0x90] sm:$0xff]  ;;  %v983_v11 = vld [vmem:[%s11998_s8 + $0xa8] sm:$0xff] }
  0x66   : > { %7969 = vmatpush3.bf16.msra.mxu1 %v10154_v43  ;;  %12203 = vst [vmem:[#allocation37_spill] sm:$0xff] %v10276_v41  ;;  %v10314_v6 = vpack.c.bf16 %v984_v3, %v981_v0  ;;  %v982_v17 = vld [vmem:[%s11998_s8 + $0xa0] sm:$0xff]  ;;  %v10326_v19 = vpack.c.bf16 %v983_v11, %v980_v10  ;;  %v985_v20 = vld [vmem:[%s11998_s8 + $0xb8] sm:$0xff]  ;;  %v987_v28 = vld [vmem:[%s11998_s8 + $0xc8] sm:$0xff] }
  0x67   : > { %7970 = vmatprep.subr.bf16.mxu1 %v12012_v18  ;;  %4921 = vperm.xlu0 %9519, %v6514_v53   ;;  %v976_v53 = vld [vmem:[%s11998_s8 + $0x70] sm:$0xff]  ;;  %12205 = vst [vmem:[#allocation39_spill] sm:$0xff] %v10298_v56  ;;  %v10332_v25 = vpack.c.bf16 %v985_v20, %v982_v17  ;;  %v990_v29 = vld [vmem:[%s11998_s8 + $0xe0] sm:$0xff]  ;;  %v989_v36 = vld [vmem:[%s11998_s8 + $0xd8] sm:$0xff] }
  0x68   : > { %7945 = vmatpush1.bf16.msra.mxu0 %v10104_v21  ;;  %v10304_v62 = vpack.c.bf16 %v979_v59, %v976_v53  ;;  %12207 = vst [vmem:[#allocation41_spill] sm:$0xff] %v10314_v6  ;;  %12208 = vst [vmem:[#allocation42_spill] sm:$0xff] %v10326_v19  ;;  %v10341_v32 = vpack.c.bf16 %v990_v29, %v987_v28  ;;  %v986_v33 = vld [vmem:[%s11998_s8 + $0xc0] sm:$0xff]  ;;  %v988_v40 = vld [vmem:[%s11998_s8 + $0xd0] sm:$0xff] }
  0x69   : > { %7947 = vmatprep.subr.bf16.mxu0 %v10108_v23  ;;  %12209 = vst [vmem:[#allocation43_spill] sm:$0xff] %v10332_v25  ;;  %v10355_v42 = vpack.c.bf16 %v989_v36, %v986_v33  ;;  %v991_v44 = vld [vmem:[%s11998_s8 + $0xe8] sm:$0xff]  ;;  %v993_v52 = vld [vmem:[%s11998_s8 + $0xf8] sm:$0xff]  ;;  %v996_v53 = vld [vmem:[%s11998_s8 + $0x110] sm:$0xff] }
  0x6a   : > { %7972 = vmatpush3.bf16.msra.mxu1 %v10178_v55  ;;  %12206 = vst [vmem:[#allocation40_spill] sm:$0xff] %v10304_v62  ;;  %12210 = vst [vmem:[#allocation44_spill] sm:$0xff] %v10341_v32  ;;  %v10360_v51 = vpack.c.bf16 %v991_v44, %v988_v40  ;;  %v10370_v59 = vpack.c.bf16 %v996_v53, %v993_v52  ;;  %v992_v0 = vld [vmem:[%s11998_s8 + $0xf0] sm:$0xff]  ;;  %v995_v3 = vld [vmem:[%s11998_s8 + $0x108] sm:$0xff] }
  0x6b   : > { %7973 = vmatprep.subr.bf16.mxu1 %v12012_v18  ;;  %12211 = vst [vmem:[#allocation45_spill] sm:$0xff] %v10355_v42  ;;  %v994_v10 = vld [vmem:[%s11998_s8 + $0x100] sm:$0xff]  ;;  %v10382_v11 = vpack.c.bf16 %v995_v3, %v992_v0  ;;  %v997_v17 = vld [vmem:[%s11998_s8 + $0x118] sm:$0xff]  ;;  %v999_v28 = vld [vmem:[%s11998_s8 + $0x128] sm:$0xff] }
  0x6c   : > { %7949 = vmatpush1.bf16.msra.mxu0 %v10135_v34  ;;  %12212 = vst [vmem:[#allocation46_spill] sm:$0xff] %v10360_v51  ;;  %12213 = vst [vmem:[#allocation47_spill] sm:$0xff] %v10370_v59  ;;  %v10388_v20 = vpack.c.bf16 %v997_v17, %v994_v10  ;;  %v1002_v29 = vld [vmem:[%s11998_s8 + $0x140] sm:$0xff]  ;;  %v1001_v40 = vld [vmem:[%s11998_s8 + $0x138] sm:$0xff] }
  0x6d   : > { %7951 = vmatprep.subr.bf16.mxu0 %v10138_v35  ;;  %12214 = vst [vmem:[#allocation48_spill] sm:$0xff] %v10382_v11  ;;  %v10398_v33 = vpack.c.bf16 %v1002_v29, %v999_v28  ;;  %v998_v36 = vld [vmem:[%s11998_s8 + $0x120] sm:$0xff]  ;;  %v1000_v44 = vld [vmem:[%s11998_s8 + $0x130] sm:$0xff]  ;;  %v1003_v53 = vld [vmem:[%s11998_s8 + $0x148] sm:$0xff] }
  0x6e   : > { %7975 = vmatpush3.bf16.msra.mxu1 %v10192_v61  ;;  %12215 = vst [vmem:[#allocation49_spill] sm:$0xff] %v10388_v20  ;;  %v10410_v52 = vpack.c.bf16 %v1001_v40, %v998_v36  ;;  %v10416_v0 = vpack.c.bf16 %v1003_v53, %v1000_v44  ;;  %v1005_v3 = vld [vmem:[%s11998_s8 + $0x158] sm:$0xff]  ;;  %v1008_v10 = vld [vmem:[%s11998_s8 + $0x170] sm:$0xff]  ;;  %v1007_v29 = vld [vmem:[%s11998_s8 + $0x168] sm:$0xff] }
  0x6f   : > { %7976 = vmatprep.subr.bf16.mxu1 %v12012_v18  ;;  %12216 = vst [vmem:[#allocation50_spill] sm:$0xff] %v10398_v33  ;;  %v10426_v17 = vpack.c.bf16 %v1008_v10, %v1005_v3  ;;  %v1004_v28 = vld [vmem:[%s11998_s8 + $0x150] sm:$0xff]  ;;  %v1006_v36 = vld [vmem:[%s11998_s8 + $0x160] sm:$0xff]  ;;  %v1009_v44 = vld [vmem:[%s11998_s8 + $0x178] sm:$0xff] }
  0x70   : > { %7953 = vmatpush1.bf16.msra.mxu0 %v10165_v49  ;;  %12217 = vst [vmem:[#allocation51_spill] sm:$0xff] %v10410_v52  ;;  %12218 = vst [vmem:[#allocation52_spill] sm:$0xff] %v10416_v0  ;;  %v10438_v40 = vpack.c.bf16 %v1007_v29, %v1004_v28  ;;  %v10444_v53 = vpack.c.bf16 %v1009_v44, %v1006_v36  ;;  %v1169_v3 = vld [vmem:[%s12000_s10 + $0x8] sm:$0xff]  ;;  %v1172_v10 = vld [vmem:[%s12000_s10 + $0x20] sm:$0xff]  ;;  %v555_v44 = vlaneseq }
  0x71   : > { %7955 = vmatprep.subr.bf16.mxu0 %v10168_v50  ;;  %12219 = vst [vmem:[#allocation53_spill] sm:$0xff] %v10426_v17  ;;  %v10454_v28 = vpack.c.bf16 %v1172_v10, %v1169_v3  ;;  %v553_v3 = vld [vmem:[%s11995_s5] sm:$0x7] }
  0x72   : > { %7978 = vmatpush3.bf16.msra.mxu1 %v10205_v2  ;;  %12220 = vst [vmem:[#allocation54_spill] sm:$0xff] %v10438_v40  ;;  %12221 = vst [vmem:[#allocation55_spill] sm:$0xff] %v10444_v53 }
  0x73   : > { %7979 = vmatprep.subr.bf16.mxu1 %v12012_v18  ;;  %12222 = vst [vmem:[#allocation56_spill] sm:$0xff] %v10454_v28 }
  0x74   : > { %7957 = vmatpush1.bf16.msra.mxu0 %v10188_v60 }
  0x75   : > { %7983 = vmatprep.subr.bf16.mxu0 %v10231_v16 }
  0x76   : > { %7981 = vmatpush3.bf16.msra.mxu1 %v10217_v7 }
  0x77   : > { %857 = vmatmul.mubr.f32.vlgmr.msra.gmra.mrb[0].mxu0 %v10202_v1  ;;  %8014 = vmatprep.subr.bf16.mxu1 %v12012_v18 }
  0x78   : > { %1091 = vmatprep.mubr.f32.mxu0 %v12006_v12  ;;  %7985 = vmatpush1.bf16.msra.mxu0 %v10242_v24 }
  0x79   : > { %7028 = vmatmul.mubr.f32.vlgmr.msra.gmra.mrb[2].mxu1 %v10202_v1  ;;  %7987 = vmatprep.subr.bf16.mxu0 %v10258_v31 }
  0x7a   : > { %7062 = vmatprep.mubr.msk.f32.mxu1 %vm9753_vm1, %v12006_v12  ;;  %8016 = vmatpush3.bf16.msra.mxu1 %v10248_v26  ;;  %v10458_v12 = vshrl.u32 %v555_v44, 7 }
  0x7b   : > { %8017 = vmatprep.subr.bf16.mxu1 %v12012_v18 }
  0x7c   : > { %7989 = vmatpush1.bf16.msra.mxu0 %v10270_v39  ;;  %12223 = vst [vmem:[#allocation57_spill] sm:$0xff] %v10458_v12  ;;  %v10461_v9 = vsub.s32 0, %v10458_v12  ;;  %v10470_v10 = vsub.s32 1, %v10458_v12 }
  0x7d   : > { %7991 = vmatprep.subr.bf16.mxu0 %v10286_v47 }
  0x7e   : > { %8019 = vmatpush3.bf16.msra.mxu1 %v10276_v41  ;;  %12224 = vst [vmem:[#allocation58_spill] sm:$0xff] %v10461_v9  ;;  %v562_v44 = vrot.slane %v553_v3, %v10470_v10 }
  0x7f   : > { %8020 = vmatprep.subr.bf16.mxu1 %v12012_v18 }
  0x80   : > { %7993 = vmatpush1.bf16.msra.mxu0 %v10298_v56 }
  0x81   : > { %7995 = vmatprep.subr.bf16.mxu0 %v10314_v6 }
  0x82   : > { %8022 = vmatpush3.bf16.msra.mxu1 %v10304_v62 }
  0x83   : > { %8023 = vmatprep.subr.bf16.mxu1 %v12012_v18 }
  0x84   : > { %7997 = vmatpush1.bf16.msra.mxu0 %v10326_v19 }
  0x85   : > { %7999 = vmatprep.subr.bf16.mxu0 %v10341_v32 }
  0x86   : > { %8025 = vmatpush3.bf16.msra.mxu1 %v10332_v25 }
  0x87   : > { %8026 = vmatprep.subr.bf16.mxu1 %v12012_v18 }
  0x88   : > { %8001 = vmatpush1.bf16.msra.mxu0 %v10355_v42 }
  0x89   : > { %8003 = vmatprep.subr.bf16.mxu0 %v10370_v59 }
  0x8a   : > { %8028 = vmatpush3.bf16.msra.mxu1 %v10360_v51 }
  0x8b   : > { %8029 = vmatprep.subr.bf16.mxu1 %v12012_v18 }
  0x8c   : > { %8005 = vmatpush1.bf16.msra.mxu0 %v10382_v11 }
  0x8d   : > { %8007 = vmatprep.subr.bf16.mxu0 %v10398_v33 }
  0x8e   : > { %8031 = vmatpush3.bf16.msra.mxu1 %v10388_v20 }
  0x8f   : > { %8032 = vmatprep.subr.bf16.mxu1 %v12012_v18 }
  0x90   : > { %8009 = vmatpush1.bf16.msra.mxu0 %v10410_v52 }
  0x91   : > { %8011 = vmatprep.subr.bf16.mxu0 %v10426_v17 }
  0x92   : > { %8034 = vmatpush3.bf16.msra.mxu1 %v10416_v0 }
  0x93   : > { %8035 = vmatprep.subr.bf16.mxu1 %v12012_v18 }
  0x94   : > { %8013 = vmatpush1.bf16.msra.mxu0 %v10438_v40  ;;  %v775_v40 = vld [vmem:[%s11997_s7] sm:$0x7] }
  0x95   : > { %8039 = vmatprep.subr.bf16.mxu0 %v10454_v28  ;;  %v784_v28 = vrot.slane %v775_v40, %v10470_v10 }
  0x96   : > { %8037 = vmatpush3.bf16.msra.mxu1 %v10444_v53 }
  0x97   : > { %8070 = vmatprep.subr.bf16.mxu1 %v12012_v18  ;;  %v558_v18 = vrot.slane %v553_v3, %v10461_v9  ;;  %v10478_v0 = vadd.f32 %v784_v28, %v562_v44 }
  0x99   : > { %12225 = vst [vmem:[#allocation59_spill] sm:$0xff] %v10478_v0 }
 0x12c   : > { %v723_v29 = vpop.f32.mrb[0].mxu1 }
 0x12d   : > { %v6994_v36 = vpop.f32.mrb[1].mxu1 }
 0x12e   : > { %v780_v36 = vrot.slane %v775_v40, %v10461_v9 }
 0x130   : > { %v10476_v53 = vadd.f32 %v780_v36, %v558_v18  ;;  %v10483_v18 = vsub.s32 2, %v10458_v12 }
 0x132   : > { %v10486_v28 = vrot.slane %v775_v40, %v10483_v18 }
 0x14a   : > { %v858_v17 = vpop.f32.mrb[0].mxu0 }
 0x14b   : > { %v9369_v52 = vadd.f32 %v10476_v53, %v858_v17  ;;  %v860_v33 = vpop.f32.mrb[1].mxu0  ;;  %v10489_v17 = vrot.slane %v553_v3, %v10483_v18  ;;  %v1168_v3 = vld [vmem:[%s12000_s10] sm:$0xff] }
 0x14c   : > { %v9371_v11 = vadd.f32 %v10478_v0, %v860_v33  ;;  %v929_v51 = vpop.f32.mrb[2].mxu1 }
 0x14d   : > { %v6475_v20 = vmul.f32 -1.442695, %v9369_v52  ;;  %v7029_v42 = vpop.f32.mrb[3].mxu1 }
 0x14e   : > { %v6476_v59 = vmul.f32 -1.442695, %v9371_v11  ;;  %v724_v42 = vadd.f32 %v723_v29, %v10489_v17  ;;  %v1171_v29 = vld [vmem:[%s12000_s10 + $0x18] sm:$0xff] }
 0x14f   : > { %9521 = vpow2.f32 %v6475_v20  ;;  %v930_v20 = vadd.f32 %v929_v51, %v10486_v28 }
 0x150   : > { %9523 = vpow2.f32 %v6476_v59 }
 0x159   : > { %v9522_v9 = vpop.eup %9521 }
 0x15a   : > { %v937_v32 = vadd.f32 1.0, %v9522_v9  ;;  %v9524_v36 = vpop.eup %9523 }
 0x15b   : > { %v944_v52 = vadd.f32 1.0, %v9524_v36  ;;  %v1170_v36 = vld [vmem:[%s12000_s10 + $0x10] sm:$0xff] }
 0x15c   : > { %9525 = vrcp.f32 %v937_v32 }
 0x15d   : > { %9527 = vrcp.f32 %v944_v52  ;;  %v1173_v52 = vld [vmem:[%s12000_s10 + $0x28] sm:$0xff] }
 0x166   : > { %v9526_v11 = vpop.eup %9525 }
 0x167   : > { %v947_v59 = vmul.f32 %v9526_v11, %v930_v20  ;;  %v9528_v32 = vpop.eup %9527  ;;  %v10507_v20 = vpop.permute.xlu0 %957 }
 0x168   : > { %v950_v33 = vsub.f32 1.0, %v9528_v32  ;;  %v952_v40 = vmul.f32 %v9528_v32, %v10202_v1  ;;  %12226 = vst [vmem:[#allocation60_spill] sm:$0xff] %v10507_v20 }
 0x169   : > { %v948_v9 = vadd.f32 %v947_v59, %v724_v42  ;;  %v10516_v42 = vpack.c.bf16 %v1171_v29, %v1168_v3  ;;  %v10518_v59 = vpack.c.bf16 %v1173_v52, %v1170_v36  ;;  %v1179_v3 = vld [vmem:[%s12000_s10 + $0x58] sm:$0xff]  ;;  %v1180_v52 = vld [vmem:[%s12000_s10 + $0x60] sm:$0xff] }
 0x16b   : > { %9529 = vtanh.f32 %v948_v9  ;;  %12227 = vst [vmem:[#allocation61_spill] sm:$0xff] %v10516_v42  ;;  %12228 = vst [vmem:[#allocation62_spill] sm:$0xff] %v10518_v59  ;;  %v1174_v9 = vld [vmem:[%s12000_s10 + $0x30] sm:$0xff] }
 0x175   : > { %v9530_v44 = vpop.eup %9529 }
 0x176   : > { %v951_v12 = vmul.f32 %v9530_v44, %v950_v33  ;;  %v1177_v44 = vld [vmem:[%s12000_s10 + $0x48] sm:$0xff] }
 0x177   : > { %v10547_v29 = vpack.c.bf16 %v1177_v44, %v1174_v9  ;;  %v1182_v9 = vld [vmem:[%s12000_s10 + $0x70] sm:$0xff]  ;;  %v1185_v44 = vld [vmem:[%s12000_s10 + $0x88] sm:$0xff] }
 0x178   : > { %v953_v0 = vadd.f32 %v952_v40, %v951_v12  ;;  %v1175_v12 = vld [vmem:[%s12000_s10 + $0x38] sm:$0xff]  ;;  %v1176_v40 = vld [vmem:[%s12000_s10 + $0x40] sm:$0xff] }
 0x179   : > { %12230 = vst [vmem:[#allocation64_spill] sm:$0xff] %v10547_v29  ;;  %v10549_v36 = vpack.c.bf16 %v1179_v3, %v1176_v40  ;;  %v1187_v40 = vld [vmem:[%s12000_s10 + $0x98] sm:$0xff]  ;;  %v1190_v3 = vld [vmem:[%s12000_s10 + $0xb0] sm:$0xff] }
 0x17a   : > { %v954_v51 = vsub.f32 %v953_v0, %v10202_v1  ;;  %v1178_v0 = vld [vmem:[%s12000_s10 + $0x50] sm:$0xff] }
 0x17b   : > { %v10526_v33 = vpack.c.bf16 %v1178_v0, %v1175_v12  ;;  %12231 = vst [vmem:[#allocation65_spill] sm:$0xff] %v10549_v36  ;;  %v12232_v12 = vmov 0.0|0.0  }
 0x17c   : > { %v960_v11 = vmul.f32 %v10507_v20, %v954_v51  ;;  %v1181_v51 = vld [vmem:[%s12000_s10 + $0x68] sm:$0xff]  ;;  %v10580_v20 = vpack.c.bf16 %v1185_v44, %v1182_v9  ;;  %v1196_v44 = vld [vmem:[%s12000_s10 + $0xe0] sm:$0xff] }
 0x17d   : > { %12229 = vst [vmem:[#allocation63_spill] sm:$0xff] %v10526_v33  ;;  %v1193_v9 = vld [vmem:[%s12000_s10 + $0xc8] sm:$0xff] }
 0x17e   : > { %v10524_v32 = vadd.f32 %v960_v11, %v10202_v1  ;;  %v1184_v1 = vld [vmem:[%s12000_s10 + $0x80] sm:$0xff]  ;;  %v1183_v11 = vld [vmem:[%s12000_s10 + $0x78] sm:$0xff]  ;;  %12236 = vst [vmem:[#allocation68_spill] sm:$0xff] %v10580_v20 }
 0x17f   : > { %v10556_v0 = vpack.c.bf16 %v1184_v1, %v1181_v51  ;;  %v12234_v51 = vmov 0.0   ;;  %v10578_v1 = vpack.c.bf16 %v1183_v11, %v1180_v52  ;;  %v1188_v52 = vld [vmem:[%s12000_s10 + $0xa0] sm:$0xff]  ;;  %v1191_v11 = vld [vmem:[%s12000_s10 + $0xb8] sm:$0xff] }
 0x180   : > { %1092 = vmatmul.mubr.f32.vlgmr.msra.gmra.mrb[2].mxu0 %v10524_v32  ;;  %7063 = vmatmul.mubr.f32.vlgmr.msra.gmra.mrb[4].mxu1 %v10524_v32 }
 0x181   : > { %8041 = vmatpush1.bf16.msra.mxu0 %v10516_v42  ;;  %8072 = vmatpush3.bf16.msra.mxu1 %v10518_v59  ;;  %12233 = vst [vmem:[#allocation66_spill] sm:$0xff] %v10556_v0  ;;  %12235 = vst [vmem:[#allocation67_spill] sm:$0xff] %v10578_v1  ;;  %v10587_v59 = vpack.c.bf16 %v1190_v3, %v1187_v40  ;;  %v10608_v3 = vpack.c.bf16 %v1191_v11, %v1188_v52  ;;  %v1199_v52 = vld [vmem:[%s12000_s10 + $0xf8] sm:$0xff]  ;;  %v1202_v11 = vld [vmem:[%s12000_s10 + $0x110] sm:$0xff] }
 0x182   : > { %8043 = vmatprep.subr.bf16.mxu0 %v10526_v33  ;;  %8073 = vmatprep.subr.bf16.mxu1 %v12232_v12  ;;  %v1186_v33 = vld [vmem:[%s12000_s10 + $0x90] sm:$0xff]  ;;  %v10723_v42 = vld [vmem:[#allocation2 + $0x4] sm:$0xf] }
 0x183   : > { %1297 = vmatprep.mubr.f32.mxu0 %v12234_v51  ;;  %7097 = vmatprep.mubr.msk.f32.mxu1 %vm9753_vm1, %v12234_v51  ;;  %12237 = vst [vmem:[#allocation69_spill] sm:$0xff] %v10587_v59  ;;  %12239 = vst [vmem:[#allocation71_spill] sm:$0xff] %v10608_v3 }
 0x185   : > { %8045 = vmatpush1.bf16.msra.mxu0 %v10547_v29  ;;  %8075 = vmatpush3.bf16.msra.mxu1 %v10549_v36  ;;  %v1189_v29 = vld [vmem:[%s12000_s10 + $0xa8] sm:$0xff]  ;;  %v10615_v36 = vpack.c.bf16 %v1196_v44, %v1193_v9 }
 0x186   : > { %8047 = vmatprep.subr.bf16.mxu0 %v10556_v0  ;;  %8076 = vmatprep.subr.bf16.mxu1 %v12232_v12  ;;  %v10606_v40 = vpack.c.bf16 %v1189_v29, %v1186_v33  ;;  %v1192_v0 = vld [vmem:[%s12000_s10 + $0xc0] sm:$0xff]  ;;  %v1194_v33 = vld [vmem:[%s12000_s10 + $0xd0] sm:$0xff]  ;;  %v1197_v29 = vld [vmem:[%s12000_s10 + $0xe8] sm:$0xff] }
 0x187   : > { %12240 = vst [vmem:[#allocation72_spill] sm:$0xff] %v10615_v36  ;;  %v10636_v44 = vpack.c.bf16 %v1197_v29, %v1194_v33  ;;  %v1205_v33 = vld [vmem:[%s12000_s10 + $0x128] sm:$0xff]  ;;  %v1208_v29 = vld [vmem:[%s12000_s10 + $0x140] sm:$0xff] }
 0x188   : > { %12238 = vst [vmem:[#allocation70_spill] sm:$0xff] %v10606_v40 }
 0x189   : > { %8049 = vmatpush1.bf16.msra.mxu0 %v10578_v1  ;;  %8078 = vmatpush3.bf16.msra.mxu1 %v10580_v20  ;;  %v1195_v1 = vld [vmem:[%s12000_s10 + $0xd8] sm:$0xff]  ;;  %12242 = vst [vmem:[#allocation74_spill] sm:$0xff] %v10636_v44  ;;  %v10643_v20 = vpack.c.bf16 %v1202_v11, %v1199_v52 }
 0x18a   : > { %8051 = vmatprep.subr.bf16.mxu0 %v10587_v59  ;;  %8079 = vmatprep.subr.bf16.mxu1 %v12232_v12  ;;  %v10634_v9 = vpack.c.bf16 %v1195_v1, %v1192_v0  ;;  %v1198_v59 = vld [vmem:[%s12000_s10 + $0xf0] sm:$0xff]  ;;  %v1200_v0 = vld [vmem:[%s12000_s10 + $0x100] sm:$0xff]  ;;  %v1203_v1 = vld [vmem:[%s12000_s10 + $0x118] sm:$0xff] }
 0x18b   : > { %12243 = vst [vmem:[#allocation75_spill] sm:$0xff] %v10643_v20  ;;  %v10664_v11 = vpack.c.bf16 %v1203_v1, %v1200_v0  ;;  %v1211_v0 = vld [vmem:[%s12000_s10 + $0x158] sm:$0xff]  ;;  %v1214_v1 = vld [vmem:[%s12000_s10 + $0x170] sm:$0xff] }
 0x18c   : > { %12241 = vst [vmem:[#allocation73_spill] sm:$0xff] %v10634_v9 }
 0x18d   : > { %8053 = vmatpush1.bf16.msra.mxu0 %v10606_v40  ;;  %8081 = vmatpush3.bf16.msra.mxu1 %v10608_v3  ;;  %v1201_v40 = vld [vmem:[%s12000_s10 + $0x108] sm:$0xff]  ;;  %12245 = vst [vmem:[#allocation77_spill] sm:$0xff] %v10664_v11  ;;  %v10671_v3 = vpack.c.bf16 %v1208_v29, %v1205_v33 }
 0x18e   : > { %8055 = vmatprep.subr.bf16.mxu0 %v10615_v36  ;;  %8082 = vmatprep.subr.bf16.mxu1 %v12232_v12  ;;  %v10662_v52 = vpack.c.bf16 %v1201_v40, %v1198_v59  ;;  %v1204_v36 = vld [vmem:[%s12000_s10 + $0x120] sm:$0xff]  ;;  %v1206_v59 = vld [vmem:[%s12000_s10 + $0x130] sm:$0xff]  ;;  %v1209_v40 = vld [vmem:[%s12000_s10 + $0x148] sm:$0xff] }
 0x18f   : > { %12246 = vst [vmem:[#allocation78_spill] sm:$0xff] %v10671_v3  ;;  %v10692_v29 = vpack.c.bf16 %v1209_v40, %v1206_v59  ;;  %v1405_v59 = vld [vmem:[%s9890_s21 + $0x9] sm:$0x1] }
 0x190   : > { %12244 = vst [vmem:[#allocation76_spill] sm:$0xff] %v10662_v52 }
 0x191   : > { %8057 = vmatpush1.bf16.msra.mxu0 %v10634_v9  ;;  %8084 = vmatpush3.bf16.msra.mxu1 %v10636_v44  ;;  %v1207_v9 = vld [vmem:[%s12000_s10 + $0x138] sm:$0xff]  ;;  %12248 = vst [vmem:[#allocation80_spill] sm:$0xff] %v10692_v29  ;;  %v10699_v44 = vpack.c.bf16 %v1214_v1, %v1211_v0 }
 0x192   : > { %8059 = vmatprep.subr.bf16.mxu0 %v10643_v20  ;;  %8085 = vmatprep.subr.bf16.mxu1 %v12232_v12  ;;  %v10690_v33 = vpack.c.bf16 %v1207_v9, %v1204_v36  ;;  %v1210_v20 = vld [vmem:[%s12000_s10 + $0x150] sm:$0xff]  ;;  %v1212_v36 = vld [vmem:[%s12000_s10 + $0x160] sm:$0xff]  ;;  %v1215_v9 = vld [vmem:[%s12000_s10 + $0x178] sm:$0xff] }
 0x193   : > { %12249 = vst [vmem:[#allocation81_spill] sm:$0xff] %v10699_v44  ;;  %v10715_v0 = vpack.c.bf16 %v1215_v9, %v1212_v36  ;;  %v1406_v1 = vld [vmem:[%s9890_s21 + $0x11] sm:$0x1] }
 0x194   : > { %12247 = vst [vmem:[#allocation79_spill] sm:$0xff] %v10690_v33 }
 0x195   : > { %8061 = vmatpush1.bf16.msra.mxu0 %v10662_v52  ;;  %8087 = vmatpush3.bf16.msra.mxu1 %v10664_v11  ;;  %v1213_v11 = vld [vmem:[%s12000_s10 + $0x168] sm:$0xff] }
 0x196   : > { %8063 = vmatprep.subr.bf16.mxu0 %v10671_v3  ;;  %8088 = vmatprep.subr.bf16.mxu1 %v12232_v12  ;;  %v10713_v40 = vpack.c.bf16 %v1213_v11, %v1210_v20  ;;  %v1412_v3 = vrot.slane %v1405_v59, 7  ;;  %v1404_v52 = vld [vmem:[%s9890_s21 + $0x1] sm:$0x1]  ;;  %v1407_v20 = vld [vmem:[%s9890_s21 + $0x19] sm:$0x1]  ;;  %v1414_v11 = vrot.slane %v1406_v1, 6 }
 0x197   : > { %v1416_v9 = vrot.slane %v1407_v20, 5  ;;  %v12251_v1 = vld [vmem:[#allocation45_spill] sm:$0xff]  ;;  %v12252_v20 = vld [vmem:[#allocation46_spill] sm:$0xff] }
 0x198   : > { %v1413_v36 = vsel %vm575_vm0, %v1412_v3, %v1404_v52  ;;  %v12250_v52 = vld [vmem:[#allocation44_spill] sm:$0xff] }
 0x199   : > { %8065 = vmatpush1.bf16.msra.mxu0 %v10690_v33  ;;  %8090 = vmatpush3.bf16.msra.mxu1 %v10692_v29  ;;  %v1415_v59 = vsel %vm578_vm2, %v1414_v11, %v1413_v36  ;;  %v12253_v11 = vld [vmem:[#allocation47_spill] sm:$0xff]  ;;  %v12254_v36 = vld [vmem:[#allocation48_spill] sm:$0xff] }
 0x19a   : > { %8067 = vmatprep.subr.bf16.mxu0 %v10699_v44  ;;  %8091 = vmatprep.subr.bf16.mxu1 %v12232_v12  ;;  %v1417_v3 = vsel %vm581_vm3, %v1416_v9, %v1415_v59  ;;  %v12255_v9 = vld [vmem:[#allocation49_spill] sm:$0xff]  ;;  %v12256_v59 = vld [vmem:[#allocation50_spill] sm:$0xff] }
 0x19d   : > { %8069 = vmatpush1.bf16.msra.mxu0 %v10713_v40  ;;  %8093 = vmatpush3.bf16.msra.mxu1 %v10715_v0 }
 0x19e   : > { %8095 = vmatprep.subr.bf16.mxu0 %v9914_v8  ;;  %8102 = vmatprep.subr.bf16.mxu1 %v12232_v12 }
 0x1a0   : > { %1298 = vmatmul.mubr.f32.vlgmr.msra.gmra.mrb[2].mxu0 %v10723_v42  ;;  %7098 = vmatmul.mubr.f32.vlgmr.msra.gmra.mrb[6].mxu1 %v10723_v42 }
 0x1a1   : > { %8097 = vmatpush1.bf16.msra.mxu0 %v9926_v13  ;;  %8104 = vmatpush3.bf16.msra.mxu1 %v9999_v46 }
 0x1a2   : > { %8099 = vmatprep.subr.bf16.mxu0 %v9928_v14  ;;  %8105 = vmatprep.subr.bf16.mxu1 %v12232_v12 }
 0x1a3   : > { %1484 = vmatprep.mubr.f32.mxu0 %v12234_v51  ;;  %7108 = vmatprep.mubr.msk.f32.mxu1 %vm9753_vm1, %v12234_v51 }
 0x1a5   : > { %8101 = vmatpush1.bf16.msra.mxu0 %v9949_v22  ;;  %8107 = vmatpush3.bf16.msra.mxu1 %v10024_v54 }
 0x1a6   : > { %8109 = vmatprep.subr.bf16.mxu0 %v9954_v27  ;;  %8140 = vmatprep.subr.bf16.mxu1 %v12232_v12 }
 0x1a8   : > { %6480 = vmatmul.mubr.msk.f32.vlgmr.msra.gmra.mrb[4].mxu0 %vm583_vm4, %v1417_v3  ;;  %7109 = vmatmul.mubr.msk.f32.vlgmr.msra.gmra.mrb[8].mxu1 %vm583_vm4, %v1417_v3  ;;  %v12257_v3 = vld [vmem:[#allocation51_spill] sm:$0xff] }
 0x1a9   : > { %8111 = vmatpush1.bf16.msra.mxu0 %v9972_v37  ;;  %8142 = vmatpush3.bf16.msra.mxu1 %v10053_v63 }
 0x1aa   : > { %8113 = vmatprep.subr.bf16.mxu0 %v9975_v38  ;;  %8143 = vmatprep.subr.bf16.mxu1 %v12232_v12 }
 0x1ab   : > { %1625 = vmatprep.mubr.f32.mxu0 %v12234_v51  ;;  %7143 = vmatprep.mubr.msk.f32.mxu1 %vm9753_vm1, %v12234_v51 }
 0x1ad   : > { %8115 = vmatpush1.bf16.msra.mxu0 %v9997_v45  ;;  %8145 = vmatpush3.bf16.msra.mxu1 %v10089_v15 }
 0x1ae   : > { %8117 = vmatprep.subr.bf16.mxu0 %v10006_v48  ;;  %8146 = vmatprep.subr.bf16.mxu1 %v12232_v12 }
 0x1b1   : > { %8119 = vmatpush1.bf16.msra.mxu0 %v10034_v57  ;;  %8148 = vmatpush3.bf16.msra.mxu1 %v10124_v30 }
 0x1b2   : > { %8121 = vmatprep.subr.bf16.mxu0 %v10038_v58  ;;  %8149 = vmatprep.subr.bf16.mxu1 %v12232_v12 }
 0x1b5   : > { %8123 = vmatpush1.bf16.msra.mxu0 %v10064_v4  ;;  %8151 = vmatpush3.bf16.msra.mxu1 %v10154_v43 }
 0x1b6   : > { %8125 = vmatprep.subr.bf16.mxu0 %v10068_v5  ;;  %8152 = vmatprep.subr.bf16.mxu1 %v12232_v12 }
 0x1b9   : > { %8127 = vmatpush1.bf16.msra.mxu0 %v10104_v21  ;;  %8154 = vmatpush3.bf16.msra.mxu1 %v10178_v55 }
 0x1ba   : > { %8129 = vmatprep.subr.bf16.mxu0 %v10108_v23  ;;  %8155 = vmatprep.subr.bf16.mxu1 %v12232_v12 }
 0x1bd   : > { %8131 = vmatpush1.bf16.msra.mxu0 %v10135_v34  ;;  %8157 = vmatpush3.bf16.msra.mxu1 %v10192_v61 }
 0x1be   : > { %8133 = vmatprep.subr.bf16.mxu0 %v10138_v35  ;;  %8158 = vmatprep.subr.bf16.mxu1 %v12232_v12 }
 0x1c1   : > { %8135 = vmatpush1.bf16.msra.mxu0 %v10165_v49  ;;  %8160 = vmatpush3.bf16.msra.mxu1 %v10205_v2 }
 0x1c2   : > { %8137 = vmatprep.subr.bf16.mxu0 %v10168_v50  ;;  %8161 = vmatprep.subr.bf16.mxu1 %v12232_v12 }
 0x1c5   : > { %8139 = vmatpush1.bf16.msra.mxu0 %v10188_v60  ;;  %8163 = vmatpush3.bf16.msra.mxu1 %v10217_v7 }
 0x1c6   : > { %8165 = vmatprep.subr.bf16.mxu0 %v10231_v16  ;;  %8196 = vmatprep.subr.bf16.mxu1 %v12232_v12 }
 0x1c8   : > { %1626 = vmatmul.mubr.f32.vlgmr.msra.gmra.mrb[4].mxu0 %v10524_v32  ;;  %7144 = vmatmul.mubr.f32.vlgmr.msra.gmra.mrb[10].mxu1 %v10524_v32 }
 0x1c9   : > { %8167 = vmatpush1.bf16.msra.mxu0 %v10242_v24  ;;  %8198 = vmatpush3.bf16.msra.mxu1 %v10248_v26 }
 0x1ca   : > { %8169 = vmatprep.subr.bf16.mxu0 %v10258_v31  ;;  %8199 = vmatprep.subr.bf16.mxu1 %v12232_v12 }
 0x1cb   : > { %1795 = vmatprep.mubr.f32.mxu0 %v12234_v51  ;;  %7178 = vmatprep.mubr.msk.f32.mxu1 %vm9753_vm1, %v12234_v51 }
 0x1cd   : > { %8171 = vmatpush1.bf16.msra.mxu0 %v10270_v39  ;;  %8201 = vmatpush3.bf16.msra.mxu1 %v10276_v41 }
 0x1ce   : > { %8173 = vmatprep.subr.bf16.mxu0 %v10286_v47  ;;  %8202 = vmatprep.subr.bf16.mxu1 %v12232_v12 }
 0x1d1   : > { %8175 = vmatpush1.bf16.msra.mxu0 %v10298_v56  ;;  %8204 = vmatpush3.bf16.msra.mxu1 %v10304_v62 }
 0x1d2   : > { %8177 = vmatprep.subr.bf16.mxu0 %v10314_v6  ;;  %8205 = vmatprep.subr.bf16.mxu1 %v12232_v12 }
 0x1d5   : > { %8179 = vmatpush1.bf16.msra.mxu0 %v10326_v19  ;;  %8207 = vmatpush3.bf16.msra.mxu1 %v10332_v25  ;;  %v12259_v25 = vld [vmem:[#allocation53_spill] sm:$0xff] }
 0x1d6   : > { %8181 = vmatprep.subr.bf16.mxu0 %v12250_v52  ;;  %8208 = vmatprep.subr.bf16.mxu1 %v12232_v12  ;;  %v12258_v52 = vld [vmem:[#allocation52_spill] sm:$0xff] }
 0x1d9   : > { %8183 = vmatpush1.bf16.msra.mxu0 %v12251_v1  ;;  %8210 = vmatpush3.bf16.msra.mxu1 %v12252_v20  ;;  %v12260_v20 = vld [vmem:[#allocation54_spill] sm:$0xff]  ;;  %v12262_v1 = vld [vmem:[#allocation56_spill] sm:$0xff] }
 0x1da   : > { %8185 = vmatprep.subr.bf16.mxu0 %v12253_v11  ;;  %8211 = vmatprep.subr.bf16.mxu1 %v12232_v12  ;;  %v12261_v11 = vld [vmem:[#allocation55_spill] sm:$0xff] }
 0x1dd   : > { %8187 = vmatpush1.bf16.msra.mxu0 %v12254_v36  ;;  %8213 = vmatpush3.bf16.msra.mxu1 %v12255_v9 }
 0x1de   : > { %8189 = vmatprep.subr.bf16.mxu0 %v12256_v59  ;;  %8214 = vmatprep.subr.bf16.mxu1 %v12232_v12 }
 0x1e1   : > { %8191 = vmatpush1.bf16.msra.mxu0 %v12257_v3  ;;  %8216 = vmatpush3.bf16.msra.mxu1 %v12258_v52  ;;  %v1216_v3 = vld [vmem:[%s12001_s11] sm:$0x7] }
 0x1e2   : > { %8193 = vmatprep.subr.bf16.mxu0 %v12259_v25  ;;  %8217 = vmatprep.subr.bf16.mxu1 %v12232_v12  ;;  %v1010_v25 = vld [vmem:[%s11999_s9] sm:$0x7] }
 0x1e3   : > { %v12263_v52 = vld [vmem:[#allocation58_spill] sm:$0xff] }
 0x1e4   : > { %v1015_v36 = vrot.slane %v1010_v25, %v12263_v52 }
 0x1e5   : > { %8195 = vmatpush1.bf16.msra.mxu0 %v12260_v20  ;;  %8219 = vmatpush3.bf16.msra.mxu1 %v12261_v11  ;;  %v1221_v20 = vrot.slane %v1216_v3, %v12263_v52  ;;  %v1019_v11 = vrot.slane %v1010_v25, %v10470_v10 }
 0x1e6   : > { %8221 = vmatprep.subr.bf16.mxu0 %v12262_v1  ;;  %8252 = vmatprep.subr.bf16.mxu1 %v12232_v12  ;;  %v1225_v1 = vrot.slane %v1216_v3, %v10470_v10 }
 0x1e7   : > { %v10828_v19 = vadd.f32 %v1221_v20, %v1015_v36  ;;  %v2039_v36 = vstv %s2038_s4 }
 0x1e9   : > { %12264 = vst [vmem:[#allocation82_spill] sm:$0xff] %v10828_v19 }
 0x253   : > { %v1164_v9 = vpop.f32.mrb[4].mxu1 }
 0x254   : > { %v7064_v59 = vpop.f32.mrb[5].mxu1 }
 0x255   : > { %v10830_v59 = vadd.f32 %v1225_v1, %v1019_v11  ;;  %v10835_v1 = vrot.slane %v1216_v3, %v10483_v18  ;;  %v2678_v3 = vstv %s2677_s0 }
 0x257   : > { %12265 = vst [vmem:[#allocation83_spill] sm:$0xff] %v10830_v59  ;;  %12266 = vst [vmem:[#allocation84_spill] sm:$0xff] %v10835_v1 }
 0x273   : > { %v1299_v6 = vpop.f32.mrb[2].mxu0  ;;  %v1370_v62 = vpop.f32.mrb[6].mxu1 }
 0x274   : > { %v9373_v56 = vadd.f32 %v10828_v19, %v1299_v6  ;;  %v1301_v47 = vpop.f32.mrb[3].mxu0  ;;  %v7099_v41 = vpop.f32.mrb[7].mxu1 }
 0x275   : > { %v9375_v31 = vadd.f32 %v10830_v59, %v1301_v47  ;;  %v10838_v41 = vrot.slane %v1010_v25, %v10483_v18  ;;  %v12268_v18 = vld [vmem:[#allocation17_spill] sm:$0xff] }
 0x276   : > { %v6477_v39 = vmul.f32 -1.442695, %v9373_v56  ;;  %vm2040_vm9 = vcmp.lt.s32.totalorder %v2039_v36, %v12268_v18  ;;  %vm2679_vm10 = vcmp.lt.s32.totalorder %v2678_v3, %v12268_v18  ;;  %v12269_v36 = vld [vmem:[#allocation59_spill] sm:$0xff]  ;;  %v5234_v3 = vstv %s5233_s18 }
 0x277   : > { %v6478_v26 = vmul.f32 -1.442695, %v9375_v31  ;;  %12267 = vst [vmem:[#allocation85_spill] sm:$0xff] %v10838_v41  ;;  %vm5235_vm12 = vcmp.lt.s32.totalorder %v5234_v3, %v12268_v18 }
 0x278   : > { %9531 = vpow2.f32 %v6477_v39  ;;  %v1371_v39 = vadd.f32 %v1370_v62, %v10835_v1 }
 0x279   : > { %9533 = vpow2.f32 %v6478_v26 }
 0x27b   : > { %v1557_v52 = vpop.f32.mrb[8].mxu1 }
 0x27c   : > { %v7110_v24 = vpop.f32.mrb[9].mxu1 }
 0x27d   : > { %v1165_v24 = vadd.f32 %v1164_v9, %v10838_v41 }
 0x282   : > { %v9532_v10 = vpop.eup %9531 }
 0x283   : > { %v1378_v20 = vadd.f32 1.0, %v9532_v10  ;;  %v9534_v6 = vpop.eup %9533 }
 0x284   : > { %v1385_v56 = vadd.f32 1.0, %v9534_v6  ;;  %v6486_v6 = vsel %vm2040_vm9, 1.0, %v12234_v51 }
 0x285   : > { %9535 = vrcp.f32 %v1378_v20  ;;  %2365 = vperm.xlu1 %9520, %v6486_v6  }
 0x286   : > { %9537 = vrcp.f32 %v1385_v56  ;;  %v3956_v56 = vstv %s3955_s30 }
 0x287   : > { %vm3957_vm11 = vcmp.lt.s32.totalorder %v3956_v56, %v12268_v18 }
 0x28f   : > { %v9536_v31 = vpop.eup %9535 }
 0x290   : > { %v1388_v26 = vmul.f32 %v9536_v31, %v1371_v39  ;;  %v9538_v11 = vpop.eup %9537 }
 0x291   : > { %v1391_v39 = vsub.f32 1.0, %v9538_v11 }
 0x292   : > { %v1389_v47 = vadd.f32 %v1388_v26, %v1165_v24  ;;  %v6493_v26 = vsel %vm2679_vm10, 1.0, %v12234_v51 }
 0x293   : > { %3004 = vperm.xlu1 %9520, %v6493_v26  }
 0x294   : > { %9539 = vtanh.f32 %v1389_v47  ;;  %v1393_v47 = vmul.f32 %v9538_v11, %v10723_v42 }
 0x29b   : > { %v1627_v10 = vpop.f32.mrb[4].mxu0  ;;  %v1698_v25 = vpop.f32.mrb[10].mxu1 }
 0x29c   : > { %v9377_v62 = vadd.f32 %v10476_v53, %v1627_v10  ;;  %v1629_v9 = vpop.f32.mrb[5].mxu0  ;;  %v7145_v20 = vpop.f32.mrb[11].mxu1 }
 0x29d   : > { %v9379_v1 = vadd.f32 %v12269_v36, %v1629_v9  ;;  %v6507_v20 = vsel %vm3957_vm11, 1.0, %v12234_v51 }
 0x29e   : > { %v9540_v31 = vpop.eup %9539  ;;  %v6482_v24 = vmul.f32 -1.442695, %v9377_v62  ;;  %4282 = vperm.xlu1 %9520, %v6507_v20   ;;  %v6521_v62 = vsel %vm5235_vm12, 1.0, %v12234_v51 }
 0x29f   : > { %v1392_v41 = vmul.f32 %v9540_v31, %v1391_v39  ;;  %v6483_v6 = vmul.f32 -1.442695, %v9379_v1  ;;  %v1699_v31 = vadd.f32 %v1698_v25, %v10486_v28 }
 0x2a0   : > { %9541 = vpow2.f32 %v6482_v24  ;;  %v1558_v24 = vadd.f32 %v1557_v52, %v10489_v17  ;;  %v12271_v52 = vld [vmem:[#allocation61_spill] sm:$0xff] }
 0x2a1   : > { %v10854_v10 = vadd.f32 %v1393_v47, %v1392_v41  ;;  %9543 = vpow2.f32 %v6483_v6 }
 0x2a2   : > { %5560 = vperm.xlu1 %9520, %v6521_v62  }
 0x2aa   : > { %v9542_v11 = vpop.eup %9541 }
 0x2ab   : > { %v1706_v39 = vadd.f32 1.0, %v9542_v11  ;;  %v9544_v9 = vpop.eup %9543 }
 0x2ac   : > { %v1713_v56 = vadd.f32 1.0, %v9544_v9 }
 0x2ad   : > { %9545 = vrcp.f32 %v1706_v39  ;;  %v10863_v39 = vpop.permute.xlu0 %1726 }
 0x2ae   : > { %9547 = vrcp.f32 %v1713_v56  ;;  %12270 = vst [vmem:[#allocation17_spill] sm:$0xff] %v10863_v39  ;;  %v12272_v56 = vld [vmem:[#allocation62_spill] sm:$0xff] }
 0x2b7   : > { %v9546_v41 = vpop.eup %9545 }
 0x2b8   : > { %v1716_v26 = vmul.f32 %v9546_v41, %v1699_v31  ;;  %v9548_v18 = vpop.eup %9547  ;;  %v12273_v31 = vld [vmem:[#allocation63_spill] sm:$0xff]  ;;  %v12274_v41 = vld [vmem:[#allocation64_spill] sm:$0xff] }
 0x2b9   : > { %v1719_v47 = vsub.f32 1.0, %v9548_v18  ;;  %v1721_v6 = vmul.f32 %v9548_v18, %v10524_v32  ;;  %v12279_v18 = vld [vmem:[#allocation69_spill] sm:$0xff] }
 0x2ba   : > { %v1717_v1 = vadd.f32 %v1716_v26, %v1558_v24  ;;  %v12276_v24 = vld [vmem:[#allocation66_spill] sm:$0xff]  ;;  %v12277_v26 = vld [vmem:[#allocation67_spill] sm:$0xff] }
 0x2bc   : > { %9549 = vtanh.f32 %v1717_v1  ;;  %v12278_v1 = vld [vmem:[#allocation68_spill] sm:$0xff] }
 0x2c6   : > { %v9550_v3 = vpop.eup %9549 }
 0x2c7   : > { %v1720_v20 = vmul.f32 %v9550_v3, %v1719_v47  ;;  %v12280_v47 = vld [vmem:[#allocation70_spill] sm:$0xff]  ;;  %v12281_v3 = vld [vmem:[#allocation71_spill] sm:$0xff] }
 0x2c9   : > { %v1722_v62 = vadd.f32 %v1721_v6, %v1720_v20  ;;  %v12282_v20 = vld [vmem:[#allocation72_spill] sm:$0xff]  ;;  %v12283_v6 = vld [vmem:[#allocation73_spill] sm:$0xff] }
 0x2cb   : > { %v1723_v11 = vsub.f32 %v1722_v62, %v10524_v32  ;;  %v12284_v62 = vld [vmem:[#allocation74_spill] sm:$0xff] }
 0x2cd   : > { %v1729_v25 = vmul.f32 %v10863_v39, %v1723_v11  ;;  %v12285_v11 = vld [vmem:[#allocation75_spill] sm:$0xff]  ;;  %v12287_v39 = vld [vmem:[#allocation77_spill] sm:$0xff] }
 0x2cf   : > { %v10867_v9 = vadd.f32 %v1729_v25, %v10524_v32  ;;  %v12275_v32 = vld [vmem:[#allocation65_spill] sm:$0xff]  ;;  %v12286_v25 = vld [vmem:[#allocation76_spill] sm:$0xff] }
 0x2d1   : > { %1796 = vmatmul.mubr.f32.vlgmr.msra.gmra.mrb[6].mxu0 %v10867_v9  ;;  %7179 = vmatmul.mubr.f32.vlgmr.msra.gmra.mrb[12].mxu1 %v10867_v9 }
 0x2d2   : > { %8223 = vmatpush1.bf16.msra.mxu0 %v12271_v52  ;;  %8254 = vmatpush3.bf16.msra.mxu1 %v12272_v56 }
 0x2d3   : > { %8225 = vmatprep.subr.bf16.mxu0 %v12273_v31  ;;  %8255 = vmatprep.subr.bf16.mxu1 %v12232_v12 }
 0x2d4   : > { %1936 = vmatprep.mubr.f32.mxu0 %v12234_v51  ;;  %7213 = vmatprep.mubr.msk.f32.mxu1 %vm9753_vm1, %v12234_v51 }
 0x2d6   : > { %8227 = vmatpush1.bf16.msra.mxu0 %v12274_v41  ;;  %8257 = vmatpush3.bf16.msra.mxu1 %v12275_v32 }
 0x2d7   : > { %8229 = vmatprep.subr.bf16.mxu0 %v12276_v24  ;;  %8258 = vmatprep.subr.bf16.mxu1 %v12232_v12 }
 0x2da   : > { %8231 = vmatpush1.bf16.msra.mxu0 %v12277_v26  ;;  %8260 = vmatpush3.bf16.msra.mxu1 %v12278_v1 }
 0x2db   : > { %8233 = vmatprep.subr.bf16.mxu0 %v12279_v18  ;;  %8261 = vmatprep.subr.bf16.mxu1 %v12232_v12 }
 0x2de   : > { %8235 = vmatpush1.bf16.msra.mxu0 %v12280_v47  ;;  %8263 = vmatpush3.bf16.msra.mxu1 %v12281_v3  ;;  %v1395_v3 = vsub.f32 %v10854_v10, %v10723_v42  ;;  %v2043_v47 = vld [vmem:[%s9890_s21 + $0x2] sm:$0x1] }
 0x2df   : > { %8237 = vmatprep.subr.bf16.mxu0 %v12282_v20  ;;  %8264 = vmatprep.subr.bf16.mxu1 %v12232_v12  ;;  %v12288_v20 = vld [vmem:[#allocation78_spill] sm:$0xff] }
 0x2e2   : > { %8239 = vmatpush1.bf16.msra.mxu0 %v12283_v6  ;;  %8266 = vmatpush3.bf16.msra.mxu1 %v12284_v62  ;;  %v2044_v6 = vld [vmem:[%s9890_s21 + $0xa] sm:$0x1] }
 0x2e3   : > { %8241 = vmatprep.subr.bf16.mxu0 %v12285_v11  ;;  %8267 = vmatprep.subr.bf16.mxu1 %v12232_v12  ;;  %v2051_v62 = vrot.slane %v2044_v6, 7  ;;  %v12295_v6 = vld [vmem:[#allocation37_spill] sm:$0xff] }
 0x2e6   : > { %8243 = vmatpush1.bf16.msra.mxu0 %v12286_v25  ;;  %8269 = vmatpush3.bf16.msra.mxu1 %v12287_v39  ;;  %v12289_v25 = vld [vmem:[#allocation60_spill] sm:$0xff]  ;;  %v2045_v39 = vld [vmem:[%s9890_s21 + $0x12] sm:$0x1] }
 0x2e7   : > { %8245 = vmatprep.subr.bf16.mxu0 %v12288_v20  ;;  %8270 = vmatprep.subr.bf16.mxu1 %v12232_v12  ;;  %v1396_v11 = vmul.f32 %v1395_v3, %v12289_v25  ;;  %v12301_v25 = vld [vmem:[#allocation43_spill] sm:$0xff] }
 0x2e9   : > { %v10911_v10 = vadd.f32 %v1396_v11, %v10723_v42  ;;  %v12297_v11 = vld [vmem:[#allocation39_spill] sm:$0xff] }
 0x2ea   : > { %8247 = vmatpush1.bf16.msra.mxu0 %v10690_v33  ;;  %8272 = vmatpush3.bf16.msra.mxu1 %v10692_v29  ;;  %v2046_v29 = vld [vmem:[%s9890_s21 + $0x1a] sm:$0x1]  ;;  %v2052_v33 = vsel %vm575_vm0, %v2051_v62, %v2043_v47  ;;  %v12294_v47 = vld [vmem:[#allocation36_spill] sm:$0xff] }
 0x2eb   : > { %8249 = vmatprep.subr.bf16.mxu0 %v10699_v44  ;;  %8273 = vmatprep.subr.bf16.mxu1 %v12232_v12  ;;  %12290 = vst [vmem:[#allocation59_spill] sm:$0xff] %v10911_v10  ;;  %v2053_v44 = vrot.slane %v2045_v39, 6  ;;  %v2055_v3 = vrot.slane %v2046_v29, 5  ;;  %v12293_v29 = vld [vmem:[#allocation35_spill] sm:$0xff]  ;;  %v12296_v62 = vld [vmem:[#allocation38_spill] sm:$0xff] }
 0x2ed   : > { %v2054_v42 = vsel %vm578_vm2, %v2053_v44, %v2052_v33  ;;  %v12291_v44 = vld [vmem:[#allocation33_spill] sm:$0xff]  ;;  %v12292_v33 = vld [vmem:[#allocation34_spill] sm:$0xff] }
 0x2ee   : > { %8251 = vmatpush1.bf16.msra.mxu0 %v10713_v40  ;;  %8275 = vmatpush3.bf16.msra.mxu1 %v10715_v0  ;;  %v2056_v39 = vsel %vm581_vm3, %v2055_v3, %v2054_v42  ;;  %v12298_v3 = vld [vmem:[#allocation40_spill] sm:$0xff]  ;;  %v12299_v42 = vld [vmem:[#allocation41_spill] sm:$0xff] }
 0x2ef   : > { %8277 = vmatprep.subr.bf16.mxu0 %v9914_v8  ;;  %8284 = vmatprep.subr.bf16.mxu1 %v12232_v12 }
 0x2f1   : > { %1937 = vmatmul.mubr.f32.vlgmr.msra.gmra.mrb[6].mxu0 %v10911_v10  ;;  %7214 = vmatmul.mubr.f32.vlgmr.msra.gmra.mrb[14].mxu1 %v10911_v10 }
 0x2f2   : > { %8279 = vmatpush1.bf16.msra.mxu0 %v9926_v13  ;;  %8286 = vmatpush3.bf16.msra.mxu1 %v9999_v46 }
 0x2f3   : > { %8281 = vmatprep.subr.bf16.mxu0 %v9928_v14  ;;  %8287 = vmatprep.subr.bf16.mxu1 %v12232_v12 }
 0x2f4   : > { %2123 = vmatprep.mubr.f32.mxu0 %v12234_v51  ;;  %7224 = vmatprep.mubr.msk.f32.mxu1 %vm9753_vm1, %v12234_v51 }
 0x2f6   : > { %8283 = vmatpush1.bf16.msra.mxu0 %v9949_v22  ;;  %8289 = vmatpush3.bf16.msra.mxu1 %v10024_v54 }
 0x2f7   : > { %8291 = vmatprep.subr.bf16.mxu0 %v9954_v27  ;;  %8322 = vmatprep.subr.bf16.mxu1 %v12232_v12 }
 0x2f9   : > { %6487 = vmatmul.mubr.msk.f32.vlgmr.msra.gmra.mrb[8].mxu0 %vm583_vm4, %v2056_v39  ;;  %7225 = vmatmul.mubr.msk.f32.vlgmr.msra.gmra.mrb[16].mxu1 %vm583_vm4, %v2056_v39  ;;  %v12300_v39 = vld [vmem:[#allocation42_spill] sm:$0xff] }
 0x2fa   : > { %8293 = vmatpush1.bf16.msra.mxu0 %v9972_v37  ;;  %8324 = vmatpush3.bf16.msra.mxu1 %v10053_v63 }
 0x2fb   : > { %8295 = vmatprep.subr.bf16.mxu0 %v9975_v38  ;;  %8325 = vmatprep.subr.bf16.mxu1 %v12232_v12 }
 0x2fc   : > { %2264 = vmatprep.mubr.f32.mxu0 %v12234_v51  ;;  %7259 = vmatprep.mubr.msk.f32.mxu1 %vm9753_vm1, %v12234_v51 }
 0x2fe   : > { %8297 = vmatpush1.bf16.msra.mxu0 %v9997_v45  ;;  %8327 = vmatpush3.bf16.msra.mxu1 %v10089_v15 }
 0x2ff   : > { %8299 = vmatprep.subr.bf16.mxu0 %v10006_v48  ;;  %8328 = vmatprep.subr.bf16.mxu1 %v12232_v12 }
 0x302   : > { %8301 = vmatpush1.bf16.msra.mxu0 %v10034_v57  ;;  %8330 = vmatpush3.bf16.msra.mxu1 %v10124_v30 }
 0x303   : > { %8303 = vmatprep.subr.bf16.mxu0 %v10038_v58  ;;  %8331 = vmatprep.subr.bf16.mxu1 %v12232_v12 }
 0x306   : > { %8305 = vmatpush1.bf16.msra.mxu0 %v10064_v4  ;;  %8333 = vmatpush3.bf16.msra.mxu1 %v10154_v43 }
 0x307   : > { %8307 = vmatprep.subr.bf16.mxu0 %v10068_v5  ;;  %8334 = vmatprep.subr.bf16.mxu1 %v12232_v12 }
 0x30a   : > { %8309 = vmatpush1.bf16.msra.mxu0 %v10104_v21  ;;  %8336 = vmatpush3.bf16.msra.mxu1 %v10178_v55 }
 0x30b   : > { %8311 = vmatprep.subr.bf16.mxu0 %v10108_v23  ;;  %8337 = vmatprep.subr.bf16.mxu1 %v12232_v12 }
 0x30e   : > { %8313 = vmatpush1.bf16.msra.mxu0 %v10135_v34  ;;  %8339 = vmatpush3.bf16.msra.mxu1 %v10192_v61  ;;  %v12316_v61 = vld [vmem:[#allocation85_spill] sm:$0xff] }
 0x30f   : > { %8315 = vmatprep.subr.bf16.mxu0 %v10138_v35  ;;  %8340 = vmatprep.subr.bf16.mxu1 %v12232_v12 }
 0x312   : > { %8317 = vmatpush1.bf16.msra.mxu0 %v10165_v49  ;;  %8342 = vmatpush3.bf16.msra.mxu1 %v10205_v2 }
 0x313   : > { %8319 = vmatprep.subr.bf16.mxu0 %v10168_v50  ;;  %8343 = vmatprep.subr.bf16.mxu1 %v12232_v12 }
 0x316   : > { %8321 = vmatpush1.bf16.msra.mxu0 %v10188_v60  ;;  %8345 = vmatpush3.bf16.msra.mxu1 %v10217_v7 }
 0x317   : > { %8347 = vmatprep.subr.bf16.mxu0 %v10231_v16  ;;  %8378 = vmatprep.subr.bf16.mxu1 %v12232_v12 }
 0x319   : > { %2265 = vmatmul.mubr.f32.vlgmr.msra.gmra.mrb[8].mxu0 %v10867_v9  ;;  %7260 = vmatmul.mubr.f32.vlgmr.msra.gmra.mrb[18].mxu1 %v10867_v9 }
 0x31a   : > { %8349 = vmatpush1.bf16.msra.mxu0 %v12291_v44  ;;  %8380 = vmatpush3.bf16.msra.mxu1 %v12292_v33 }
 0x31b   : > { %8351 = vmatprep.subr.bf16.mxu0 %v12293_v29  ;;  %8381 = vmatprep.subr.bf16.mxu1 %v12232_v12  ;;  %v12302_v29 = vld [vmem:[#allocation44_spill] sm:$0xff] }
 0x31c   : > { %2434 = vmatprep.mubr.f32.mxu0 %v12234_v51  ;;  %7294 = vmatprep.mubr.msk.f32.mxu1 %vm9753_vm1, %v12234_v51 }
 0x31e   : > { %8353 = vmatpush1.bf16.msra.mxu0 %v12294_v47  ;;  %8383 = vmatpush3.bf16.msra.mxu1 %v12295_v6  ;;  %v12303_v6 = vld [vmem:[#allocation45_spill] sm:$0xff]  ;;  %v12305_v47 = vld [vmem:[#allocation47_spill] sm:$0xff] }
 0x31f   : > { %8355 = vmatprep.subr.bf16.mxu0 %v12296_v62  ;;  %8384 = vmatprep.subr.bf16.mxu1 %v12232_v12  ;;  %v12304_v62 = vld [vmem:[#allocation46_spill] sm:$0xff] }
 0x322   : > { %8357 = vmatpush1.bf16.msra.mxu0 %v12297_v11  ;;  %8386 = vmatpush3.bf16.msra.mxu1 %v12298_v3  ;;  %v12306_v3 = vld [vmem:[#allocation48_spill] sm:$0xff]  ;;  %v12308_v11 = vld [vmem:[#allocation50_spill] sm:$0xff] }
 0x323   : > { %8359 = vmatprep.subr.bf16.mxu0 %v12299_v42  ;;  %8387 = vmatprep.subr.bf16.mxu1 %v12232_v12  ;;  %v12307_v42 = vld [vmem:[#allocation49_spill] sm:$0xff] }
 0x326   : > { %8361 = vmatpush1.bf16.msra.mxu0 %v12300_v39  ;;  %8389 = vmatpush3.bf16.msra.mxu1 %v12301_v25  ;;  %v12309_v25 = vld [vmem:[#allocation51_spill] sm:$0xff]  ;;  %v12311_v39 = vld [vmem:[#allocation53_spill] sm:$0xff] }
 0x327   : > { %8363 = vmatprep.subr.bf16.mxu0 %v12302_v29  ;;  %8390 = vmatprep.subr.bf16.mxu1 %v12232_v12  ;;  %v12310_v29 = vld [vmem:[#allocation52_spill] sm:$0xff] }
 0x32a   : > { %8365 = vmatpush1.bf16.msra.mxu0 %v12303_v6  ;;  %8392 = vmatpush3.bf16.msra.mxu1 %v12304_v62  ;;  %v12312_v62 = vld [vmem:[#allocation54_spill] sm:$0xff]  ;;  %v12314_v6 = vld [vmem:[#allocation56_spill] sm:$0xff] }
 0x32b   : > { %8367 = vmatprep.subr.bf16.mxu0 %v12305_v47  ;;  %8393 = vmatprep.subr.bf16.mxu1 %v12232_v12  ;;  %v12313_v47 = vld [vmem:[#allocation55_spill] sm:$0xff] }
 0x32e   : > { %8369 = vmatpush1.bf16.msra.mxu0 %v12306_v3  ;;  %8395 = vmatpush3.bf16.msra.mxu1 %v12307_v42 }
 0x32f   : > { %8371 = vmatprep.subr.bf16.mxu0 %v12308_v11  ;;  %8396 = vmatprep.subr.bf16.mxu1 %v12232_v12 }
 0x332   : > { %8373 = vmatpush1.bf16.msra.mxu0 %v12309_v25  ;;  %8398 = vmatpush3.bf16.msra.mxu1 %v12310_v29 }
 0x333   : > { %8375 = vmatprep.subr.bf16.mxu0 %v12311_v39  ;;  %8399 = vmatprep.subr.bf16.mxu1 %v12232_v12 }
 0x336   : > { %8377 = vmatpush1.bf16.msra.mxu0 %v12312_v62  ;;  %8401 = vmatpush3.bf16.msra.mxu1 %v12313_v47 }
 0x337   : > { %8403 = vmatprep.subr.bf16.mxu0 %v12314_v6  ;;  %8434 = vmatprep.subr.bf16.mxu1 %v12232_v12 }
 0x3a4   : > { %v1868_v42 = vpop.f32.mrb[12].mxu1 }
 0x3a5   : > { %v7180_v11 = vpop.f32.mrb[13].mxu1 }
 0x3a6   : > { %v12315_v11 = vld [vmem:[#allocation84_spill] sm:$0xff] }
 0x3c4   : > { %v1938_v3 = vpop.f32.mrb[6].mxu0  ;;  %v2009_v33 = vpop.f32.mrb[14].mxu1 }
 0x3c5   : > { %v9381_v25 = vadd.f32 %v10828_v19, %v1938_v3  ;;  %v1940_v44 = vpop.f32.mrb[7].mxu0  ;;  %v7215_v29 = vpop.f32.mrb[15].mxu1  ;;  %v2010_v49 = vadd.f32 %v2009_v33, %v12315_v11  ;;  %v1869_v3 = vadd.f32 %v1868_v42, %v12316_v61 }
 0x3c6   : > { %v9383_v39 = vadd.f32 %v10830_v59, %v1940_v44 }
 0x3c7   : > { %v6484_v16 = vmul.f32 -1.442695, %v9381_v25 }
 0x3c8   : > { %v6485_v7 = vmul.f32 -1.442695, %v9383_v39 }
 0x3c9   : > { %9551 = vpow2.f32 %v6484_v16 }
 0x3ca   : > { %9553 = vpow2.f32 %v6485_v7 }
 0x3cc   : > { %v2196_v62 = vpop.f32.mrb[16].mxu1 }
 0x3cd   : > { %v7226_v60 = vpop.f32.mrb[17].mxu1 }
 0x3d3   : > { %v9552_v47 = vpop.eup %9551 }
 0x3d4   : > { %v2017_v6 = vadd.f32 1.0, %v9552_v47  ;;  %v9554_v50 = vpop.eup %9553 }
 0x3d5   : > { %v2024_v2 = vadd.f32 1.0, %v9554_v50 }
 0x3d6   : > { %9555 = vrcp.f32 %v2017_v6 }
 0x3d7   : > { %9557 = vrcp.f32 %v2024_v2 }
 0x3e0   : > { %v9556_v35 = vpop.eup %9555 }
 0x3e1   : > { %v2027_v19 = vmul.f32 %v9556_v35, %v2010_v49  ;;  %v9558_v44 = vpop.eup %9557 }
 0x3e2   : > { %v2030_v47 = vsub.f32 1.0, %v9558_v44  ;;  %v2032_v33 = vmul.f32 %v9558_v44, %v10911_v10 }
 0x3e3   : > { %v2028_v25 = vadd.f32 %v2027_v19, %v1869_v3 }
 0x3e5   : > { %9559 = vtanh.f32 %v2028_v25 }
 0x3ec   : > { %v2266_v16 = vpop.f32.mrb[8].mxu0  ;;  %v2337_v29 = vpop.f32.mrb[18].mxu1 }
 0x3ed   : > { %v9385_v60 = vadd.f32 %v10476_v53, %v2266_v16  ;;  %v2268_v7 = vpop.f32.mrb[9].mxu0  ;;  %v7261_v39 = vpop.f32.mrb[19].mxu1  ;;  %v2338_v25 = vadd.f32 %v2337_v29, %v10486_v28 }
 0x3ee   : > { %v9387_v11 = vadd.f32 %v12269_v36, %v2268_v7  ;;  %v2197_v39 = vadd.f32 %v2196_v62, %v10489_v17  ;;  %v12319_v62 = vld [vmem:[#allocation71_spill] sm:$0xff] }
 0x3ef   : > { %v9560_v6 = vpop.eup %9559  ;;  %v6489_v59 = vmul.f32 -1.442695, %v9385_v60 }
 0x3f0   : > { %v2031_v50 = vmul.f32 %v9560_v6, %v2030_v47  ;;  %v6490_v49 = vmul.f32 -1.442695, %v9387_v11 }
 0x3f1   : > { %9561 = vpow2.f32 %v6489_v59 }
 0x3f2   : > { %v2033_v35 = vadd.f32 %v2032_v33, %v2031_v50  ;;  %9563 = vpow2.f32 %v6490_v49  ;;  %v11017_v49 = vpop.permute.xlu1 %2365 }
 0x3f3   : > { %12317 = vst [vmem:[#allocation61_spill] sm:$0xff] %v11017_v49 }
 0x3fb   : > { %v9562_v2 = vpop.eup %9561 }
 0x3fc   : > { %v2345_v19 = vadd.f32 1.0, %v9562_v2  ;;  %v9564_v42 = vpop.eup %9563 }
 0x3fd   : > { %v2352_v3 = vadd.f32 1.0, %v9564_v42  ;;  %v12321_v42 = vld [vmem:[#allocation73_spill] sm:$0xff] }
 0x3fe   : > { %9565 = vrcp.f32 %v2345_v19  ;;  %v12320_v19 = vld [vmem:[#allocation72_spill] sm:$0xff] }
 0x3ff   : > { %9567 = vrcp.f32 %v2352_v3  ;;  %v12322_v3 = vld [vmem:[#allocation74_spill] sm:$0xff] }
 0x408   : > { %v9566_v16 = vpop.eup %9565 }
 0x409   : > { %v2355_v60 = vmul.f32 %v9566_v16, %v2338_v25  ;;  %v9568_v44 = vpop.eup %9567  ;;  %v12323_v25 = vld [vmem:[#allocation75_spill] sm:$0xff]  ;;  %v12324_v16 = vld [vmem:[#allocation76_spill] sm:$0xff] }
 0x40a   : > { %v2358_v7 = vsub.f32 1.0, %v9568_v44  ;;  %v2360_v11 = vmul.f32 %v9568_v44, %v10867_v9  ;;  %v12326_v44 = vld [vmem:[#allocation79_spill] sm:$0xff] }
 0x40b   : > { %v2356_v47 = vadd.f32 %v2355_v60, %v2197_v39  ;;  %v12325_v39 = vld [vmem:[#allocation77_spill] sm:$0xff]  ;;  %v2034_v60 = vsub.f32 %v2033_v35, %v10911_v10 }
 0x40d   : > { %9569 = vtanh.f32 %v2356_v47  ;;  %v2683_v47 = vld [vmem:[%s9890_s21 + $0xb] sm:$0x1] }
 0x417   : > { %v9570_v59 = vpop.eup %9569 }
 0x418   : > { %v2359_v6 = vmul.f32 %v9570_v59, %v2358_v7  ;;  %v12327_v7 = vld [vmem:[#allocation80_spill] sm:$0xff]  ;;  %v12328_v59 = vld [vmem:[#allocation81_spill] sm:$0xff] }
 0x41a   : > { %v2361_v50 = vadd.f32 %v2360_v11, %v2359_v6  ;;  %v12329_v6 = vld [vmem:[#allocation17_spill] sm:$0xff] }
 0x41b   : > { %v2035_v11 = vmul.f32 %v2034_v60, %v12329_v6  ;;  %v12341_v6 = vld [vmem:[#allocation35_spill] sm:$0xff] }
 0x41c   : > { %v2362_v33 = vsub.f32 %v2361_v50, %v10867_v9  ;;  %v2684_v50 = vld [vmem:[%s9890_s21 + $0x13] sm:$0x1] }
 0x41d   : > { %v11064_v35 = vadd.f32 %v2035_v11, %v10911_v10  ;;  %v12340_v10 = vld [vmem:[#allocation34_spill] sm:$0xff] }
 0x41e   : > { %v2368_v29 = vmul.f32 %v11017_v49, %v2362_v33  ;;  %v2690_v33 = vrot.slane %v2683_v47, 7  ;;  %v2685_v49 = vld [vmem:[%s9890_s21 + $0x1b] sm:$0x1] }
 0x41f   : > { %12330 = vst [vmem:[#allocation62_spill] sm:$0xff] %v11064_v35  ;;  %v2694_v60 = vrot.slane %v2685_v49, 5  ;;  %v12331_v49 = vld [vmem:[#allocation29_spill] sm:$0xff] }
 0x420   : > { %v11021_v2 = vadd.f32 %v2368_v29, %v10867_v9  ;;  %v12318_v9 = vld [vmem:[#allocation70_spill] sm:$0xff]  ;;  %v2682_v29 = vld [vmem:[%s9890_s21 + $0x3] sm:$0x1] }
 0x422   : > { %2435 = vmatmul.mubr.f32.vlgmr.msra.gmra.mrb[10].mxu0 %v11021_v2  ;;  %7295 = vmatmul.mubr.f32.vlgmr.msra.gmra.mrb[20].mxu1 %v11021_v2 }
 0x423   : > { %8405 = vmatpush1.bf16.msra.mxu0 %v12271_v52  ;;  %8436 = vmatpush3.bf16.msra.mxu1 %v12272_v56 }
 0x424   : > { %8407 = vmatprep.subr.bf16.mxu0 %v12273_v31  ;;  %8437 = vmatprep.subr.bf16.mxu1 %v12232_v12 }
 0x425   : > { %2575 = vmatprep.mubr.f32.mxu0 %v12234_v51  ;;  %7329 = vmatprep.mubr.msk.f32.mxu1 %vm9753_vm1, %v12234_v51 }
 0x427   : > { %8409 = vmatpush1.bf16.msra.mxu0 %v12274_v41  ;;  %8439 = vmatpush3.bf16.msra.mxu1 %v12275_v32 }
 0x428   : > { %8411 = vmatprep.subr.bf16.mxu0 %v12276_v24  ;;  %8440 = vmatprep.subr.bf16.mxu1 %v12232_v12 }
 0x42b   : > { %8413 = vmatpush1.bf16.msra.mxu0 %v12277_v26  ;;  %8442 = vmatpush3.bf16.msra.mxu1 %v12278_v1 }
 0x42c   : > { %8415 = vmatprep.subr.bf16.mxu0 %v12279_v18  ;;  %8443 = vmatprep.subr.bf16.mxu1 %v12232_v12 }
 0x42f   : > { %8417 = vmatpush1.bf16.msra.mxu0 %v12318_v9  ;;  %8445 = vmatpush3.bf16.msra.mxu1 %v12319_v62 }
 0x430   : > { %8419 = vmatprep.subr.bf16.mxu0 %v12320_v19  ;;  %8446 = vmatprep.subr.bf16.mxu1 %v12232_v12 }
 0x433   : > { %8421 = vmatpush1.bf16.msra.mxu0 %v12321_v42  ;;  %8448 = vmatpush3.bf16.msra.mxu1 %v12322_v3 }
 0x434   : > { %8423 = vmatprep.subr.bf16.mxu0 %v12323_v25  ;;  %8449 = vmatprep.subr.bf16.mxu1 %v12232_v12 }
 0x437   : > { %8425 = vmatpush1.bf16.msra.mxu0 %v12324_v16  ;;  %8451 = vmatpush3.bf16.msra.mxu1 %v12325_v39 }
 0x438   : > { %8427 = vmatprep.subr.bf16.mxu0 %v12288_v20  ;;  %8452 = vmatprep.subr.bf16.mxu1 %v12232_v12 }
 0x43b   : > { %8429 = vmatpush1.bf16.msra.mxu0 %v12326_v44  ;;  %8454 = vmatpush3.bf16.msra.mxu1 %v12327_v7  ;;  %v2691_v7 = vsel %vm575_vm0, %v2690_v33, %v2682_v29  ;;  %v12335_v33 = vld [vmem:[#allocation26_spill] sm:$0xff]  ;;  %v12336_v29 = vld [vmem:[#allocation28_spill] sm:$0xff] }
 0x43c   : > { %8431 = vmatprep.subr.bf16.mxu0 %v12328_v59  ;;  %8455 = vmatprep.subr.bf16.mxu1 %v12232_v12  ;;  %v2692_v59 = vrot.slane %v2684_v50, 6  ;;  %v12334_v50 = vld [vmem:[#allocation30_spill] sm:$0xff] }
 0x43e   : > { %v2693_v47 = vsel %vm578_vm2, %v2692_v59, %v2691_v7  ;;  %v12332_v7 = vld [vmem:[#allocation23_spill] sm:$0xff]  ;;  %v12333_v59 = vld [vmem:[#allocation25_spill] sm:$0xff] }
 0x43f   : > { %8433 = vmatpush1.bf16.msra.mxu0 %v10713_v40  ;;  %8457 = vmatpush3.bf16.msra.mxu1 %v10715_v0  ;;  %v2695_v11 = vsel %vm581_vm3, %v2694_v60, %v2693_v47  ;;  %v12337_v60 = vld [vmem:[#allocation31_spill] sm:$0xff]  ;;  %v12338_v47 = vld [vmem:[#allocation32_spill] sm:$0xff] }
 0x440   : > { %8459 = vmatprep.subr.bf16.mxu0 %v9914_v8  ;;  %8466 = vmatprep.subr.bf16.mxu1 %v12232_v12 }
 0x442   : > { %2576 = vmatmul.mubr.f32.vlgmr.msra.gmra.mrb[10].mxu0 %v11064_v35  ;;  %7330 = vmatmul.mubr.f32.vlgmr.msra.gmra.mrb[22].mxu1 %v11064_v35 }
 0x443   : > { %8461 = vmatpush1.bf16.msra.mxu0 %v9926_v13  ;;  %8468 = vmatpush3.bf16.msra.mxu1 %v9999_v46 }
 0x444   : > { %8463 = vmatprep.subr.bf16.mxu0 %v9928_v14  ;;  %8469 = vmatprep.subr.bf16.mxu1 %v12232_v12 }
 0x445   : > { %2762 = vmatprep.mubr.f32.mxu0 %v12234_v51  ;;  %7340 = vmatprep.mubr.msk.f32.mxu1 %vm9753_vm1, %v12234_v51 }
 0x447   : > { %8465 = vmatpush1.bf16.msra.mxu0 %v9949_v22  ;;  %8471 = vmatpush3.bf16.msra.mxu1 %v10024_v54 }
 0x448   : > { %8473 = vmatprep.subr.bf16.mxu0 %v9954_v27  ;;  %8504 = vmatprep.subr.bf16.mxu1 %v12232_v12 }
 0x44a   : > { %6494 = vmatmul.mubr.msk.f32.vlgmr.msra.gmra.mrb[12].mxu0 %vm583_vm4, %v2695_v11  ;;  %7341 = vmatmul.mubr.msk.f32.vlgmr.msra.gmra.mrb[24].mxu1 %vm583_vm4, %v2695_v11  ;;  %v12339_v11 = vld [vmem:[#allocation33_spill] sm:$0xff] }
 0x44b   : > { %8475 = vmatpush1.bf16.msra.mxu0 %v9972_v37  ;;  %8506 = vmatpush3.bf16.msra.mxu1 %v10053_v63 }
 0x44c   : > { %8477 = vmatprep.subr.bf16.mxu0 %v9975_v38  ;;  %8507 = vmatprep.subr.bf16.mxu1 %v12232_v12 }
 0x44d   : > { %2903 = vmatprep.mubr.f32.mxu0 %v12234_v51  ;;  %7375 = vmatprep.mubr.msk.f32.mxu1 %vm9753_vm1, %v12234_v51 }
 0x44f   : > { %8479 = vmatpush1.bf16.msra.mxu0 %v9997_v45  ;;  %8509 = vmatpush3.bf16.msra.mxu1 %v10089_v15 }
 0x450   : > { %8481 = vmatprep.subr.bf16.mxu0 %v10006_v48  ;;  %8510 = vmatprep.subr.bf16.mxu1 %v12232_v12 }
 0x453   : > { %8483 = vmatpush1.bf16.msra.mxu0 %v10034_v57  ;;  %8512 = vmatpush3.bf16.msra.mxu1 %v10124_v30 }
 0x454   : > { %8485 = vmatprep.subr.bf16.mxu0 %v10038_v58  ;;  %8513 = vmatprep.subr.bf16.mxu1 %v12232_v12 }
 0x457   : > { %8487 = vmatpush1.bf16.msra.mxu0 %v10064_v4  ;;  %8515 = vmatpush3.bf16.msra.mxu1 %v10154_v43 }
 0x458   : > { %8489 = vmatprep.subr.bf16.mxu0 %v10068_v5  ;;  %8516 = vmatprep.subr.bf16.mxu1 %v12232_v12 }
 0x45b   : > { %8491 = vmatpush1.bf16.msra.mxu0 %v10104_v21  ;;  %8518 = vmatpush3.bf16.msra.mxu1 %v10178_v55 }
 0x45c   : > { %8493 = vmatprep.subr.bf16.mxu0 %v10108_v23  ;;  %8519 = vmatprep.subr.bf16.mxu1 %v12232_v12 }
 0x45f   : > { %8495 = vmatpush1.bf16.msra.mxu0 %v10135_v34  ;;  %8521 = vmatpush3.bf16.msra.mxu1 %v12331_v49  ;;  %v12363_v49 = vld [vmem:[#allocation82_spill] sm:$0xff] }
 0x460   : > { %8497 = vmatprep.subr.bf16.mxu0 %v12332_v7  ;;  %8522 = vmatprep.subr.bf16.mxu1 %v12232_v12 }
 0x463   : > { %8499 = vmatpush1.bf16.msra.mxu0 %v12333_v59  ;;  %8524 = vmatpush3.bf16.msra.mxu1 %v12334_v50  ;;  %v12349_v50 = vld [vmem:[#allocation43_spill] sm:$0xff]  ;;  %v12350_v59 = vld [vmem:[#allocation44_spill] sm:$0xff] }
 0x464   : > { %8501 = vmatprep.subr.bf16.mxu0 %v12335_v33  ;;  %8525 = vmatprep.subr.bf16.mxu1 %v12232_v12  ;;  %v12348_v33 = vld [vmem:[#allocation42_spill] sm:$0xff] }
 0x467   : > { %8503 = vmatpush1.bf16.msra.mxu0 %v12336_v29  ;;  %8527 = vmatpush3.bf16.msra.mxu1 %v12337_v60  ;;  %v12343_v60 = vld [vmem:[#allocation37_spill] sm:$0xff]  ;;  %v12344_v29 = vld [vmem:[#allocation38_spill] sm:$0xff] }
 0x468   : > { %8529 = vmatprep.subr.bf16.mxu0 %v12338_v47  ;;  %8560 = vmatprep.subr.bf16.mxu1 %v12232_v12  ;;  %v12342_v47 = vld [vmem:[#allocation36_spill] sm:$0xff] }
 0x46a   : > { %2904 = vmatmul.mubr.f32.vlgmr.msra.gmra.mrb[12].mxu0 %v11021_v2  ;;  %7376 = vmatmul.mubr.f32.vlgmr.msra.gmra.mrb[26].mxu1 %v11021_v2 }
 0x46b   : > { %8531 = vmatpush1.bf16.msra.mxu0 %v12339_v11  ;;  %8562 = vmatpush3.bf16.msra.mxu1 %v12340_v10  ;;  %v12345_v11 = vld [vmem:[#allocation39_spill] sm:$0xff]  ;;  %v12346_v10 = vld [vmem:[#allocation40_spill] sm:$0xff] }
 0x46c   : > { %8533 = vmatprep.subr.bf16.mxu0 %v12341_v6  ;;  %8563 = vmatprep.subr.bf16.mxu1 %v12232_v12  ;;  %v12347_v6 = vld [vmem:[#allocation41_spill] sm:$0xff] }
 0x46d   : > { %3073 = vmatprep.mubr.f32.mxu0 %v12234_v51  ;;  %7410 = vmatprep.mubr.msk.f32.mxu1 %vm9753_vm1, %v12234_v51 }
 0x46f   : > { %8535 = vmatpush1.bf16.msra.mxu0 %v12342_v47  ;;  %8565 = vmatpush3.bf16.msra.mxu1 %v12343_v60  ;;  %v12351_v60 = vld [vmem:[#allocation45_spill] sm:$0xff]  ;;  %v12353_v47 = vld [vmem:[#allocation47_spill] sm:$0xff] }
 0x470   : > { %8537 = vmatprep.subr.bf16.mxu0 %v12344_v29  ;;  %8566 = vmatprep.subr.bf16.mxu1 %v12232_v12  ;;  %v12352_v29 = vld [vmem:[#allocation46_spill] sm:$0xff] }
 0x473   : > { %8539 = vmatpush1.bf16.msra.mxu0 %v12345_v11  ;;  %8568 = vmatpush3.bf16.msra.mxu1 %v12346_v10  ;;  %v12354_v10 = vld [vmem:[#allocation48_spill] sm:$0xff]  ;;  %v12356_v11 = vld [vmem:[#allocation50_spill] sm:$0xff] }
 0x474   : > { %8541 = vmatprep.subr.bf16.mxu0 %v12347_v6  ;;  %8569 = vmatprep.subr.bf16.mxu1 %v12232_v12  ;;  %v12355_v6 = vld [vmem:[#allocation49_spill] sm:$0xff] }
 0x477   : > { %8543 = vmatpush1.bf16.msra.mxu0 %v12348_v33  ;;  %8571 = vmatpush3.bf16.msra.mxu1 %v12349_v50  ;;  %v12357_v50 = vld [vmem:[#allocation51_spill] sm:$0xff]  ;;  %v12359_v33 = vld [vmem:[#allocation53_spill] sm:$0xff] }
 0x478   : > { %8545 = vmatprep.subr.bf16.mxu0 %v12350_v59  ;;  %8572 = vmatprep.subr.bf16.mxu1 %v12232_v12  ;;  %v12358_v59 = vld [vmem:[#allocation52_spill] sm:$0xff] }
 0x47b   : > { %8547 = vmatpush1.bf16.msra.mxu0 %v12351_v60  ;;  %8574 = vmatpush3.bf16.msra.mxu1 %v12352_v29  ;;  %v12360_v29 = vld [vmem:[#allocation54_spill] sm:$0xff]  ;;  %v12362_v60 = vld [vmem:[#allocation56_spill] sm:$0xff] }
 0x47c   : > { %8549 = vmatprep.subr.bf16.mxu0 %v12353_v47  ;;  %8575 = vmatprep.subr.bf16.mxu1 %v12232_v12  ;;  %v12361_v47 = vld [vmem:[#allocation55_spill] sm:$0xff] }
 0x47f   : > { %8551 = vmatpush1.bf16.msra.mxu0 %v12354_v10  ;;  %8577 = vmatpush3.bf16.msra.mxu1 %v12355_v6 }
 0x480   : > { %8553 = vmatprep.subr.bf16.mxu0 %v12356_v11  ;;  %8578 = vmatprep.subr.bf16.mxu1 %v12232_v12 }
 0x483   : > { %8555 = vmatpush1.bf16.msra.mxu0 %v12357_v50  ;;  %8580 = vmatpush3.bf16.msra.mxu1 %v12358_v59 }
 0x484   : > { %8557 = vmatprep.subr.bf16.mxu0 %v12359_v33  ;;  %8581 = vmatprep.subr.bf16.mxu1 %v12232_v12  ;;  %v12364_v33 = vld [vmem:[#allocation83_spill] sm:$0xff] }
 0x487   : > { %8559 = vmatpush1.bf16.msra.mxu0 %v12360_v29  ;;  %8583 = vmatpush3.bf16.msra.mxu1 %v12361_v47 }
 0x488   : > { %8585 = vmatprep.subr.bf16.mxu0 %v12362_v60  ;;  %8616 = vmatprep.subr.bf16.mxu1 %v12232_v12 }
 0x4f5   : > { %v2507_v6 = vpop.f32.mrb[20].mxu1 }
 0x4f6   : > { %v7296_v11 = vpop.f32.mrb[21].mxu1 }
 0x4f7   : > { %v12365_v11 = vld [vmem:[#allocation84_spill] sm:$0xff] }
 0x515   : > { %v2577_v10 = vpop.f32.mrb[10].mxu0  ;;  %v2648_v7 = vpop.f32.mrb[22].mxu1 }
 0x516   : > { %v9389_v50 = vadd.f32 %v12363_v49, %v2577_v10  ;;  %v2579_v34 = vpop.f32.mrb[11].mxu0  ;;  %v7331_v59 = vpop.f32.mrb[23].mxu1  ;;  %v2649_v58 = vadd.f32 %v2648_v7, %v12365_v11  ;;  %v2508_v10 = vadd.f32 %v2507_v6, %v12316_v61 }
 0x517   : > { %v9391_v55 = vadd.f32 %v12364_v33, %v2579_v34 }
 0x518   : > { %v6491_v23 = vmul.f32 -1.442695, %v9389_v50 }
 0x519   : > { %v6492_v21 = vmul.f32 -1.442695, %v9391_v55 }
 0x51a   : > { %9571 = vpow2.f32 %v6491_v23 }
 0x51b   : > { %9573 = vpow2.f32 %v6492_v21 }
 0x51d   : > { %v2835_v29 = vpop.f32.mrb[24].mxu1 }
 0x51e   : > { %v7342_v5 = vpop.f32.mrb[25].mxu1 }
 0x524   : > { %v9572_v47 = vpop.eup %9571 }
 0x525   : > { %v2656_v60 = vadd.f32 1.0, %v9572_v47  ;;  %v9574_v43 = vpop.eup %9573 }
 0x526   : > { %v2663_v4 = vadd.f32 1.0, %v9574_v43 }
 0x527   : > { %9575 = vrcp.f32 %v2656_v60 }
 0x528   : > { %9577 = vrcp.f32 %v2663_v4 }
 0x531   : > { %v9576_v30 = vpop.eup %9575 }
 0x532   : > { %v2666_v49 = vmul.f32 %v9576_v30, %v2649_v58  ;;  %v9578_v34 = vpop.eup %9577 }
 0x533   : > { %v2669_v47 = vsub.f32 1.0, %v9578_v34  ;;  %v2671_v7 = vmul.f32 %v9578_v34, %v11064_v35 }
 0x534   : > { %v2667_v59 = vadd.f32 %v2666_v49, %v2508_v10 }
 0x536   : > { %9579 = vtanh.f32 %v2667_v59 }
 0x53d   : > { %v2905_v23 = vpop.f32.mrb[12].mxu0  ;;  %v2976_v55 = vpop.f32.mrb[26].mxu1 }
 0x53e   : > { %v9393_v5 = vadd.f32 %v10476_v53, %v2905_v23  ;;  %v2907_v21 = vpop.f32.mrb[13].mxu0  ;;  %v7377_v50 = vpop.f32.mrb[27].mxu1  ;;  %v2977_v59 = vadd.f32 %v2976_v55, %v10486_v28 }
 0x53f   : > { %v9395_v11 = vadd.f32 %v12269_v36, %v2907_v21  ;;  %v2836_v50 = vadd.f32 %v2835_v29, %v10489_v17  ;;  %v3322_v29 = vld [vmem:[%s9890_s21 + $0xc] sm:$0x1] }
 0x540   : > { %v9580_v60 = vpop.eup %9579  ;;  %v6496_v33 = vmul.f32 -1.442695, %v9393_v5 }
 0x541   : > { %v2670_v43 = vmul.f32 %v9580_v60, %v2669_v47  ;;  %v6497_v4 = vmul.f32 -1.442695, %v9395_v11 }
 0x542   : > { %9581 = vpow2.f32 %v6496_v33 }
 0x543   : > { %v2672_v58 = vadd.f32 %v2671_v7, %v2670_v43  ;;  %9583 = vpow2.f32 %v6497_v4  ;;  %v11170_v4 = vpop.permute.xlu1 %3004 }
 0x544   : > { %12366 = vst [vmem:[#allocation63_spill] sm:$0xff] %v11170_v4 }
 0x54c   : > { %v9582_v30 = vpop.eup %9581 }
 0x54d   : > { %v2984_v6 = vadd.f32 1.0, %v9582_v30  ;;  %v9584_v49 = vpop.eup %9583 }
 0x54e   : > { %v2991_v10 = vadd.f32 1.0, %v9584_v49  ;;  %v12368_v49 = vld [vmem:[#allocation81_spill] sm:$0xff] }
 0x54f   : > { %9585 = vrcp.f32 %v2984_v6  ;;  %v12367_v6 = vld [vmem:[#allocation80_spill] sm:$0xff] }
 0x550   : > { %9587 = vrcp.f32 %v2991_v10  ;;  %v12369_v10 = vld [vmem:[#allocation61_spill] sm:$0xff] }
 0x559   : > { %v9586_v23 = vpop.eup %9585 }
 0x55a   : > { %v2994_v5 = vmul.f32 %v9586_v23, %v2977_v59  ;;  %v9588_v34 = vpop.eup %9587  ;;  %v3323_v23 = vld [vmem:[%s9890_s21 + $0x14] sm:$0x1] }
 0x55b   : > { %v2997_v21 = vsub.f32 1.0, %v9588_v34  ;;  %v2999_v11 = vmul.f32 %v9588_v34, %v11021_v2  ;;  %v3331_v34 = vrot.slane %v3323_v23, 6  ;;  %v12377_v23 = vld [vmem:[#allocation27_spill] sm:$0xff] }
 0x55c   : > { %v2995_v47 = vadd.f32 %v2994_v5, %v2836_v50  ;;  %v3329_v50 = vrot.slane %v3322_v29, 7  ;;  %v3321_v5 = vld [vmem:[%s9890_s21 + $0x4] sm:$0x1]  ;;  %v12375_v29 = vld [vmem:[#allocation16_spill] sm:$0xff] }
 0x55e   : > { %9589 = vtanh.f32 %v2995_v47  ;;  %v3324_v47 = vld [vmem:[%s9890_s21 + $0x1c] sm:$0x1] }
 0x568   : > { %v9590_v33 = vpop.eup %9589 }
 0x569   : > { %v2998_v60 = vmul.f32 %v9590_v33, %v2997_v21  ;;  %v3330_v21 = vsel %vm575_vm0, %v3329_v50, %v3321_v5  ;;  %v3333_v33 = vrot.slane %v3324_v47, 5  ;;  %v12378_v50 = vld [vmem:[#allocation20_spill] sm:$0xff]  ;;  %v12379_v5 = vld [vmem:[#allocation22_spill] sm:$0xff]  ;;  %v12380_v47 = vld [vmem:[#allocation29_spill] sm:$0xff] }
 0x56b   : > { %v3000_v43 = vadd.f32 %v2999_v11, %v2998_v60  ;;  %v3332_v60 = vsel %vm578_vm2, %v3331_v34, %v3330_v21  ;;  %v12381_v34 = vld [vmem:[#allocation23_spill] sm:$0xff]  ;;  %v12382_v21 = vld [vmem:[#allocation25_spill] sm:$0xff] }
 0x56c   : > { %v3334_v11 = vsel %vm581_vm3, %v3333_v33, %v3332_v60  ;;  %v12383_v33 = vld [vmem:[#allocation30_spill] sm:$0xff] }
 0x56d   : > { %v3001_v7 = vsub.f32 %v3000_v43, %v11021_v2  ;;  %v12371_v43 = vld [vmem:[#allocation21_spill] sm:$0xff]  ;;  %v12384_v60 = vld [vmem:[#allocation26_spill] sm:$0xff] }
 0x56f   : > { %v3007_v55 = vmul.f32 %v11170_v4, %v3001_v7  ;;  %v12372_v7 = vld [vmem:[#allocation14_spill] sm:$0xff] }
 0x571   : > { %v11174_v30 = vadd.f32 %v3007_v55, %v11021_v2  ;;  %v2673_v2 = vsub.f32 %v2672_v58, %v11064_v35  ;;  %v12373_v55 = vld [vmem:[#allocation15_spill] sm:$0xff] }
 0x573   : > { %3074 = vmatmul.mubr.f32.vlgmr.msra.gmra.mrb[14].mxu0 %v11174_v30  ;;  %7411 = vmatmul.mubr.f32.vlgmr.msra.gmra.mrb[28].mxu1 %v11174_v30  ;;  %v2674_v59 = vmul.f32 %v2673_v2, %v12369_v10  ;;  %v12374_v2 = vld [vmem:[#allocation24_spill] sm:$0xff]  ;;  %v12386_v10 = vld [vmem:[#allocation31_spill] sm:$0xff] }
 0x574   : > { %8587 = vmatpush1.bf16.msra.mxu0 %v12271_v52  ;;  %8618 = vmatpush3.bf16.msra.mxu1 %v12272_v56 }
 0x575   : > { %8589 = vmatprep.subr.bf16.mxu0 %v12273_v31  ;;  %8619 = vmatprep.subr.bf16.mxu1 %v12232_v12  ;;  %v11217_v58 = vadd.f32 %v2674_v59, %v11064_v35  ;;  %v12376_v59 = vld [vmem:[#allocation19_spill] sm:$0xff]  ;;  %v12387_v35 = vld [vmem:[#allocation32_spill] sm:$0xff] }
 0x576   : > { %3214 = vmatprep.mubr.f32.mxu0 %v12234_v51  ;;  %7445 = vmatprep.mubr.msk.f32.mxu1 %vm9753_vm1, %v12234_v51 }
 0x577   : > { %12370 = vst [vmem:[#allocation64_spill] sm:$0xff] %v11217_v58 }
 0x578   : > { %8591 = vmatpush1.bf16.msra.mxu0 %v12274_v41  ;;  %8621 = vmatpush3.bf16.msra.mxu1 %v12275_v32 }
 0x579   : > { %8593 = vmatprep.subr.bf16.mxu0 %v12276_v24  ;;  %8622 = vmatprep.subr.bf16.mxu1 %v12232_v12 }
 0x57c   : > { %8595 = vmatpush1.bf16.msra.mxu0 %v12277_v26  ;;  %8624 = vmatpush3.bf16.msra.mxu1 %v12278_v1 }
 0x57d   : > { %8597 = vmatprep.subr.bf16.mxu0 %v12279_v18  ;;  %8625 = vmatprep.subr.bf16.mxu1 %v12232_v12 }
 0x580   : > { %8599 = vmatpush1.bf16.msra.mxu0 %v12318_v9  ;;  %8627 = vmatpush3.bf16.msra.mxu1 %v12319_v62 }
 0x581   : > { %8601 = vmatprep.subr.bf16.mxu0 %v12320_v19  ;;  %8628 = vmatprep.subr.bf16.mxu1 %v12232_v12 }
 0x584   : > { %8603 = vmatpush1.bf16.msra.mxu0 %v12321_v42  ;;  %8630 = vmatpush3.bf16.msra.mxu1 %v12322_v3 }
 0x585   : > { %8605 = vmatprep.subr.bf16.mxu0 %v12323_v25  ;;  %8631 = vmatprep.subr.bf16.mxu1 %v12232_v12 }
 0x588   : > { %8607 = vmatpush1.bf16.msra.mxu0 %v12324_v16  ;;  %8633 = vmatpush3.bf16.msra.mxu1 %v12325_v39 }
 0x589   : > { %8609 = vmatprep.subr.bf16.mxu0 %v12288_v20  ;;  %8634 = vmatprep.subr.bf16.mxu1 %v12232_v12 }
 0x58c   : > { %8611 = vmatpush1.bf16.msra.mxu0 %v12326_v44  ;;  %8636 = vmatpush3.bf16.msra.mxu1 %v12367_v6 }
 0x58d   : > { %8613 = vmatprep.subr.bf16.mxu0 %v12368_v49  ;;  %8637 = vmatprep.subr.bf16.mxu1 %v12232_v12 }
 0x590   : > { %8615 = vmatpush1.bf16.msra.mxu0 %v10713_v40  ;;  %8639 = vmatpush3.bf16.msra.mxu1 %v10715_v0 }
 0x591   : > { %8641 = vmatprep.subr.bf16.mxu0 %v9914_v8  ;;  %8648 = vmatprep.subr.bf16.mxu1 %v12232_v12 }
 0x593   : > { %3215 = vmatmul.mubr.f32.vlgmr.msra.gmra.mrb[14].mxu0 %v11217_v58  ;;  %7446 = vmatmul.mubr.f32.vlgmr.msra.gmra.mrb[30].mxu1 %v11217_v58 }
 0x594   : > { %8643 = vmatpush1.bf16.msra.mxu0 %v9926_v13  ;;  %8650 = vmatpush3.bf16.msra.mxu1 %v9999_v46 }
 0x595   : > { %8645 = vmatprep.subr.bf16.mxu0 %v9928_v14  ;;  %8651 = vmatprep.subr.bf16.mxu1 %v12232_v12 }
 0x596   : > { %3401 = vmatprep.mubr.f32.mxu0 %v12234_v51  ;;  %7456 = vmatprep.mubr.msk.f32.mxu1 %vm9753_vm1, %v12234_v51 }
 0x598   : > { %8647 = vmatpush1.bf16.msra.mxu0 %v9949_v22  ;;  %8653 = vmatpush3.bf16.msra.mxu1 %v10024_v54 }
 0x599   : > { %8655 = vmatprep.subr.bf16.mxu0 %v9954_v27  ;;  %8686 = vmatprep.subr.bf16.mxu1 %v12232_v12 }
 0x59b   : > { %6501 = vmatmul.mubr.msk.f32.vlgmr.msra.gmra.mrb[16].mxu0 %vm583_vm4, %v3334_v11  ;;  %7457 = vmatmul.mubr.msk.f32.vlgmr.msra.gmra.mrb[32].mxu1 %vm583_vm4, %v3334_v11  ;;  %v12385_v11 = vld [vmem:[#allocation28_spill] sm:$0xff] }
 0x59c   : > { %8657 = vmatpush1.bf16.msra.mxu0 %v9972_v37  ;;  %8688 = vmatpush3.bf16.msra.mxu1 %v10053_v63 }
 0x59d   : > { %8659 = vmatprep.subr.bf16.mxu0 %v9975_v38  ;;  %8689 = vmatprep.subr.bf16.mxu1 %v12232_v12 }
 0x59e   : > { %3542 = vmatprep.mubr.f32.mxu0 %v12234_v51  ;;  %7491 = vmatprep.mubr.msk.f32.mxu1 %vm9753_vm1, %v12234_v51 }
 0x5a0   : > { %8661 = vmatpush1.bf16.msra.mxu0 %v9997_v45  ;;  %8691 = vmatpush3.bf16.msra.mxu1 %v10089_v15 }
 0x5a1   : > { %8663 = vmatprep.subr.bf16.mxu0 %v10006_v48  ;;  %8692 = vmatprep.subr.bf16.mxu1 %v12232_v12 }
 0x5a4   : > { %8665 = vmatpush1.bf16.msra.mxu0 %v10034_v57  ;;  %8694 = vmatpush3.bf16.msra.mxu1 %v12371_v43 }
 0x5a5   : > { %8667 = vmatprep.subr.bf16.mxu0 %v12372_v7  ;;  %8695 = vmatprep.subr.bf16.mxu1 %v12232_v12 }
 0x5a8   : > { %8669 = vmatpush1.bf16.msra.mxu0 %v12373_v55  ;;  %8697 = vmatpush3.bf16.msra.mxu1 %v12374_v2 }
 0x5a9   : > { %8671 = vmatprep.subr.bf16.mxu0 %v12375_v29  ;;  %8698 = vmatprep.subr.bf16.mxu1 %v12232_v12 }
 0x5ac   : > { %8673 = vmatpush1.bf16.msra.mxu0 %v12376_v59  ;;  %8700 = vmatpush3.bf16.msra.mxu1 %v12377_v23  ;;  %v12412_v23 = vld [vmem:[#allocation82_spill] sm:$0xff] }
 0x5ad   : > { %8675 = vmatprep.subr.bf16.mxu0 %v12378_v50  ;;  %8701 = vmatprep.subr.bf16.mxu1 %v12232_v12 }
 0x5b0   : > { %8677 = vmatpush1.bf16.msra.mxu0 %v12379_v5  ;;  %8703 = vmatpush3.bf16.msra.mxu1 %v12380_v47  ;;  %v12398_v47 = vld [vmem:[#allocation43_spill] sm:$0xff]  ;;  %v12399_v5 = vld [vmem:[#allocation44_spill] sm:$0xff] }
 0x5b1   : > { %8679 = vmatprep.subr.bf16.mxu0 %v12381_v34  ;;  %8704 = vmatprep.subr.bf16.mxu1 %v12232_v12  ;;  %v12388_v34 = vld [vmem:[#allocation33_spill] sm:$0xff] }
 0x5b4   : > { %8681 = vmatpush1.bf16.msra.mxu0 %v12382_v21  ;;  %8706 = vmatpush3.bf16.msra.mxu1 %v12383_v33  ;;  %v12389_v21 = vld [vmem:[#allocation34_spill] sm:$0xff]  ;;  %v12390_v33 = vld [vmem:[#allocation35_spill] sm:$0xff] }
 0x5b5   : > { %8683 = vmatprep.subr.bf16.mxu0 %v12384_v60  ;;  %8707 = vmatprep.subr.bf16.mxu1 %v12232_v12  ;;  %v12397_v60 = vld [vmem:[#allocation42_spill] sm:$0xff] }
 0x5b8   : > { %8685 = vmatpush1.bf16.msra.mxu0 %v12385_v11  ;;  %8709 = vmatpush3.bf16.msra.mxu1 %v12386_v10  ;;  %v12392_v10 = vld [vmem:[#allocation37_spill] sm:$0xff]  ;;  %v12393_v11 = vld [vmem:[#allocation38_spill] sm:$0xff] }
 0x5b9   : > { %8711 = vmatprep.subr.bf16.mxu0 %v12387_v35  ;;  %8742 = vmatprep.subr.bf16.mxu1 %v12232_v12  ;;  %v12391_v35 = vld [vmem:[#allocation36_spill] sm:$0xff] }
 0x5bb   : > { %3543 = vmatmul.mubr.f32.vlgmr.msra.gmra.mrb[16].mxu0 %v11174_v30  ;;  %7492 = vmatmul.mubr.f32.vlgmr.msra.gmra.mrb[34].mxu1 %v11174_v30 }
 0x5bc   : > { %8713 = vmatpush1.bf16.msra.mxu0 %v12388_v34  ;;  %8744 = vmatpush3.bf16.msra.mxu1 %v12389_v21  ;;  %v12394_v34 = vld [vmem:[#allocation39_spill] sm:$0xff]  ;;  %v12395_v21 = vld [vmem:[#allocation40_spill] sm:$0xff] }
 0x5bd   : > { %8715 = vmatprep.subr.bf16.mxu0 %v12390_v33  ;;  %8745 = vmatprep.subr.bf16.mxu1 %v12232_v12  ;;  %v12396_v33 = vld [vmem:[#allocation41_spill] sm:$0xff] }
 0x5be   : > { %3712 = vmatprep.mubr.f32.mxu0 %v12234_v51  ;;  %7526 = vmatprep.mubr.msk.f32.mxu1 %vm9753_vm1, %v12234_v51 }
 0x5c0   : > { %8717 = vmatpush1.bf16.msra.mxu0 %v12391_v35  ;;  %8747 = vmatpush3.bf16.msra.mxu1 %v12392_v10  ;;  %v12400_v10 = vld [vmem:[#allocation45_spill] sm:$0xff]  ;;  %v12402_v35 = vld [vmem:[#allocation47_spill] sm:$0xff] }
 0x5c1   : > { %8719 = vmatprep.subr.bf16.mxu0 %v12393_v11  ;;  %8748 = vmatprep.subr.bf16.mxu1 %v12232_v12  ;;  %v12401_v11 = vld [vmem:[#allocation46_spill] sm:$0xff] }
 0x5c4   : > { %8721 = vmatpush1.bf16.msra.mxu0 %v12394_v34  ;;  %8750 = vmatpush3.bf16.msra.mxu1 %v12395_v21  ;;  %v12403_v21 = vld [vmem:[#allocation48_spill] sm:$0xff]  ;;  %v12405_v34 = vld [vmem:[#allocation50_spill] sm:$0xff] }
 0x5c5   : > { %8723 = vmatprep.subr.bf16.mxu0 %v12396_v33  ;;  %8751 = vmatprep.subr.bf16.mxu1 %v12232_v12  ;;  %v12404_v33 = vld [vmem:[#allocation49_spill] sm:$0xff] }
 0x5c8   : > { %8725 = vmatpush1.bf16.msra.mxu0 %v12397_v60  ;;  %8753 = vmatpush3.bf16.msra.mxu1 %v12398_v47  ;;  %v12406_v47 = vld [vmem:[#allocation51_spill] sm:$0xff]  ;;  %v12408_v60 = vld [vmem:[#allocation53_spill] sm:$0xff] }
 0x5c9   : > { %8727 = vmatprep.subr.bf16.mxu0 %v12399_v5  ;;  %8754 = vmatprep.subr.bf16.mxu1 %v12232_v12  ;;  %v12407_v5 = vld [vmem:[#allocation52_spill] sm:$0xff] }
 0x5cc   : > { %8729 = vmatpush1.bf16.msra.mxu0 %v12400_v10  ;;  %8756 = vmatpush3.bf16.msra.mxu1 %v12401_v11  ;;  %v12409_v11 = vld [vmem:[#allocation54_spill] sm:$0xff]  ;;  %v12411_v10 = vld [vmem:[#allocation56_spill] sm:$0xff] }
 0x5cd   : > { %8731 = vmatprep.subr.bf16.mxu0 %v12402_v35  ;;  %8757 = vmatprep.subr.bf16.mxu1 %v12232_v12  ;;  %v12410_v35 = vld [vmem:[#allocation55_spill] sm:$0xff] }
 0x5d0   : > { %8733 = vmatpush1.bf16.msra.mxu0 %v12403_v21  ;;  %8759 = vmatpush3.bf16.msra.mxu1 %v12404_v33 }
 0x5d1   : > { %8735 = vmatprep.subr.bf16.mxu0 %v12405_v34  ;;  %8760 = vmatprep.subr.bf16.mxu1 %v12232_v12 }
 0x5d4   : > { %8737 = vmatpush1.bf16.msra.mxu0 %v12406_v47  ;;  %8762 = vmatpush3.bf16.msra.mxu1 %v12407_v5 }
 0x5d5   : > { %8739 = vmatprep.subr.bf16.mxu0 %v12408_v60  ;;  %8763 = vmatprep.subr.bf16.mxu1 %v12232_v12  ;;  %v12413_v60 = vld [vmem:[#allocation83_spill] sm:$0xff] }
 0x5d8   : > { %8741 = vmatpush1.bf16.msra.mxu0 %v12409_v11  ;;  %8765 = vmatpush3.bf16.msra.mxu1 %v12410_v35 }
 0x5d9   : > { %8767 = vmatprep.subr.bf16.mxu0 %v12411_v10  ;;  %8798 = vmatprep.subr.bf16.mxu1 %v12232_v12 }
 0x646   : > { %v3146_v33 = vpop.f32.mrb[28].mxu1 }
 0x647   : > { %v7412_v34 = vpop.f32.mrb[29].mxu1 }
 0x648   : > { %v12414_v34 = vld [vmem:[#allocation84_spill] sm:$0xff] }
 0x666   : > { %v3216_v21 = vpop.f32.mrb[14].mxu0  ;;  %v3287_v50 = vpop.f32.mrb[30].mxu1 }
 0x667   : > { %v9397_v47 = vadd.f32 %v12412_v23, %v3216_v21  ;;  %v3218_v59 = vpop.f32.mrb[15].mxu0  ;;  %v7447_v5 = vpop.f32.mrb[31].mxu1  ;;  %v3288_v48 = vadd.f32 %v3287_v50, %v12414_v34  ;;  %v3147_v21 = vadd.f32 %v3146_v33, %v12316_v61 }
 0x668   : > { %v9399_v2 = vadd.f32 %v12413_v60, %v3218_v59 }
 0x669   : > { %v6498_v29 = vmul.f32 -1.442695, %v9397_v47 }
 0x66a   : > { %v6499_v55 = vmul.f32 -1.442695, %v9399_v2 }
 0x66b   : > { %9591 = vpow2.f32 %v6498_v29 }
 0x66c   : > { %9593 = vpow2.f32 %v6499_v55 }
 0x66e   : > { %v3474_v11 = vpop.f32.mrb[32].mxu1 }
 0x66f   : > { %v7458_v7 = vpop.f32.mrb[33].mxu1 }
 0x675   : > { %v9592_v35 = vpop.eup %9591 }
 0x676   : > { %v3295_v10 = vadd.f32 1.0, %v9592_v35  ;;  %v9594_v43 = vpop.eup %9593 }
 0x677   : > { %v3302_v57 = vadd.f32 1.0, %v9594_v43 }
 0x678   : > { %9595 = vrcp.f32 %v3295_v10 }
 0x679   : > { %9597 = vrcp.f32 %v3302_v57 }
 0x682   : > { %v9596_v15 = vpop.eup %9595 }
 0x683   : > { %v3305_v23 = vmul.f32 %v9596_v15, %v3288_v48  ;;  %v9598_v59 = vpop.eup %9597 }
 0x684   : > { %v3308_v35 = vsub.f32 1.0, %v9598_v59  ;;  %v3310_v50 = vmul.f32 %v9598_v59, %v11217_v58 }
 0x685   : > { %v3306_v5 = vadd.f32 %v3305_v23, %v3147_v21 }
 0x687   : > { %9599 = vtanh.f32 %v3306_v5 }
 0x68e   : > { %v3544_v29 = vpop.f32.mrb[16].mxu0  ;;  %v3615_v2 = vpop.f32.mrb[34].mxu1 }
 0x68f   : > { %v9401_v7 = vadd.f32 %v10476_v53, %v3544_v29  ;;  %v3546_v55 = vpop.f32.mrb[17].mxu0  ;;  %v7493_v47 = vpop.f32.mrb[35].mxu1  ;;  %v3616_v5 = vadd.f32 %v3615_v2, %v10486_v28 }
 0x690   : > { %v9403_v34 = vadd.f32 %v12269_v36, %v3546_v55  ;;  %v3475_v47 = vadd.f32 %v3474_v11, %v10489_v17  ;;  %v3961_v11 = vld [vmem:[%s9890_s21 + $0xd] sm:$0x1] }
 0x691   : > { %v9600_v10 = vpop.eup %9599  ;;  %v6503_v60 = vmul.f32 -1.442695, %v9401_v7 }
 0x692   : > { %v3309_v43 = vmul.f32 %v9600_v10, %v3308_v35  ;;  %v6504_v57 = vmul.f32 -1.442695, %v9403_v34 }
 0x693   : > { %9601 = vpow2.f32 %v6503_v60 }
 0x694   : > { %v3311_v48 = vadd.f32 %v3310_v50, %v3309_v43  ;;  %9603 = vpow2.f32 %v6504_v57  ;;  %v11323_v57 = vpop.permute.xlu0 %3643 }
 0x695   : > { %12415 = vst [vmem:[#allocation65_spill] sm:$0xff] %v11323_v57 }
 0x69d   : > { %v9602_v15 = vpop.eup %9601 }
 0x69e   : > { %v3623_v23 = vadd.f32 1.0, %v9602_v15  ;;  %v9604_v33 = vpop.eup %9603 }
 0x69f   : > { %v3630_v21 = vadd.f32 1.0, %v9604_v33  ;;  %v3962_v33 = vld [vmem:[%s9890_s21 + $0x15] sm:$0x1] }
 0x6a0   : > { %9605 = vrcp.f32 %v3623_v23 }
 0x6a1   : > { %9607 = vrcp.f32 %v3630_v21  ;;  %v3968_v21 = vrot.slane %v3961_v11, 7  ;;  %v12424_v11 = vld [vmem:[#allocation16_spill] sm:$0xff] }
 0x6aa   : > { %v9606_v29 = vpop.eup %9605 }
 0x6ab   : > { %v3633_v7 = vmul.f32 %v9606_v29, %v3616_v5  ;;  %v9608_v59 = vpop.eup %9607  ;;  %v3960_v5 = vld [vmem:[%s9890_s21 + $0x5] sm:$0x1]  ;;  %v3963_v29 = vld [vmem:[%s9890_s21 + $0x1d] sm:$0x1] }
 0x6ac   : > { %v3636_v55 = vsub.f32 1.0, %v9608_v59  ;;  %v3638_v34 = vmul.f32 %v9608_v59, %v11174_v30 }
 0x6ad   : > { %v3634_v35 = vadd.f32 %v3633_v7, %v3475_v47  ;;  %v3970_v47 = vrot.slane %v3962_v33, 6  ;;  %v3969_v7 = vsel %vm575_vm0, %v3968_v21, %v3960_v5  ;;  %v12426_v33 = vld [vmem:[#allocation27_spill] sm:$0xff]  ;;  %v12427_v21 = vld [vmem:[#allocation20_spill] sm:$0xff]  ;;  %v12428_v5 = vld [vmem:[#allocation22_spill] sm:$0xff] }
 0x6af   : > { %9609 = vtanh.f32 %v3634_v35  ;;  %v3972_v35 = vrot.slane %v3963_v29, 5  ;;  %v3971_v59 = vsel %vm578_vm2, %v3970_v47, %v3969_v7  ;;  %v12429_v29 = vld [vmem:[#allocation29_spill] sm:$0xff]  ;;  %v12430_v47 = vld [vmem:[#allocation23_spill] sm:$0xff] }
 0x6b0   : > { %v12431_v7 = vld [vmem:[#allocation25_spill] sm:$0xff] }
 0x6b9   : > { %v9610_v60 = vpop.eup %9609 }
 0x6ba   : > { %v3637_v10 = vmul.f32 %v9610_v60, %v3636_v55  ;;  %v3973_v55 = vsel %vm581_vm3, %v3972_v35, %v3971_v59  ;;  %v12417_v60 = vld [vmem:[#allocation18_spill] sm:$0xff] }
 0x6bb   : > { %v12432_v35 = vld [vmem:[#allocation30_spill] sm:$0xff] }
 0x6bc   : > { %v3639_v43 = vadd.f32 %v3638_v34, %v3637_v10  ;;  %v12418_v10 = vld [vmem:[#allocation12_spill] sm:$0xff]  ;;  %v12419_v34 = vld [vmem:[#allocation13_spill] sm:$0xff]  ;;  %v12433_v59 = vld [vmem:[#allocation26_spill] sm:$0xff] }
 0x6be   : > { %v3640_v50 = vsub.f32 %v3639_v43, %v11174_v30  ;;  %v12420_v43 = vld [vmem:[#allocation21_spill] sm:$0xff] }
 0x6c0   : > { %v3646_v2 = vmul.f32 %v11323_v57, %v3640_v50  ;;  %v12421_v50 = vld [vmem:[#allocation14_spill] sm:$0xff] }
 0x6c2   : > { %v11327_v15 = vadd.f32 %v3646_v2, %v11174_v30  ;;  %v3312_v30 = vsub.f32 %v3311_v48, %v11217_v58  ;;  %v12422_v2 = vld [vmem:[#allocation15_spill] sm:$0xff] }
 0x6c4   : > { %3713 = vmatmul.mubr.f32.vlgmr.msra.gmra.mrb[18].mxu0 %v11327_v15  ;;  %7527 = vmatmul.mubr.f32.vlgmr.msra.gmra.mrb[36].mxu1 %v11327_v15  ;;  %v3313_v23 = vmul.f32 %v3312_v30, %v11170_v4  ;;  %v12423_v30 = vld [vmem:[#allocation24_spill] sm:$0xff]  ;;  %v12435_v4 = vld [vmem:[#allocation31_spill] sm:$0xff] }
 0x6c5   : > { %8769 = vmatpush1.bf16.msra.mxu0 %v12271_v52  ;;  %8800 = vmatpush3.bf16.msra.mxu1 %v12272_v56 }
 0x6c6   : > { %8771 = vmatprep.subr.bf16.mxu0 %v12273_v31  ;;  %8801 = vmatprep.subr.bf16.mxu1 %v12232_v12  ;;  %v11370_v48 = vadd.f32 %v3313_v23, %v11217_v58  ;;  %v12425_v23 = vld [vmem:[#allocation19_spill] sm:$0xff]  ;;  %v12436_v58 = vld [vmem:[#allocation32_spill] sm:$0xff] }
 0x6c7   : > { %3853 = vmatprep.mubr.f32.mxu0 %v12234_v51  ;;  %7561 = vmatprep.mubr.msk.f32.mxu1 %vm9753_vm1, %v12234_v51 }
 0x6c8   : > { %12416 = vst [vmem:[#allocation66_spill] sm:$0xff] %v11370_v48 }
 0x6c9   : > { %8773 = vmatpush1.bf16.msra.mxu0 %v12274_v41  ;;  %8803 = vmatpush3.bf16.msra.mxu1 %v12275_v32 }
 0x6ca   : > { %8775 = vmatprep.subr.bf16.mxu0 %v12276_v24  ;;  %8804 = vmatprep.subr.bf16.mxu1 %v12232_v12 }
 0x6cd   : > { %8777 = vmatpush1.bf16.msra.mxu0 %v12277_v26  ;;  %8806 = vmatpush3.bf16.msra.mxu1 %v12278_v1 }
 0x6ce   : > { %8779 = vmatprep.subr.bf16.mxu0 %v12279_v18  ;;  %8807 = vmatprep.subr.bf16.mxu1 %v12232_v12 }
 0x6d1   : > { %8781 = vmatpush1.bf16.msra.mxu0 %v12318_v9  ;;  %8809 = vmatpush3.bf16.msra.mxu1 %v12319_v62 }
 0x6d2   : > { %8783 = vmatprep.subr.bf16.mxu0 %v12320_v19  ;;  %8810 = vmatprep.subr.bf16.mxu1 %v12232_v12 }
 0x6d5   : > { %8785 = vmatpush1.bf16.msra.mxu0 %v12321_v42  ;;  %8812 = vmatpush3.bf16.msra.mxu1 %v12322_v3 }
 0x6d6   : > { %8787 = vmatprep.subr.bf16.mxu0 %v12323_v25  ;;  %8813 = vmatprep.subr.bf16.mxu1 %v12232_v12 }
 0x6d9   : > { %8789 = vmatpush1.bf16.msra.mxu0 %v12324_v16  ;;  %8815 = vmatpush3.bf16.msra.mxu1 %v12325_v39 }
 0x6da   : > { %8791 = vmatprep.subr.bf16.mxu0 %v12288_v20  ;;  %8816 = vmatprep.subr.bf16.mxu1 %v12232_v12 }
 0x6dd   : > { %8793 = vmatpush1.bf16.msra.mxu0 %v12326_v44  ;;  %8818 = vmatpush3.bf16.msra.mxu1 %v12367_v6 }
 0x6de   : > { %8795 = vmatprep.subr.bf16.mxu0 %v12368_v49  ;;  %8819 = vmatprep.subr.bf16.mxu1 %v12232_v12 }
 0x6e1   : > { %8797 = vmatpush1.bf16.msra.mxu0 %v10713_v40  ;;  %8821 = vmatpush3.bf16.msra.mxu1 %v10715_v0 }
 0x6e2   : > { %8823 = vmatprep.subr.bf16.mxu0 %v9914_v8  ;;  %8830 = vmatprep.subr.bf16.mxu1 %v12232_v12 }
 0x6e4   : > { %3854 = vmatmul.mubr.f32.vlgmr.msra.gmra.mrb[18].mxu0 %v11370_v48  ;;  %7562 = vmatmul.mubr.f32.vlgmr.msra.gmra.mrb[38].mxu1 %v11370_v48 }
 0x6e5   : > { %8825 = vmatpush1.bf16.msra.mxu0 %v9926_v13  ;;  %8832 = vmatpush3.bf16.msra.mxu1 %v9999_v46 }
 0x6e6   : > { %8827 = vmatprep.subr.bf16.mxu0 %v9928_v14  ;;  %8833 = vmatprep.subr.bf16.mxu1 %v12232_v12 }
 0x6e7   : > { %4040 = vmatprep.mubr.f32.mxu0 %v12234_v51  ;;  %7572 = vmatprep.mubr.msk.f32.mxu1 %vm9753_vm1, %v12234_v51 }
 0x6e9   : > { %8829 = vmatpush1.bf16.msra.mxu0 %v9949_v22  ;;  %8835 = vmatpush3.bf16.msra.mxu1 %v10024_v54 }
 0x6ea   : > { %8837 = vmatprep.subr.bf16.mxu0 %v9954_v27  ;;  %8868 = vmatprep.subr.bf16.mxu1 %v12232_v12 }
 0x6ec   : > { %6508 = vmatmul.mubr.msk.f32.vlgmr.msra.gmra.mrb[20].mxu0 %vm583_vm4, %v3973_v55  ;;  %7573 = vmatmul.mubr.msk.f32.vlgmr.msra.gmra.mrb[40].mxu1 %vm583_vm4, %v3973_v55  ;;  %v12434_v55 = vld [vmem:[#allocation28_spill] sm:$0xff] }
 0x6ed   : > { %8839 = vmatpush1.bf16.msra.mxu0 %v9972_v37  ;;  %8870 = vmatpush3.bf16.msra.mxu1 %v10053_v63 }
 0x6ee   : > { %8841 = vmatprep.subr.bf16.mxu0 %v9975_v38  ;;  %8871 = vmatprep.subr.bf16.mxu1 %v12232_v12 }
 0x6ef   : > { %4181 = vmatprep.mubr.f32.mxu0 %v12234_v51  ;;  %7607 = vmatprep.mubr.msk.f32.mxu1 %vm9753_vm1, %v12234_v51 }
 0x6f1   : > { %8843 = vmatpush1.bf16.msra.mxu0 %v9997_v45  ;;  %8873 = vmatpush3.bf16.msra.mxu1 %v12417_v60 }
 0x6f2   : > { %8845 = vmatprep.subr.bf16.mxu0 %v12418_v10  ;;  %8874 = vmatprep.subr.bf16.mxu1 %v12232_v12 }
 0x6f5   : > { %8847 = vmatpush1.bf16.msra.mxu0 %v12419_v34  ;;  %8876 = vmatpush3.bf16.msra.mxu1 %v12420_v43 }
 0x6f6   : > { %8849 = vmatprep.subr.bf16.mxu0 %v12421_v50  ;;  %8877 = vmatprep.subr.bf16.mxu1 %v12232_v12 }
 0x6f9   : > { %8851 = vmatpush1.bf16.msra.mxu0 %v12422_v2  ;;  %8879 = vmatpush3.bf16.msra.mxu1 %v12423_v30 }
 0x6fa   : > { %8853 = vmatprep.subr.bf16.mxu0 %v12424_v11  ;;  %8880 = vmatprep.subr.bf16.mxu1 %v12232_v12 }
 0x6fd   : > { %8855 = vmatpush1.bf16.msra.mxu0 %v12425_v23  ;;  %8882 = vmatpush3.bf16.msra.mxu1 %v12426_v33  ;;  %v12461_v33 = vld [vmem:[#allocation82_spill] sm:$0xff] }
 0x6fe   : > { %8857 = vmatprep.subr.bf16.mxu0 %v12427_v21  ;;  %8883 = vmatprep.subr.bf16.mxu1 %v12232_v12 }
 0x701   : > { %8859 = vmatpush1.bf16.msra.mxu0 %v12428_v5  ;;  %8885 = vmatpush3.bf16.msra.mxu1 %v12429_v29  ;;  %v12447_v29 = vld [vmem:[#allocation43_spill] sm:$0xff]  ;;  %v12448_v5 = vld [vmem:[#allocation44_spill] sm:$0xff] }
 0x702   : > { %8861 = vmatprep.subr.bf16.mxu0 %v12430_v47  ;;  %8886 = vmatprep.subr.bf16.mxu1 %v12232_v12  ;;  %v12437_v47 = vld [vmem:[#allocation33_spill] sm:$0xff] }
 0x705   : > { %8863 = vmatpush1.bf16.msra.mxu0 %v12431_v7  ;;  %8888 = vmatpush3.bf16.msra.mxu1 %v12432_v35  ;;  %v12438_v7 = vld [vmem:[#allocation34_spill] sm:$0xff]  ;;  %v12439_v35 = vld [vmem:[#allocation35_spill] sm:$0xff] }
 0x706   : > { %8865 = vmatprep.subr.bf16.mxu0 %v12433_v59  ;;  %8889 = vmatprep.subr.bf16.mxu1 %v12232_v12  ;;  %v12446_v59 = vld [vmem:[#allocation42_spill] sm:$0xff] }
 0x709   : > { %8867 = vmatpush1.bf16.msra.mxu0 %v12434_v55  ;;  %8891 = vmatpush3.bf16.msra.mxu1 %v12435_v4  ;;  %v12441_v4 = vld [vmem:[#allocation37_spill] sm:$0xff]  ;;  %v12442_v55 = vld [vmem:[#allocation38_spill] sm:$0xff] }
 0x70a   : > { %8893 = vmatprep.subr.bf16.mxu0 %v12436_v58  ;;  %8924 = vmatprep.subr.bf16.mxu1 %v12232_v12  ;;  %v12440_v58 = vld [vmem:[#allocation36_spill] sm:$0xff] }
 0x70c   : > { %4182 = vmatmul.mubr.f32.vlgmr.msra.gmra.mrb[20].mxu0 %v11327_v15  ;;  %7608 = vmatmul.mubr.f32.vlgmr.msra.gmra.mrb[42].mxu1 %v11327_v15 }
 0x70d   : > { %8895 = vmatpush1.bf16.msra.mxu0 %v12437_v47  ;;  %8926 = vmatpush3.bf16.msra.mxu1 %v12438_v7  ;;  %v12443_v47 = vld [vmem:[#allocation39_spill] sm:$0xff]  ;;  %v12444_v7 = vld [vmem:[#allocation40_spill] sm:$0xff] }
 0x70e   : > { %8897 = vmatprep.subr.bf16.mxu0 %v12439_v35  ;;  %8927 = vmatprep.subr.bf16.mxu1 %v12232_v12  ;;  %v12445_v35 = vld [vmem:[#allocation41_spill] sm:$0xff] }
 0x70f   : > { %4351 = vmatprep.mubr.f32.mxu0 %v12234_v51  ;;  %7642 = vmatprep.mubr.msk.f32.mxu1 %vm9753_vm1, %v12234_v51 }
 0x711   : > { %8899 = vmatpush1.bf16.msra.mxu0 %v12440_v58  ;;  %8929 = vmatpush3.bf16.msra.mxu1 %v12441_v4  ;;  %v12449_v4 = vld [vmem:[#allocation45_spill] sm:$0xff]  ;;  %v12451_v58 = vld [vmem:[#allocation47_spill] sm:$0xff] }
 0x712   : > { %8901 = vmatprep.subr.bf16.mxu0 %v12442_v55  ;;  %8930 = vmatprep.subr.bf16.mxu1 %v12232_v12  ;;  %v12450_v55 = vld [vmem:[#allocation46_spill] sm:$0xff] }
 0x715   : > { %8903 = vmatpush1.bf16.msra.mxu0 %v12443_v47  ;;  %8932 = vmatpush3.bf16.msra.mxu1 %v12444_v7  ;;  %v12452_v7 = vld [vmem:[#allocation48_spill] sm:$0xff]  ;;  %v12454_v47 = vld [vmem:[#allocation50_spill] sm:$0xff] }
 0x716   : > { %8905 = vmatprep.subr.bf16.mxu0 %v12445_v35  ;;  %8933 = vmatprep.subr.bf16.mxu1 %v12232_v12  ;;  %v12453_v35 = vld [vmem:[#allocation49_spill] sm:$0xff] }
 0x719   : > { %8907 = vmatpush1.bf16.msra.mxu0 %v12446_v59  ;;  %8935 = vmatpush3.bf16.msra.mxu1 %v12447_v29  ;;  %v12455_v29 = vld [vmem:[#allocation51_spill] sm:$0xff]  ;;  %v12457_v59 = vld [vmem:[#allocation53_spill] sm:$0xff] }
 0x71a   : > { %8909 = vmatprep.subr.bf16.mxu0 %v12448_v5  ;;  %8936 = vmatprep.subr.bf16.mxu1 %v12232_v12  ;;  %v12456_v5 = vld [vmem:[#allocation52_spill] sm:$0xff] }
 0x71d   : > { %8911 = vmatpush1.bf16.msra.mxu0 %v12449_v4  ;;  %8938 = vmatpush3.bf16.msra.mxu1 %v12450_v55  ;;  %v12458_v55 = vld [vmem:[#allocation54_spill] sm:$0xff]  ;;  %v12460_v4 = vld [vmem:[#allocation56_spill] sm:$0xff] }
 0x71e   : > { %8913 = vmatprep.subr.bf16.mxu0 %v12451_v58  ;;  %8939 = vmatprep.subr.bf16.mxu1 %v12232_v12  ;;  %v12459_v58 = vld [vmem:[#allocation55_spill] sm:$0xff] }
 0x721   : > { %8915 = vmatpush1.bf16.msra.mxu0 %v12452_v7  ;;  %8941 = vmatpush3.bf16.msra.mxu1 %v12453_v35 }
 0x722   : > { %8917 = vmatprep.subr.bf16.mxu0 %v12454_v47  ;;  %8942 = vmatprep.subr.bf16.mxu1 %v12232_v12 }
 0x725   : > { %8919 = vmatpush1.bf16.msra.mxu0 %v12455_v29  ;;  %8944 = vmatpush3.bf16.msra.mxu1 %v12456_v5 }
 0x726   : > { %8921 = vmatprep.subr.bf16.mxu0 %v12457_v59  ;;  %8945 = vmatprep.subr.bf16.mxu1 %v12232_v12  ;;  %v12462_v59 = vld [vmem:[#allocation83_spill] sm:$0xff] }
 0x729   : > { %8923 = vmatpush1.bf16.msra.mxu0 %v12458_v55  ;;  %8947 = vmatpush3.bf16.msra.mxu1 %v12459_v58 }
 0x72a   : > { %8949 = vmatprep.subr.bf16.mxu0 %v12460_v4  ;;  %8980 = vmatprep.subr.bf16.mxu1 %v12232_v12 }
 0x797   : > { %v3785_v35 = vpop.f32.mrb[36].mxu1 }
 0x798   : > { %v7528_v47 = vpop.f32.mrb[37].mxu1 }
 0x799   : > { %v12463_v47 = vld [vmem:[#allocation84_spill] sm:$0xff] }
 0x7b7   : > { %v3855_v7 = vpop.f32.mrb[18].mxu0  ;;  %v3926_v21 = vpop.f32.mrb[38].mxu1 }
 0x7b8   : > { %v9405_v29 = vadd.f32 %v12461_v33, %v3855_v7  ;;  %v3857_v23 = vpop.f32.mrb[19].mxu0  ;;  %v7563_v5 = vpop.f32.mrb[39].mxu1  ;;  %v3927_v10 = vadd.f32 %v3926_v21, %v12463_v47  ;;  %v3786_v7 = vadd.f32 %v3785_v35, %v12316_v61 }
 0x7b9   : > { %v9407_v30 = vadd.f32 %v12462_v59, %v3857_v23 }
 0x7ba   : > { %v6505_v11 = vmul.f32 -1.442695, %v9405_v29 }
 0x7bb   : > { %v6506_v2 = vmul.f32 -1.442695, %v9407_v30 }
 0x7bc   : > { %9611 = vpow2.f32 %v6505_v11 }
 0x7bd   : > { %9613 = vpow2.f32 %v6506_v2 }
 0x7bf   : > { %v4113_v55 = vpop.f32.mrb[40].mxu1 }
 0x7c0   : > { %v7574_v50 = vpop.f32.mrb[41].mxu1 }
 0x7c6   : > { %v9612_v58 = vpop.eup %9611 }
 0x7c7   : > { %v3934_v4 = vadd.f32 1.0, %v9612_v58  ;;  %v9614_v43 = vpop.eup %9613 }
 0x7c8   : > { %v3941_v34 = vadd.f32 1.0, %v9614_v43 }
 0x7c9   : > { %9615 = vrcp.f32 %v3934_v4 }
 0x7ca   : > { %9617 = vrcp.f32 %v3941_v34 }
 0x7d3   : > { %v9616_v60 = vpop.eup %9615 }
 0x7d4   : > { %v3944_v33 = vmul.f32 %v9616_v60, %v3927_v10  ;;  %v9618_v23 = vpop.eup %9617 }
 0x7d5   : > { %v3947_v58 = vsub.f32 1.0, %v9618_v23  ;;  %v3949_v21 = vmul.f32 %v9618_v23, %v11370_v48 }
 0x7d6   : > { %v3945_v5 = vadd.f32 %v3944_v33, %v3786_v7 }
 0x7d8   : > { %9619 = vtanh.f32 %v3945_v5 }
 0x7df   : > { %v4183_v11 = vpop.f32.mrb[20].mxu0  ;;  %v4254_v30 = vpop.f32.mrb[42].mxu1 }
 0x7e0   : > { %v9409_v50 = vadd.f32 %v10476_v53, %v4183_v11  ;;  %v4185_v2 = vpop.f32.mrb[21].mxu0  ;;  %v7609_v29 = vpop.f32.mrb[43].mxu1  ;;  %v4255_v5 = vadd.f32 %v4254_v30, %v10486_v28 }
 0x7e1   : > { %v9411_v47 = vadd.f32 %v12269_v36, %v4185_v2  ;;  %v4114_v29 = vadd.f32 %v4113_v55, %v10489_v17  ;;  %v4600_v55 = vld [vmem:[%s9890_s21 + $0xe] sm:$0x1] }
 0x7e2   : > { %v9620_v4 = vpop.eup %9619  ;;  %v6510_v59 = vmul.f32 -1.442695, %v9409_v50 }
 0x7e3   : > { %v3948_v43 = vmul.f32 %v9620_v4, %v3947_v58  ;;  %v6511_v10 = vmul.f32 -1.442695, %v9411_v47 }
 0x7e4   : > { %9621 = vpow2.f32 %v6510_v59 }
 0x7e5   : > { %v3950_v60 = vadd.f32 %v3949_v21, %v3948_v43  ;;  %9623 = vpow2.f32 %v6511_v10  ;;  %v11476_v10 = vpop.permute.xlu1 %4282 }
 0x7ee   : > { %v9622_v34 = vpop.eup %9621 }
 0x7ef   : > { %v4262_v33 = vadd.f32 1.0, %v9622_v34  ;;  %v9624_v35 = vpop.eup %9623 }
 0x7f0   : > { %v4269_v7 = vadd.f32 1.0, %v9624_v35  ;;  %v4601_v35 = vld [vmem:[%s9890_s21 + $0x16] sm:$0x1] }
 0x7f1   : > { %9625 = vrcp.f32 %v4262_v33 }
 0x7f2   : > { %9627 = vrcp.f32 %v4269_v7  ;;  %v4607_v7 = vrot.slane %v4600_v55, 7  ;;  %v12471_v55 = vld [vmem:[#allocation16_spill] sm:$0xff] }
 0x7fb   : > { %v9626_v11 = vpop.eup %9625 }
 0x7fc   : > { %v4272_v50 = vmul.f32 %v9626_v11, %v4255_v5  ;;  %v9628_v23 = vpop.eup %9627  ;;  %v4599_v5 = vld [vmem:[%s9890_s21 + $0x6] sm:$0x1]  ;;  %v4602_v11 = vld [vmem:[%s9890_s21 + $0x1e] sm:$0x1] }
 0x7fd   : > { %v4275_v2 = vsub.f32 1.0, %v9628_v23  ;;  %v4277_v47 = vmul.f32 %v9628_v23, %v11327_v15 }
 0x7fe   : > { %v4273_v58 = vadd.f32 %v4272_v50, %v4114_v29  ;;  %v4609_v29 = vrot.slane %v4601_v35, 6  ;;  %v4608_v50 = vsel %vm575_vm0, %v4607_v7, %v4599_v5  ;;  %v12473_v35 = vld [vmem:[#allocation27_spill] sm:$0xff]  ;;  %v12474_v7 = vld [vmem:[#allocation20_spill] sm:$0xff]  ;;  %v12475_v5 = vld [vmem:[#allocation22_spill] sm:$0xff] }
 0x800   : > { %9629 = vtanh.f32 %v4273_v58  ;;  %v4611_v58 = vrot.slane %v4602_v11, 5  ;;  %v4610_v23 = vsel %vm578_vm2, %v4609_v29, %v4608_v50  ;;  %v12476_v11 = vld [vmem:[#allocation29_spill] sm:$0xff]  ;;  %v12477_v29 = vld [vmem:[#allocation23_spill] sm:$0xff] }
 0x801   : > { %v12478_v50 = vld [vmem:[#allocation25_spill] sm:$0xff] }
 0x80a   : > { %v9630_v59 = vpop.eup %9629 }
 0x80b   : > { %v4276_v4 = vmul.f32 %v9630_v59, %v4275_v2  ;;  %v4612_v2 = vsel %vm581_vm3, %v4611_v58, %v4610_v23  ;;  %v12464_v59 = vld [vmem:[#allocation18_spill] sm:$0xff] }
 0x80c   : > { %v12479_v58 = vld [vmem:[#allocation30_spill] sm:$0xff] }
 0x80d   : > { %v4278_v43 = vadd.f32 %v4277_v47, %v4276_v4  ;;  %v12465_v4 = vld [vmem:[#allocation12_spill] sm:$0xff]  ;;  %v12466_v47 = vld [vmem:[#allocation13_spill] sm:$0xff]  ;;  %v12480_v23 = vld [vmem:[#allocation26_spill] sm:$0xff] }
 0x80f   : > { %v4279_v21 = vsub.f32 %v4278_v43, %v11327_v15  ;;  %v12467_v43 = vld [vmem:[#allocation21_spill] sm:$0xff] }
 0x811   : > { %v4285_v30 = vmul.f32 %v11476_v10, %v4279_v21  ;;  %v12468_v21 = vld [vmem:[#allocation14_spill] sm:$0xff] }
 0x813   : > { %v11480_v34 = vadd.f32 %v4285_v30, %v11327_v15  ;;  %v3951_v15 = vsub.f32 %v3950_v60, %v11370_v48  ;;  %v12469_v30 = vld [vmem:[#allocation15_spill] sm:$0xff] }
 0x815   : > { %4352 = vmatmul.mubr.f32.vlgmr.msra.gmra.mrb[22].mxu0 %v11480_v34  ;;  %7643 = vmatmul.mubr.f32.vlgmr.msra.gmra.mrb[44].mxu1 %v11480_v34  ;;  %v3952_v33 = vmul.f32 %v3951_v15, %v11323_v57  ;;  %v12470_v15 = vld [vmem:[#allocation24_spill] sm:$0xff]  ;;  %v12482_v57 = vld [vmem:[#allocation31_spill] sm:$0xff] }
 0x816   : > { %8951 = vmatpush1.bf16.msra.mxu0 %v12271_v52  ;;  %8982 = vmatpush3.bf16.msra.mxu1 %v12272_v56 }
 0x817   : > { %8953 = vmatprep.subr.bf16.mxu0 %v12273_v31  ;;  %8983 = vmatprep.subr.bf16.mxu1 %v12232_v12  ;;  %v11523_v60 = vadd.f32 %v3952_v33, %v11370_v48  ;;  %v12472_v33 = vld [vmem:[#allocation19_spill] sm:$0xff]  ;;  %v12483_v48 = vld [vmem:[#allocation32_spill] sm:$0xff] }
 0x818   : > { %4492 = vmatprep.mubr.f32.mxu0 %v12234_v51  ;;  %7677 = vmatprep.mubr.msk.f32.mxu1 %vm9753_vm1, %v12234_v51 }
 0x81a   : > { %8955 = vmatpush1.bf16.msra.mxu0 %v12274_v41  ;;  %8985 = vmatpush3.bf16.msra.mxu1 %v12275_v32 }
 0x81b   : > { %8957 = vmatprep.subr.bf16.mxu0 %v12276_v24  ;;  %8986 = vmatprep.subr.bf16.mxu1 %v12232_v12 }
 0x81e   : > { %8959 = vmatpush1.bf16.msra.mxu0 %v12277_v26  ;;  %8988 = vmatpush3.bf16.msra.mxu1 %v12278_v1 }
 0x81f   : > { %8961 = vmatprep.subr.bf16.mxu0 %v12279_v18  ;;  %8989 = vmatprep.subr.bf16.mxu1 %v12232_v12 }
 0x822   : > { %8963 = vmatpush1.bf16.msra.mxu0 %v12318_v9  ;;  %8991 = vmatpush3.bf16.msra.mxu1 %v12319_v62 }
 0x823   : > { %8965 = vmatprep.subr.bf16.mxu0 %v12320_v19  ;;  %8992 = vmatprep.subr.bf16.mxu1 %v12232_v12 }
 0x826   : > { %8967 = vmatpush1.bf16.msra.mxu0 %v12321_v42  ;;  %8994 = vmatpush3.bf16.msra.mxu1 %v12322_v3 }
 0x827   : > { %8969 = vmatprep.subr.bf16.mxu0 %v12323_v25  ;;  %8995 = vmatprep.subr.bf16.mxu1 %v12232_v12 }
 0x82a   : > { %8971 = vmatpush1.bf16.msra.mxu0 %v12324_v16  ;;  %8997 = vmatpush3.bf16.msra.mxu1 %v12325_v39 }
 0x82b   : > { %8973 = vmatprep.subr.bf16.mxu0 %v12288_v20  ;;  %8998 = vmatprep.subr.bf16.mxu1 %v12232_v12 }
 0x82e   : > { %8975 = vmatpush1.bf16.msra.mxu0 %v12326_v44  ;;  %9000 = vmatpush3.bf16.msra.mxu1 %v12367_v6 }
 0x82f   : > { %8977 = vmatprep.subr.bf16.mxu0 %v12368_v49  ;;  %9001 = vmatprep.subr.bf16.mxu1 %v12232_v12 }
 0x832   : > { %8979 = vmatpush1.bf16.msra.mxu0 %v10713_v40  ;;  %9003 = vmatpush3.bf16.msra.mxu1 %v10715_v0 }
 0x833   : > { %9005 = vmatprep.subr.bf16.mxu0 %v9914_v8  ;;  %9012 = vmatprep.subr.bf16.mxu1 %v12232_v12 }
 0x835   : > { %4493 = vmatmul.mubr.f32.vlgmr.msra.gmra.mrb[22].mxu0 %v11523_v60  ;;  %7678 = vmatmul.mubr.f32.vlgmr.msra.gmra.mrb[46].mxu1 %v11523_v60 }
 0x836   : > { %9007 = vmatpush1.bf16.msra.mxu0 %v9926_v13  ;;  %9014 = vmatpush3.bf16.msra.mxu1 %v9999_v46 }
 0x837   : > { %9009 = vmatprep.subr.bf16.mxu0 %v9928_v14  ;;  %9015 = vmatprep.subr.bf16.mxu1 %v12232_v12 }
 0x838   : > { %4679 = vmatprep.mubr.f32.mxu0 %v12234_v51  ;;  %7688 = vmatprep.mubr.msk.f32.mxu1 %vm9753_vm1, %v12234_v51 }
 0x83a   : > { %9011 = vmatpush1.bf16.msra.mxu0 %v9949_v22  ;;  %9017 = vmatpush3.bf16.msra.mxu1 %v10024_v54 }
 0x83b   : > { %9019 = vmatprep.subr.bf16.mxu0 %v9954_v27  ;;  %9050 = vmatprep.subr.bf16.mxu1 %v12232_v12 }
 0x83d   : > { %6515 = vmatmul.mubr.msk.f32.vlgmr.msra.gmra.mrb[24].mxu0 %vm583_vm4, %v4612_v2  ;;  %7689 = vmatmul.mubr.msk.f32.vlgmr.msra.gmra.mrb[48].mxu1 %vm583_vm4, %v4612_v2  ;;  %v12481_v2 = vld [vmem:[#allocation28_spill] sm:$0xff] }
 0x83e   : > { %9021 = vmatpush1.bf16.msra.mxu0 %v9972_v37  ;;  %9052 = vmatpush3.bf16.msra.mxu1 %v10053_v63 }
 0x83f   : > { %9023 = vmatprep.subr.bf16.mxu0 %v9975_v38  ;;  %9053 = vmatprep.subr.bf16.mxu1 %v12232_v12 }
 0x840   : > { %4820 = vmatprep.mubr.f32.mxu0 %v12234_v51  ;;  %7723 = vmatprep.mubr.msk.f32.mxu1 %vm9753_vm1, %v12234_v51 }
 0x842   : > { %9025 = vmatpush1.bf16.msra.mxu0 %v9997_v45  ;;  %9055 = vmatpush3.bf16.msra.mxu1 %v12464_v59 }
 0x843   : > { %9027 = vmatprep.subr.bf16.mxu0 %v12465_v4  ;;  %9056 = vmatprep.subr.bf16.mxu1 %v12232_v12 }
 0x846   : > { %9029 = vmatpush1.bf16.msra.mxu0 %v12466_v47  ;;  %9058 = vmatpush3.bf16.msra.mxu1 %v12467_v43 }
 0x847   : > { %9031 = vmatprep.subr.bf16.mxu0 %v12468_v21  ;;  %9059 = vmatprep.subr.bf16.mxu1 %v12232_v12 }
 0x84a   : > { %9033 = vmatpush1.bf16.msra.mxu0 %v12469_v30  ;;  %9061 = vmatpush3.bf16.msra.mxu1 %v12470_v15 }
 0x84b   : > { %9035 = vmatprep.subr.bf16.mxu0 %v12471_v55  ;;  %9062 = vmatprep.subr.bf16.mxu1 %v12232_v12 }
 0x84e   : > { %9037 = vmatpush1.bf16.msra.mxu0 %v12472_v33  ;;  %9064 = vmatpush3.bf16.msra.mxu1 %v12473_v35  ;;  %v12508_v35 = vld [vmem:[#allocation82_spill] sm:$0xff] }
 0x84f   : > { %9039 = vmatprep.subr.bf16.mxu0 %v12474_v7  ;;  %9065 = vmatprep.subr.bf16.mxu1 %v12232_v12 }
 0x852   : > { %9041 = vmatpush1.bf16.msra.mxu0 %v12475_v5  ;;  %9067 = vmatpush3.bf16.msra.mxu1 %v12476_v11  ;;  %v12494_v11 = vld [vmem:[#allocation43_spill] sm:$0xff]  ;;  %v12495_v5 = vld [vmem:[#allocation44_spill] sm:$0xff] }
 0x853   : > { %9043 = vmatprep.subr.bf16.mxu0 %v12477_v29  ;;  %9068 = vmatprep.subr.bf16.mxu1 %v12232_v12  ;;  %v12484_v29 = vld [vmem:[#allocation33_spill] sm:$0xff] }
 0x856   : > { %9045 = vmatpush1.bf16.msra.mxu0 %v12478_v50  ;;  %9070 = vmatpush3.bf16.msra.mxu1 %v12479_v58  ;;  %v12485_v50 = vld [vmem:[#allocation34_spill] sm:$0xff]  ;;  %v12486_v58 = vld [vmem:[#allocation35_spill] sm:$0xff] }
 0x857   : > { %9047 = vmatprep.subr.bf16.mxu0 %v12480_v23  ;;  %9071 = vmatprep.subr.bf16.mxu1 %v12232_v12  ;;  %v12493_v23 = vld [vmem:[#allocation42_spill] sm:$0xff] }
 0x85a   : > { %9049 = vmatpush1.bf16.msra.mxu0 %v12481_v2  ;;  %9073 = vmatpush3.bf16.msra.mxu1 %v12482_v57  ;;  %v12488_v57 = vld [vmem:[#allocation37_spill] sm:$0xff]  ;;  %v12489_v2 = vld [vmem:[#allocation38_spill] sm:$0xff] }
 0x85b   : > { %9075 = vmatprep.subr.bf16.mxu0 %v12483_v48  ;;  %9106 = vmatprep.subr.bf16.mxu1 %v12232_v12  ;;  %v12487_v48 = vld [vmem:[#allocation36_spill] sm:$0xff] }
 0x85d   : > { %4821 = vmatmul.mubr.f32.vlgmr.msra.gmra.mrb[24].mxu0 %v11480_v34  ;;  %7724 = vmatmul.mubr.f32.vlgmr.msra.gmra.mrb[50].mxu1 %v11480_v34 }
 0x85e   : > { %9077 = vmatpush1.bf16.msra.mxu0 %v12484_v29  ;;  %9108 = vmatpush3.bf16.msra.mxu1 %v12485_v50  ;;  %v12490_v29 = vld [vmem:[#allocation39_spill] sm:$0xff]  ;;  %v12491_v50 = vld [vmem:[#allocation40_spill] sm:$0xff] }
 0x85f   : > { %9079 = vmatprep.subr.bf16.mxu0 %v12486_v58  ;;  %9109 = vmatprep.subr.bf16.mxu1 %v12232_v12  ;;  %v12492_v58 = vld [vmem:[#allocation41_spill] sm:$0xff] }
 0x860   : > { %4990 = vmatprep.mubr.f32.mxu0 %v12234_v51  ;;  %7758 = vmatprep.mubr.msk.f32.mxu1 %vm9753_vm1, %v12234_v51 }
 0x862   : > { %9081 = vmatpush1.bf16.msra.mxu0 %v12487_v48  ;;  %9111 = vmatpush3.bf16.msra.mxu1 %v12488_v57  ;;  %v12496_v57 = vld [vmem:[#allocation45_spill] sm:$0xff]  ;;  %v12498_v48 = vld [vmem:[#allocation47_spill] sm:$0xff] }
 0x863   : > { %9083 = vmatprep.subr.bf16.mxu0 %v12489_v2  ;;  %9112 = vmatprep.subr.bf16.mxu1 %v12232_v12  ;;  %v12497_v2 = vld [vmem:[#allocation46_spill] sm:$0xff] }
 0x866   : > { %9085 = vmatpush1.bf16.msra.mxu0 %v12490_v29  ;;  %9114 = vmatpush3.bf16.msra.mxu1 %v12491_v50  ;;  %v12499_v50 = vld [vmem:[#allocation48_spill] sm:$0xff]  ;;  %v12501_v29 = vld [vmem:[#allocation50_spill] sm:$0xff] }
 0x867   : > { %9087 = vmatprep.subr.bf16.mxu0 %v12492_v58  ;;  %9115 = vmatprep.subr.bf16.mxu1 %v12232_v12  ;;  %v12500_v58 = vld [vmem:[#allocation49_spill] sm:$0xff] }
 0x86a   : > { %9089 = vmatpush1.bf16.msra.mxu0 %v12493_v23  ;;  %9117 = vmatpush3.bf16.msra.mxu1 %v12494_v11  ;;  %v12502_v11 = vld [vmem:[#allocation51_spill] sm:$0xff]  ;;  %v12504_v23 = vld [vmem:[#allocation53_spill] sm:$0xff] }
 0x86b   : > { %9091 = vmatprep.subr.bf16.mxu0 %v12495_v5  ;;  %9118 = vmatprep.subr.bf16.mxu1 %v12232_v12  ;;  %v12503_v5 = vld [vmem:[#allocation52_spill] sm:$0xff] }
 0x86e   : > { %9093 = vmatpush1.bf16.msra.mxu0 %v12496_v57  ;;  %9120 = vmatpush3.bf16.msra.mxu1 %v12497_v2  ;;  %v12505_v2 = vld [vmem:[#allocation54_spill] sm:$0xff]  ;;  %v12507_v57 = vld [vmem:[#allocation56_spill] sm:$0xff] }
 0x86f   : > { %9095 = vmatprep.subr.bf16.mxu0 %v12498_v48  ;;  %9121 = vmatprep.subr.bf16.mxu1 %v12232_v12  ;;  %v12506_v48 = vld [vmem:[#allocation55_spill] sm:$0xff] }
 0x872   : > { %9097 = vmatpush1.bf16.msra.mxu0 %v12499_v50  ;;  %9123 = vmatpush3.bf16.msra.mxu1 %v12500_v58 }
 0x873   : > { %9099 = vmatprep.subr.bf16.mxu0 %v12501_v29  ;;  %9124 = vmatprep.subr.bf16.mxu1 %v12232_v12 }
 0x876   : > { %9101 = vmatpush1.bf16.msra.mxu0 %v12502_v11  ;;  %9126 = vmatpush3.bf16.msra.mxu1 %v12503_v5 }
 0x877   : > { %9103 = vmatprep.subr.bf16.mxu0 %v12504_v23  ;;  %9127 = vmatprep.subr.bf16.mxu1 %v12232_v12  ;;  %v12509_v23 = vld [vmem:[#allocation83_spill] sm:$0xff] }
 0x87a   : > { %9105 = vmatpush1.bf16.msra.mxu0 %v12505_v2  ;;  %9129 = vmatpush3.bf16.msra.mxu1 %v12506_v48 }
 0x87b   : > { %9131 = vmatprep.subr.bf16.mxu0 %v12507_v57  ;;  %9162 = vmatprep.subr.bf16.mxu1 %v12232_v12 }
 0x8e8   : > { %v4424_v58 = vpop.f32.mrb[44].mxu1 }
 0x8e9   : > { %v7644_v29 = vpop.f32.mrb[45].mxu1 }
 0x8ea   : > { %v12510_v29 = vld [vmem:[#allocation84_spill] sm:$0xff] }
 0x908   : > { %v4494_v50 = vpop.f32.mrb[22].mxu0  ;;  %v4565_v7 = vpop.f32.mrb[46].mxu1 }
 0x909   : > { %v9413_v11 = vadd.f32 %v12508_v35, %v4494_v50  ;;  %v4496_v33 = vpop.f32.mrb[23].mxu0  ;;  %v7679_v5 = vpop.f32.mrb[47].mxu1  ;;  %v4566_v4 = vadd.f32 %v4565_v7, %v12510_v29  ;;  %v4425_v50 = vadd.f32 %v4424_v58, %v12316_v61 }
 0x90a   : > { %v9415_v15 = vadd.f32 %v12509_v23, %v4496_v33 }
 0x90b   : > { %v6512_v55 = vmul.f32 -1.442695, %v9413_v11 }
 0x90c   : > { %v6513_v30 = vmul.f32 -1.442695, %v9415_v15 }
 0x90d   : > { %9631 = vpow2.f32 %v6512_v55 }
 0x90e   : > { %9633 = vpow2.f32 %v6513_v30 }
 0x910   : > { %v4752_v2 = vpop.f32.mrb[48].mxu1 }
 0x911   : > { %v7690_v21 = vpop.f32.mrb[49].mxu1 }
 0x917   : > { %v9632_v48 = vpop.eup %9631 }
 0x918   : > { %v4573_v57 = vadd.f32 1.0, %v9632_v48  ;;  %v9634_v43 = vpop.eup %9633 }
 0x919   : > { %v4580_v47 = vadd.f32 1.0, %v9634_v43 }
 0x91a   : > { %9635 = vrcp.f32 %v4573_v57 }
 0x91b   : > { %9637 = vrcp.f32 %v4580_v47 }
 0x924   : > { %v9636_v59 = vpop.eup %9635 }
 0x925   : > { %v4583_v35 = vmul.f32 %v9636_v59, %v4566_v4  ;;  %v9638_v33 = vpop.eup %9637 }
 0x926   : > { %v4586_v48 = vsub.f32 1.0, %v9638_v33  ;;  %v4588_v7 = vmul.f32 %v9638_v33, %v11523_v60 }
 0x927   : > { %v4584_v5 = vadd.f32 %v4583_v35, %v4425_v50 }
 0x929   : > { %9639 = vtanh.f32 %v4584_v5 }
 0x930   : > { %v4822_v55 = vpop.f32.mrb[24].mxu0  ;;  %v4893_v15 = vpop.f32.mrb[50].mxu1 }
 0x931   : > { %v9417_v21 = vadd.f32 %v10476_v53, %v4822_v55  ;;  %v4824_v30 = vpop.f32.mrb[25].mxu0  ;;  %v7725_v11 = vpop.f32.mrb[51].mxu1  ;;  %v4894_v5 = vadd.f32 %v4893_v15, %v10486_v28 }
 0x932   : > { %v9419_v29 = vadd.f32 %v12269_v36, %v4824_v30  ;;  %v4753_v11 = vadd.f32 %v4752_v2, %v10489_v17  ;;  %v5239_v2 = vld [vmem:[%s9890_s21 + $0xf] sm:$0x1] }
 0x933   : > { %v9640_v57 = vpop.eup %9639  ;;  %v6517_v23 = vmul.f32 -1.442695, %v9417_v21 }
 0x934   : > { %v4587_v43 = vmul.f32 %v9640_v57, %v4586_v48  ;;  %v6518_v4 = vmul.f32 -1.442695, %v9419_v29 }
 0x935   : > { %9641 = vpow2.f32 %v6517_v23 }
 0x936   : > { %v4589_v59 = vadd.f32 %v4588_v7, %v4587_v43  ;;  %9643 = vpow2.f32 %v6518_v4  ;;  %v11629_v4 = vpop.permute.xlu0 %4921 }
 0x93f   : > { %v9642_v47 = vpop.eup %9641 }
 0x940   : > { %v4901_v35 = vadd.f32 1.0, %v9642_v47  ;;  %v9644_v58 = vpop.eup %9643 }
 0x941   : > { %v4908_v50 = vadd.f32 1.0, %v9644_v58  ;;  %v5240_v58 = vld [vmem:[%s9890_s21 + $0x17] sm:$0x1] }
 0x942   : > { %9645 = vrcp.f32 %v4901_v35 }
 0x943   : > { %9647 = vrcp.f32 %v4908_v50  ;;  %v5246_v50 = vrot.slane %v5239_v2, 7  ;;  %v12529_v2 = vld [vmem:[#allocation31_spill] sm:$0xff] }
 0x94c   : > { %v9646_v55 = vpop.eup %9645 }
 0x94d   : > { %v4911_v21 = vmul.f32 %v9646_v55, %v4894_v5  ;;  %v9648_v33 = vpop.eup %9647  ;;  %v5238_v5 = vld [vmem:[%s9890_s21 + $0x7] sm:$0x1]  ;;  %v5241_v55 = vld [vmem:[%s9890_s21 + $0x1f] sm:$0x1] }
 0x94e   : > { %v4914_v30 = vsub.f32 1.0, %v9648_v33  ;;  %v4916_v29 = vmul.f32 %v9648_v33, %v11480_v34  ;;  %v12520_v33 = vld [vmem:[#allocation27_spill] sm:$0xff] }
 0x94f   : > { %v4912_v48 = vadd.f32 %v4911_v21, %v4753_v11  ;;  %v5248_v11 = vrot.slane %v5240_v58, 6  ;;  %v5247_v21 = vsel %vm575_vm0, %v5246_v50, %v5238_v5  ;;  %v12531_v58 = vld [vmem:[#allocation33_spill] sm:$0xff]  ;;  %v12532_v50 = vld [vmem:[#allocation34_spill] sm:$0xff]  ;;  %v12533_v5 = vld [vmem:[#allocation35_spill] sm:$0xff]  ;;  %vm6233_vm0 = vcmask 1043456  }
 0x951   : > { %9649 = vtanh.f32 %v4912_v48  ;;  %v5250_v48 = vrot.slane %v5241_v55, 5  ;;  %v12534_v55 = vld [vmem:[#allocation36_spill] sm:$0xff] }
 0x95b   : > { %v9650_v23 = vpop.eup %9649 }
 0x95c   : > { %v4915_v57 = vmul.f32 %v9650_v23, %v4914_v30  ;;  %v12521_v30 = vld [vmem:[#allocation20_spill] sm:$0xff]  ;;  %v12522_v23 = vld [vmem:[#allocation22_spill] sm:$0xff] }
 0x95e   : > { %v4917_v43 = vadd.f32 %v4916_v29, %v4915_v57  ;;  %v12523_v57 = vld [vmem:[#allocation29_spill] sm:$0xff]  ;;  %v12524_v29 = vld [vmem:[#allocation23_spill] sm:$0xff] }
 0x960   : > { %v4918_v7 = vsub.f32 %v4917_v43, %v11480_v34  ;;  %v12525_v43 = vld [vmem:[#allocation25_spill] sm:$0xff] }
 0x962   : > { %v4924_v15 = vmul.f32 %v11629_v4, %v4918_v7  ;;  %v12526_v7 = vld [vmem:[#allocation30_spill] sm:$0xff] }
 0x964   : > { %v11633_v47 = vadd.f32 %v4924_v15, %v11480_v34  ;;  %v4590_v34 = vsub.f32 %v4589_v59, %v11523_v60  ;;  %v12527_v15 = vld [vmem:[#allocation26_spill] sm:$0xff] }
 0x966   : > { %4991 = vmatmul.mubr.f32.vlgmr.msra.gmra.mrb[26].mxu0 %v11633_v47  ;;  %7759 = vmatmul.mubr.f32.vlgmr.msra.gmra.mrb[52].mxu1 %v11633_v47  ;;  %v4591_v35 = vmul.f32 %v4590_v34, %v11476_v10  ;;  %v12528_v34 = vld [vmem:[#allocation28_spill] sm:$0xff] }
 0x967   : > { %9133 = vmatpush1.bf16.msra.mxu0 %v12271_v52  ;;  %9164 = vmatpush3.bf16.msra.mxu1 %v12272_v56 }
 0x968   : > { %9135 = vmatprep.subr.bf16.mxu0 %v12273_v31  ;;  %9165 = vmatprep.subr.bf16.mxu1 %v12232_v12  ;;  %v11676_v59 = vadd.f32 %v4591_v35, %v11523_v60  ;;  %v12530_v35 = vld [vmem:[#allocation32_spill] sm:$0xff] }
 0x969   : > { %5131 = vmatprep.mubr.f32.mxu0 %v12234_v51  ;;  %7793 = vmatprep.mubr.msk.f32.mxu1 %vm9753_vm1, %v12234_v51 }
 0x96b   : > { %9137 = vmatpush1.bf16.msra.mxu0 %v12274_v41  ;;  %9167 = vmatpush3.bf16.msra.mxu1 %v12275_v32 }
 0x96c   : > { %9139 = vmatprep.subr.bf16.mxu0 %v12276_v24  ;;  %9168 = vmatprep.subr.bf16.mxu1 %v12232_v12 }
 0x96f   : > { %9141 = vmatpush1.bf16.msra.mxu0 %v12277_v26  ;;  %9170 = vmatpush3.bf16.msra.mxu1 %v12278_v1 }
 0x970   : > { %9143 = vmatprep.subr.bf16.mxu0 %v12279_v18  ;;  %9171 = vmatprep.subr.bf16.mxu1 %v12232_v12 }
 0x973   : > { %9145 = vmatpush1.bf16.msra.mxu0 %v12318_v9  ;;  %9173 = vmatpush3.bf16.msra.mxu1 %v12319_v62 }
 0x974   : > { %9147 = vmatprep.subr.bf16.mxu0 %v12320_v19  ;;  %9174 = vmatprep.subr.bf16.mxu1 %v12232_v12 }
 0x977   : > { %9149 = vmatpush1.bf16.msra.mxu0 %v12321_v42  ;;  %9176 = vmatpush3.bf16.msra.mxu1 %v12322_v3 }
 0x978   : > { %9151 = vmatprep.subr.bf16.mxu0 %v12323_v25  ;;  %9177 = vmatprep.subr.bf16.mxu1 %v12232_v12 }
 0x97b   : > { %9153 = vmatpush1.bf16.msra.mxu0 %v12324_v16  ;;  %9179 = vmatpush3.bf16.msra.mxu1 %v12325_v39 }
 0x97c   : > { %9155 = vmatprep.subr.bf16.mxu0 %v12288_v20  ;;  %9180 = vmatprep.subr.bf16.mxu1 %v12232_v12 }
 0x97f   : > { %9157 = vmatpush1.bf16.msra.mxu0 %v12326_v44  ;;  %9182 = vmatpush3.bf16.msra.mxu1 %v12367_v6 }
 0x980   : > { %9159 = vmatprep.subr.bf16.mxu0 %v12368_v49  ;;  %9183 = vmatprep.subr.bf16.mxu1 %v12232_v12 }
 0x983   : > { %9161 = vmatpush1.bf16.msra.mxu0 %v10713_v40  ;;  %9185 = vmatpush3.bf16.msra.mxu1 %v10715_v0 }
 0x984   : > { %9187 = vmatprep.subr.bf16.mxu0 %v9914_v8  ;;  %9194 = vmatprep.subr.bf16.mxu1 %v12232_v12  ;;  %v5249_v8 = vsel %vm578_vm2, %v5248_v11, %v5247_v21  ;;  %v12535_v11 = vld [vmem:[#allocation37_spill] sm:$0xff]  ;;  %v12536_v21 = vld [vmem:[#allocation38_spill] sm:$0xff]  ;;  %vm6243_vm2 = vcmask 1045504  }
 0x986   : > { %5132 = vmatmul.mubr.f32.vlgmr.msra.gmra.mrb[26].mxu0 %v11676_v59  ;;  %7794 = vmatmul.mubr.f32.vlgmr.msra.gmra.mrb[54].mxu1 %v11676_v59 }
 0x987   : > { %9189 = vmatpush1.bf16.msra.mxu0 %v9926_v13  ;;  %9196 = vmatpush3.bf16.msra.mxu1 %v9999_v46  ;;  %v5251_v13 = vsel %vm581_vm3, %v5250_v48, %v5249_v8  ;;  %v12516_v46 = vld [vmem:[#allocation15_spill] sm:$0xff]  ;;  %v12538_v8 = vld [vmem:[#allocation40_spill] sm:$0xff]  ;;  %vm6248_vm3 = vcmask 1046528  }
 0x988   : > { %9191 = vmatprep.subr.bf16.mxu0 %v9928_v14  ;;  %9197 = vmatprep.subr.bf16.mxu1 %v12232_v12  ;;  %v12511_v14 = vld [vmem:[#allocation18_spill] sm:$0xff]  ;;  %v12537_v48 = vld [vmem:[#allocation39_spill] sm:$0xff] }
 0x989   : > { %5318 = vmatprep.mubr.f32.mxu0 %v12234_v51  ;;  %7804 = vmatprep.mubr.msk.f32.mxu1 %vm9753_vm1, %v12234_v51 }
 0x98b   : > { %9193 = vmatpush1.bf16.msra.mxu0 %v9949_v22  ;;  %9199 = vmatpush3.bf16.msra.mxu1 %v10024_v54  ;;  %v12512_v22 = vld [vmem:[#allocation12_spill] sm:$0xff] }
 0x98c   : > { %9201 = vmatprep.subr.bf16.mxu0 %v9954_v27  ;;  %9232 = vmatprep.subr.bf16.mxu1 %v12232_v12  ;;  %v12513_v27 = vld [vmem:[#allocation13_spill] sm:$0xff]  ;;  %v12517_v54 = vld [vmem:[#allocation24_spill] sm:$0xff] }
 0x98e   : > { %6522 = vmatmul.mubr.msk.f32.vlgmr.msra.gmra.mrb[28].mxu0 %vm583_vm4, %v5251_v13  ;;  %7805 = vmatmul.mubr.msk.f32.vlgmr.msra.gmra.mrb[56].mxu1 %vm583_vm4, %v5251_v13  ;;  %v12539_v13 = vld [vmem:[#allocation41_spill] sm:$0xff] }
 0x98f   : > { %9203 = vmatpush1.bf16.msra.mxu0 %v9972_v37  ;;  %9234 = vmatpush3.bf16.msra.mxu1 %v10053_v63  ;;  %v12514_v37 = vld [vmem:[#allocation21_spill] sm:$0xff]  ;;  %v12518_v63 = vld [vmem:[#allocation16_spill] sm:$0xff] }
 0x990   : > { %9205 = vmatprep.subr.bf16.mxu0 %v9975_v38  ;;  %9235 = vmatprep.subr.bf16.mxu1 %v12232_v12  ;;  %v12515_v38 = vld [vmem:[#allocation14_spill] sm:$0xff] }
 0x991   : > { %5459 = vmatprep.mubr.f32.mxu0 %v12234_v51  ;;  %7839 = vmatprep.mubr.msk.f32.mxu1 %vm9753_vm1, %v12234_v51 }
 0x993   : > { %9207 = vmatpush1.bf16.msra.mxu0 %v9997_v45  ;;  %9237 = vmatpush3.bf16.msra.mxu1 %v12511_v14  ;;  %v12519_v45 = vld [vmem:[#allocation19_spill] sm:$0xff]  ;;  %v12540_v14 = vld [vmem:[#allocation42_spill] sm:$0xff] }
 0x994   : > { %9209 = vmatprep.subr.bf16.mxu0 %v12512_v22  ;;  %9238 = vmatprep.subr.bf16.mxu1 %v12232_v12  ;;  %v12541_v22 = vld [vmem:[#allocation43_spill] sm:$0xff] }
 0x997   : > { %9211 = vmatpush1.bf16.msra.mxu0 %v12513_v27  ;;  %9240 = vmatpush3.bf16.msra.mxu1 %v12514_v37  ;;  %v12542_v27 = vld [vmem:[#allocation44_spill] sm:$0xff]  ;;  %v12543_v37 = vld [vmem:[#allocation45_spill] sm:$0xff] }
 0x998   : > { %9213 = vmatprep.subr.bf16.mxu0 %v12515_v38  ;;  %9241 = vmatprep.subr.bf16.mxu1 %v12232_v12  ;;  %v12544_v38 = vld [vmem:[#allocation46_spill] sm:$0xff] }
 0x99b   : > { %9215 = vmatpush1.bf16.msra.mxu0 %v12516_v46  ;;  %9243 = vmatpush3.bf16.msra.mxu1 %v12517_v54  ;;  %v12545_v46 = vld [vmem:[#allocation47_spill] sm:$0xff]  ;;  %v12546_v54 = vld [vmem:[#allocation48_spill] sm:$0xff] }
 0x99c   : > { %9217 = vmatprep.subr.bf16.mxu0 %v12518_v63  ;;  %9244 = vmatprep.subr.bf16.mxu1 %v12232_v12  ;;  %v12547_v63 = vld [vmem:[#allocation49_spill] sm:$0xff] }
 0x99f   : > { %9219 = vmatpush1.bf16.msra.mxu0 %v12519_v45  ;;  %9246 = vmatpush3.bf16.msra.mxu1 %v12520_v33  ;;  %v12548_v45 = vld [vmem:[#allocation50_spill] sm:$0xff]  ;;  %v12549_v33 = vld [vmem:[#allocation51_spill] sm:$0xff] }
 0x9a0   : > { %9221 = vmatprep.subr.bf16.mxu0 %v12521_v30  ;;  %9247 = vmatprep.subr.bf16.mxu1 %v12232_v12  ;;  %v12550_v30 = vld [vmem:[#allocation52_spill] sm:$0xff] }
 0x9a3   : > { %9223 = vmatpush1.bf16.msra.mxu0 %v12522_v23  ;;  %9249 = vmatpush3.bf16.msra.mxu1 %v12523_v57  ;;  %v12551_v23 = vld [vmem:[#allocation53_spill] sm:$0xff]  ;;  %v12552_v57 = vld [vmem:[#allocation54_spill] sm:$0xff] }
 0x9a4   : > { %9225 = vmatprep.subr.bf16.mxu0 %v12524_v29  ;;  %9250 = vmatprep.subr.bf16.mxu1 %v12232_v12  ;;  %v12553_v29 = vld [vmem:[#allocation55_spill] sm:$0xff] }
 0x9a7   : > { %9227 = vmatpush1.bf16.msra.mxu0 %v12525_v43  ;;  %9252 = vmatpush3.bf16.msra.mxu1 %v12526_v7  ;;  %v12554_v43 = vld [vmem:[#allocation56_spill] sm:$0xff] }
 0x9a8   : > { %9229 = vmatprep.subr.bf16.mxu0 %v12527_v15  ;;  %9253 = vmatprep.subr.bf16.mxu1 %v12232_v12 }
 0x9ab   : > { %9231 = vmatpush1.bf16.msra.mxu0 %v12528_v34  ;;  %9255 = vmatpush3.bf16.msra.mxu1 %v12529_v2 }
 0x9ac   : > { %9257 = vmatprep.subr.bf16.mxu0 %v12530_v35  ;;  %9288 = vmatprep.subr.bf16.mxu1 %v12232_v12  ;;  %v12555_v35 = vld [vmem:[#allocation82_spill] sm:$0xff] }
 0x9ae   : > { %5460 = vmatmul.mubr.f32.vlgmr.msra.gmra.mrb[28].mxu0 %v11633_v47  ;;  %7840 = vmatmul.mubr.f32.vlgmr.msra.gmra.mrb[58].mxu1 %v11633_v47 }
 0x9af   : > { %9259 = vmatpush1.bf16.msra.mxu0 %v12531_v58  ;;  %9290 = vmatpush3.bf16.msra.mxu1 %v12532_v50 }
 0x9b0   : > { %9261 = vmatprep.subr.bf16.mxu0 %v12533_v5  ;;  %9291 = vmatprep.subr.bf16.mxu1 %v12232_v12 }
 0x9b1   : > { %5629 = vmatprep.mubr.f32.mxu0 %v12234_v51  ;;  %7874 = vmatprep.mubr.msk.f32.mxu1 %vm9753_vm1, %v12234_v51 }
 0x9b3   : > { %9263 = vmatpush1.bf16.msra.mxu0 %v12534_v55  ;;  %9293 = vmatpush3.bf16.msra.mxu1 %v12535_v11  ;;  %v12556_v11 = vld [vmem:[#allocation83_spill] sm:$0xff] }
 0x9b4   : > { %9265 = vmatprep.subr.bf16.mxu0 %v12536_v21  ;;  %9294 = vmatprep.subr.bf16.mxu1 %v12232_v12 }
 0x9b7   : > { %9267 = vmatpush1.bf16.msra.mxu0 %v12537_v48  ;;  %9296 = vmatpush3.bf16.msra.mxu1 %v12538_v8 }
 0x9b8   : > { %9269 = vmatprep.subr.bf16.mxu0 %v12539_v13  ;;  %9297 = vmatprep.subr.bf16.mxu1 %v12232_v12 }
 0x9bb   : > { %9271 = vmatpush1.bf16.msra.mxu0 %v12540_v14  ;;  %9299 = vmatpush3.bf16.msra.mxu1 %v12541_v22 }
 0x9bc   : > { %9273 = vmatprep.subr.bf16.mxu0 %v12542_v27  ;;  %9300 = vmatprep.subr.bf16.mxu1 %v12232_v12 }
 0x9bf   : > { %9275 = vmatpush1.bf16.msra.mxu0 %v12543_v37  ;;  %9302 = vmatpush3.bf16.msra.mxu1 %v12544_v38  ;;  %v12557_v38 = vld [vmem:[#allocation84_spill] sm:$0xff] }
 0x9c0   : > { %9277 = vmatprep.subr.bf16.mxu0 %v12545_v46  ;;  %9303 = vmatprep.subr.bf16.mxu1 %v12232_v12 }
 0x9c3   : > { %9279 = vmatpush1.bf16.msra.mxu0 %v12546_v54  ;;  %9305 = vmatpush3.bf16.msra.mxu1 %v12547_v63 }
 0x9c4   : > { %9281 = vmatprep.subr.bf16.mxu0 %v12548_v45  ;;  %9306 = vmatprep.subr.bf16.mxu1 %v12232_v12 }
 0x9c7   : > { %9283 = vmatpush1.bf16.msra.mxu0 %v12549_v33  ;;  %9308 = vmatpush3.bf16.msra.mxu1 %v12550_v30 }
 0x9c8   : > { %9285 = vmatprep.subr.bf16.mxu0 %v12551_v23  ;;  %9309 = vmatprep.subr.bf16.mxu1 %v12232_v12 }
 0x9cb   : > { %9287 = vmatpush1.bf16.msra.mxu0 %v12552_v57  ;;  %9311 = vmatpush3.bf16.msra.mxu1 %v12553_v29 }
 0x9cc   : > { %9313 = vmatprep.subr.bf16.mxu0 %v12554_v43  ;;  %9344 = vmatprep.subr.bf16.mxu1 %v12232_v12 }
 0xa39   : > { %v5063_v7 = vpop.f32.mrb[52].mxu1 }
 0xa3a   : > { %v7760_v15 = vpop.f32.mrb[53].mxu1  ;;  %v5064_v63 = vadd.f32 %v5063_v7, %v12316_v61 }
 0xa59   : > { %v5133_v34 = vpop.f32.mrb[26].mxu0  ;;  %v5204_v2 = vpop.f32.mrb[54].mxu1 }
 0xa5a   : > { %v9421_v58 = vadd.f32 %v12555_v35, %v5133_v34  ;;  %v5135_v50 = vpop.f32.mrb[27].mxu0  ;;  %v7795_v5 = vpop.f32.mrb[55].mxu1  ;;  %v5205_v46 = vadd.f32 %v5204_v2, %v12557_v38 }
 0xa5b   : > { %v9423_v21 = vadd.f32 %v12556_v11, %v5135_v50 }
 0xa5c   : > { %v6519_v55 = vmul.f32 -1.442695, %v9421_v58 }
 0xa5d   : > { %v6520_v48 = vmul.f32 -1.442695, %v9423_v21 }
 0xa5e   : > { %9651 = vpow2.f32 %v6519_v55 }
 0xa5f   : > { %9653 = vpow2.f32 %v6520_v48 }
 0xa61   : > { %v5391_v8 = vpop.f32.mrb[56].mxu1 }
 0xa62   : > { %v7806_v13 = vpop.f32.mrb[57].mxu1 }
 0xa68   : > { %v9652_v14 = vpop.eup %9651 }
 0xa69   : > { %v5212_v22 = vadd.f32 1.0, %v9652_v14  ;;  %v9654_v27 = vpop.eup %9653 }
 0xa6a   : > { %v5219_v37 = vadd.f32 1.0, %v9654_v27 }
 0xa6b   : > { %9655 = vrcp.f32 %v5212_v22 }
 0xa6c   : > { %9657 = vrcp.f32 %v5219_v37  ;;  %v5392_v37 = vadd.f32 %v5391_v8, %v10489_v17  ;;  %v12563_v8 = vld [vmem:[#allocation61_spill] sm:$0xff] }
 0xa75   : > { %v9656_v54 = vpop.eup %9655 }
 0xa76   : > { %v5222_v45 = vmul.f32 %v9656_v54, %v5205_v46  ;;  %v9658_v30 = vpop.eup %9657 }
 0xa77   : > { %v5225_v34 = vsub.f32 1.0, %v9658_v30  ;;  %v5227_v2 = vmul.f32 %v9658_v30, %v11676_v59 }
 0xa78   : > { %v5223_v33 = vadd.f32 %v5222_v45, %v5064_v63 }
 0xa7a   : > { %9659 = vtanh.f32 %v5223_v33 }
 0xa81   : > { %v5461_v23 = vpop.f32.mrb[28].mxu0  ;;  %v5532_v57 = vpop.f32.mrb[58].mxu1 }
 0xa82   : > { %v9425_v29 = vadd.f32 %v10476_v53, %v5461_v23  ;;  %v5463_v43 = vpop.f32.mrb[29].mxu0  ;;  %v7841_v15 = vpop.f32.mrb[59].mxu1  ;;  %v5533_v53 = vadd.f32 %v5532_v57, %v10486_v28 }
 0xa83   : > { %v9427_v55 = vadd.f32 %v12269_v36, %v5463_v43  ;;  %v11782_v43 = vpop.permute.xlu1 %5560  ;;  %v12564_v15 = vld [vmem:[#allocation64_spill] sm:$0xff] }
 0xa84   : > { %v9660_v58 = vpop.eup %9659  ;;  %v6524_v50 = vmul.f32 -1.442695, %v9425_v29 }
 0xa85   : > { %v5226_v5 = vmul.f32 %v9660_v58, %v5225_v34  ;;  %v6525_v21 = vmul.f32 -1.442695, %v9427_v55  ;;  %v2676_v34 = vmul.f32 %v12564_v15, %v12563_v8 }
 0xa86   : > { %9661 = vpow2.f32 %v6524_v50 }
 0xa87   : > { %v5228_v7 = vadd.f32 %v5227_v2, %v5226_v5  ;;  %9663 = vpow2.f32 %v6525_v21  ;;  %v12565_v21 = vld [vmem:[#allocation63_spill] sm:$0xff] }
 0xa89   : > { %v5229_v17 = vsub.f32 %v5228_v7, %v11676_v59 }
 0xa90   : > { %v9662_v48 = vpop.eup %9661 }
 0xa91   : > { %v5540_v13 = vadd.f32 1.0, %v9662_v48  ;;  %v9664_v14 = vpop.eup %9663  ;;  %v12566_v48 = vld [vmem:[#allocation66_spill] sm:$0xff] }
 0xa92   : > { %v5547_v22 = vadd.f32 1.0, %v9664_v14 }
 0xa93   : > { %9665 = vrcp.f32 %v5540_v13  ;;  %v3315_v13 = vmul.f32 %v12566_v48, %v12565_v21 }
 0xa94   : > { %9667 = vrcp.f32 %v5547_v22 }
 0xa9d   : > { %v9666_v27 = vpop.eup %9665 }
 0xa9e   : > { %v5550_v46 = vmul.f32 %v9666_v27, %v5533_v53  ;;  %v9668_v63 = vpop.eup %9667 }
 0xa9f   : > { %v5553_v36 = vsub.f32 1.0, %v9668_v63  ;;  %v5555_v30 = vmul.f32 %v9668_v63, %v11633_v47 }
 0xaa0   : > { %v5551_v54 = vadd.f32 %v5550_v46, %v5392_v37 }
 0xaa2   : > { %9669 = vtanh.f32 %v5551_v54 }
 0xaac   : > { %v9670_v45 = vpop.eup %9669 }
 0xaad   : > { %v5554_v33 = vmul.f32 %v9670_v45, %v5553_v36 }
 0xaaf   : > { %v5556_v23 = vadd.f32 %v5555_v30, %v5554_v33 }
 0xab1   : > { %v5557_v29 = vsub.f32 %v5556_v23, %v11633_v47  ;;  %v12568_v23 = vld [vmem:[#allocation58_spill] sm:$0xff] }
 0xab3   : > { %v5563_v28 = vmul.f32 %v11782_v43, %v5557_v29 }
 0xab5   : > { %v5564_v57 = vadd.f32 %v5563_v28, %v11633_v47 }
 0xab7   : > { %5630 = vmatmul.mubr.f32.vlgmr.msra.gmra.mrb[30].mxu0 %v5564_v57  ;;  %5872 = vst [vmem:[#allocation2] sm:$0xf] %v5564_v57  ;;  %7875 = vmatmul.mubr.f32.vlgmr.msra.gmra.mrb[60].mxu1 %v5564_v57 }
 0xab8   : > { %9315 = vmatpush1.bf16.msra.mxu0 %v12271_v52  ;;  %9346 = vmatpush3.bf16.msra.mxu1 %v12272_v56 }
 0xab9   : > { %9317 = vmatprep.subr.bf16.mxu0 %v12273_v31  ;;  %9347 = vmatprep.subr.bf16.mxu1 %v12232_v12 }
 0xaba   : > { %5770 = vmatprep.mubr.f32.mxu0 %v12234_v51  ;;  %7909 = vmatprep.mubr.msk.f32.mxu1 %vm9753_vm1, %v12234_v51  ;;  %v5230_v51 = vmul.f32 %v5229_v17, %v11629_v4  ;;  %vm6238_vm1 = vcmask 1044480  }
 0xabc   : > { %9319 = vmatpush1.bf16.msra.mxu0 %v12274_v41  ;;  %9349 = vmatpush3.bf16.msra.mxu1 %v12275_v32  ;;  %v11822_v52 = vadd.f32 %v5230_v51, %v11676_v59 }
 0xabd   : > { %9321 = vmatprep.subr.bf16.mxu0 %v12276_v24  ;;  %9350 = vmatprep.subr.bf16.mxu1 %v12232_v12 }
 0xac0   : > { %9323 = vmatpush1.bf16.msra.mxu0 %v12277_v26  ;;  %9352 = vmatpush3.bf16.msra.mxu1 %v12278_v1 }
 0xac1   : > { %9325 = vmatprep.subr.bf16.mxu0 %v12279_v18  ;;  %9353 = vmatprep.subr.bf16.mxu1 %v12232_v12 }
 0xac4   : > { %9327 = vmatpush1.bf16.msra.mxu0 %v12318_v9  ;;  %9355 = vmatpush3.bf16.msra.mxu1 %v12319_v62 }
 0xac5   : > { %9329 = vmatprep.subr.bf16.mxu0 %v12320_v19  ;;  %9356 = vmatprep.subr.bf16.mxu1 %v12232_v12 }
 0xac8   : > { %9331 = vmatpush1.bf16.msra.mxu0 %v12321_v42  ;;  %9358 = vmatpush3.bf16.msra.mxu1 %v12322_v3  ;;  %v12558_v42 = vld [vmem:[#allocation17_spill] sm:$0xff]  ;;  %v12559_v3 = vld [vmem:[#allocation62_spill] sm:$0xff] }
 0xac9   : > { %9333 = vmatprep.subr.bf16.mxu0 %v12323_v25  ;;  %9359 = vmatprep.subr.bf16.mxu1 %v12232_v12  ;;  %v2037_v25 = vmul.f32 %v12559_v3, %v12558_v42 }
 0xacc   : > { %9335 = vmatpush1.bf16.msra.mxu0 %v12324_v16  ;;  %9361 = vmatpush3.bf16.msra.mxu1 %v12325_v39  ;;  %v12560_v39 = vld [vmem:[#allocation57_spill] sm:$0xff] }
 0xacd   : > { %9337 = vmatprep.subr.bf16.mxu0 %v12288_v20  ;;  %9362 = vmatprep.subr.bf16.mxu1 %v12232_v12  ;;  %v9755_v20 = vmov 1966171168  }
 0xace   : > { %v5876_v9 = vunpack.c.l.s4 %v9755_v20 }
 0xad0   : > { %9339 = vmatpush1.bf16.msra.mxu0 %v12326_v44  ;;  %9364 = vmatpush3.bf16.msra.mxu1 %v12367_v6  ;;  %v5877_v19 = vunpack.c.0.s8 %v5876_v9  ;;  %v12561_v6 = vld [vmem:[#allocation60_spill] sm:$0xff] }
 0xad1   : > { %9341 = vmatprep.subr.bf16.mxu0 %v12368_v49  ;;  %9365 = vmatprep.subr.bf16.mxu1 %v12232_v12  ;;  %v12562_v49 = vld [vmem:[#allocation59_spill] sm:$0xff] }
 0xad2   : > { %v11831_v44 = vsub.s32 %v5877_v19, %v12560_v39  ;;  %v1398_v47 = vmul.f32 %v12562_v49, %v12561_v6 }
 0xad4   : > { %9343 = vmatpush1.bf16.msra.mxu0 %v10713_v40  ;;  %9367 = vmatpush3.bf16.msra.mxu1 %v10715_v0  ;;  %v5881_v5 = vrot.slane %v1398_v47, %v11831_v44  ;;  %v5935_v14 = vrot.slane %v2676_v34, %v11831_v44 }
 0xad6   : > { %v5882_v53 = vcombine.high %v5881_v5, %v5881_v5  ;;  %v5889_v46 = vrot.slane %v5881_v5, %v11831_v44  ;;  %v5936_v54 = vcombine.high %v5935_v14, %v5935_v14  ;;  %v5943_v45 = vrot.slane %v5935_v14, %v11831_v44 }
 0xad7   : > { %5771 = vmatmul.mubr.f32.vlgmr.msra.gmra.mrb[30].mxu0 %v11822_v52  ;;  %7910 = vmatmul.mubr.f32.vlgmr.msra.gmra.mrb[62].mxu1 %v11822_v52 }
 0xad8   : > { %v5896_v36 = vrot.slane %v5882_v53, %v11831_v44  ;;  %v5897_v17 = vcombine.high %v5889_v46, %v5889_v46  ;;  %v5950_v51 = vrot.slane %v5936_v54, %v11831_v44 }
 0xada   : > { %v5952_v9 = vcombine.high %v5950_v51, %v5950_v51 }
 0xadc   : > { %v6113_v8 = vrot.slane %v5952_v9, %v12568_v23 }
 0xb8a   : > { %v5702_v56 = vpop.f32.mrb[60].mxu1 }
 0xb8b   : > { %v7876_v31 = vpop.f32.mrb[61].mxu1  ;;  %v5703_v55 = vadd.f32 %v5702_v56, %v12316_v61  ;;  %v12567_v61 = vld [vmem:[#allocation65_spill] sm:$0xff] }
 0xb8c   : > { %v3954_v63 = vmul.f32 %v11523_v60, %v12567_v61  ;;  %v5898_v31 = vcombine.high %v5896_v36, %v5896_v36  ;;  %v5951_v60 = vcombine.high %v5943_v45, %v5943_v45 }
 0xb8e   : > { %v5985_v56 = vrot.slane %v3954_v63, %v11831_v44  ;;  %v6109_v19 = vrot.slane %v5951_v60, %v12568_v23 }
 0xbaa   : > { %v5772_v41 = vpop.f32.mrb[30].mxu0  ;;  %v5843_v32 = vpop.f32.mrb[62].mxu1 }
 0xbab   : > { %v9429_v24 = vadd.f32 %v12555_v35, %v5772_v41  ;;  %v5774_v12 = vpop.f32.mrb[31].mxu0  ;;  %v7911_v26 = vpop.f32.mrb[63].mxu1  ;;  %v5910_v35 = vrot.slane %v2037_v25, %v11831_v44  ;;  %v5844_v58 = vadd.f32 %v5843_v32, %v12557_v38  ;;  %v5960_v38 = vrot.slane %v3315_v13, %v11831_v44 }
 0xbac   : > { %v9431_v40 = vadd.f32 %v12556_v11, %v5774_v12  ;;  %v4593_v32 = vmul.f32 %v11676_v59, %v11476_v10  ;;  %v6105_v10 = vrot.slane %v5950_v51, %v12568_v23  ;;  %v5986_v59 = vcombine.high %v5985_v56, %v5985_v56 }
 0xbad   : > { %v6526_v1 = vmul.f32 -1.442695, %v9429_v24  ;;  %v5911_v2 = vcombine.high %v5910_v35, %v5910_v35  ;;  %v5918_v27 = vrot.slane %v5910_v35, %v11831_v44  ;;  %v5961_v28 = vcombine.high %v5960_v38, %v5960_v38 }
 0xbae   : > { %v6527_v0 = vmul.f32 -1.442695, %v9431_v40  ;;  %v5968_v40 = vrot.slane %v5960_v38, %v11831_v44  ;;  %v6010_v42 = vrot.slane %v4593_v32, %v11831_v44  ;;  %v5993_v35 = vrot.slane %v5985_v56, %v11831_v44 }
 0xbaf   : > { %9671 = vpow2.f32 %v6526_v1  ;;  %v5925_v37 = vrot.slane %v5911_v2, %v11831_v44  ;;  %v5926_v33 = vcombine.high %v5918_v27, %v5918_v27  ;;  %v6081_v29 = vrot.slane %v5918_v27, %v12568_v23 }
 0xbb0   : > { %9673 = vpow2.f32 %v6527_v0  ;;  %v5232_v1 = vmul.f32 %v11822_v52, %v11629_v4  ;;  %v5975_v0 = vrot.slane %v5961_v28, %v11831_v44  ;;  %v5976_v49 = vcombine.high %v5968_v40, %v5968_v40 }
 0xbb1   : > { %v5927_v30 = vcombine.high %v5925_v37, %v5925_v37  ;;  %v6085_v41 = vrot.slane %v5925_v37, %v12568_v23  ;;  %v6089_v24 = vrot.slane %v5926_v33, %v12568_v23  ;;  %v6219_v26 = vsel %vm6218_vm13, %v5889_v46, %v6081_v29 }
 0xbb2   : > { %v6035_v6 = vrot.slane %v5232_v1, %v11831_v44  ;;  %v5977_v47 = vcombine.high %v5975_v0, %v5975_v0  ;;  %v6011_v5 = vcombine.high %v6010_v42, %v6010_v42  ;;  %v6018_v21 = vrot.slane %v6010_v42, %v11831_v44 }
 0xbb3   : > { %v6093_v12 = vrot.slane %v5927_v30, %v12568_v23  ;;  %v6220_v25 = vsel %vm6218_vm13, %v5896_v36, %v6085_v41  ;;  %v6129_v13 = vrot.slane %v5976_v49, %v12568_v23  ;;  %v6141_v38 = vrot.slane %v5993_v35, %v12568_v23 }
 0xbb4   : > { %v6225_v34 = vsel %vm6223_vm14, %v6220_v25, %v6105_v10  ;;  %v6036_v48 = vcombine.high %v6035_v6, %v6035_v6  ;;  %v6133_v14 = vrot.slane %v5977_v47, %v12568_v23  ;;  %v6043_v46 = vrot.slane %v6035_v6, %v11831_v44 }
 0xbb5   : > { %v6222_v39 = vsel %vm6218_vm13, %v5898_v31, %v6093_v12  ;;  %v6025_v61 = vrot.slane %v6011_v5, %v11831_v44  ;;  %v6026_v36 = vcombine.high %v6018_v21, %v6018_v21 }
 0xbb6   : > { %v6227_v27 = vsel %vm6223_vm14, %v6222_v39, %v6113_v8  ;;  %v6051_v56 = vcombine.high %v6043_v46, %v6043_v46 }
 0xbb7   : > { %v6027_v41 = vcombine.high %v6025_v61, %v6025_v61 }
 0xbb9   : > { %v9672_v18 = vpop.eup %9671 }
 0xbba   : > { %v5851_v62 = vadd.f32 1.0, %v9672_v18  ;;  %v9674_v16 = vpop.eup %9673 }
 0xbbb   : > { %v5858_v11 = vadd.f32 1.0, %v9674_v16  ;;  %v6221_v16 = vsel %vm6218_vm13, %v5897_v17, %v6089_v24  ;;  %v6232_v17 = vsel %vm6228_vm15, %v6227_v27, %v6133_v14  ;;  %v6169_v24 = vrot.slane %v6026_v36, %v12568_v23 }
 0xbbc   : > { %9675 = vrcp.f32 %v5851_v62  ;;  %v6101_v62 = vrot.slane %v5943_v45, %v12568_v23  ;;  %v6050_v45 = vrot.slane %v6036_v48, %v11831_v44 }
 0xbbd   : > { %9677 = vrcp.f32 %v5858_v11 }
 0xbbe   : > { %v6224_v15 = vsel %vm6223_vm14, %v6219_v26, %v6101_v62  ;;  %v6052_v12 = vcombine.high %v6050_v45, %v6050_v45  ;;  %v6181_v26 = vrot.slane %v6043_v46, %v12568_v23  ;;  %v6173_v62 = vrot.slane %v6027_v41, %v12568_v23 }
 0xbc0   : > { %v6193_v42 = vrot.slane %v6052_v12, %v12568_v23 }
 0xbc6   : > { %v9676_v50 = vpop.eup %9675 }
 0xbc7   : > { %v5861_v7 = vmul.f32 %v9676_v50, %v5844_v58  ;;  %v9678_v57 = vpop.eup %9677  ;;  %v6000_v58 = vrot.slane %v5986_v59, %v11831_v44  ;;  %v6226_v50 = vsel %vm6223_vm14, %v6221_v16, %v6109_v19 }
 0xbc8   : > { %v5864_v18 = vsub.f32 1.0, %v9678_v57  ;;  %v5866_v4 = vmul.f32 %v9678_v57, %v11822_v52  ;;  %v6231_v57 = vsel %vm6228_vm15, %v6226_v50, %v6129_v13 }
 0xbc9   : > { %v5862_v22 = vadd.f32 %v5861_v7, %v5703_v55  ;;  %v6121_v55 = vrot.slane %v5968_v40, %v12568_v23  ;;  %v6125_v7 = vrot.slane %v5975_v0, %v12568_v23  ;;  %v6002_v37 = vcombine.high %v6000_v58, %v6000_v58 }
 0xbca   : > { %v6145_v54 = vrot.slane %v6000_v58, %v12568_v23 }
 0xbcb   : > { %9679 = vtanh.f32 %v5862_v22  ;;  %v6001_v22 = vcombine.high %v5993_v35, %v5993_v35  ;;  %v6229_v33 = vsel %vm6228_vm15, %v6224_v15, %v6121_v55  ;;  %v6230_v30 = vsel %vm6228_vm15, %v6225_v34, %v6125_v7 }
 0xbcc   : > { %v6153_v51 = vrot.slane %v6002_v37, %v12568_v23  ;;  %v6234_v31 = vsel %vm6233_vm0, %v6229_v33, %v6141_v38  ;;  %v6235_v32 = vsel %vm6233_vm0, %v6230_v30, %v6145_v54 }
 0xbcd   : > { %v6149_v29 = vrot.slane %v6001_v22, %v12568_v23 }
 0xbce   : > { %v6237_v49 = vsel %vm6233_vm0, %v6232_v17, %v6153_v51 }
 0xbcf   : > { %v6236_v0 = vsel %vm6233_vm0, %v6231_v57, %v6149_v29  ;;  %v6242_v8 = vsel %vm6238_vm1, %v6237_v49, %v6173_v62 }
 0xbd0   : > { %v6247_v58 = vsel %vm6243_vm2, %v6242_v8, %v6193_v42 }
 0xbd5   : > { %v9680_v20 = vpop.eup %9679 }
 0xbd6   : > { %v5865_v3 = vmul.f32 %v9680_v20, %v5864_v18  ;;  %v6185_v18 = vrot.slane %v6050_v45, %v12568_v23  ;;  %v6189_v20 = vrot.slane %v6051_v56, %v12568_v23 }
 0xbd8   : > { %v5867_v11 = vadd.f32 %v5866_v4, %v5865_v3  ;;  %v6241_v4 = vsel %vm6238_vm1, %v6236_v0, %v6169_v24 }
 0xbd9   : > { %v6246_v35 = vsel %vm6243_vm2, %v6241_v4, %v6189_v20 }
 0xbda   : > { %v5868_v2 = vsub.f32 %v5867_v11, %v11822_v52 }
 0xbdc   : > { %v5869_v53 = vmul.f32 %v5868_v2, %v11782_v43 }
 0xbde   : > { %v5870_v63 = vadd.f32 %v5869_v53, %v11822_v52  ;;  %v6161_v52 = vrot.slane %v6018_v21, %v12568_v23 }
 0xbe0   : > { %v5871_v28 = vmul.f32 %v5870_v63, %v11782_v43  ;;  %5873 = vst [vmem:[#allocation2 + $0x4] sm:$0xf] %v5870_v63  ;;  %v6165_v43 = vrot.slane %v6025_v61, %v12568_v23  ;;  %v6239_v9 = vsel %vm6238_vm1, %v6234_v31, %v6161_v52 }
 0xbe1   : > { %v6244_v25 = vsel %vm6243_vm2, %v6239_v9, %v6181_v26 }
 0xbe2   : > { %v6060_v60 = vrot.slane %v5871_v28, %v11831_v44  ;;  %v6240_v3 = vsel %vm6238_vm1, %v6235_v32, %v6165_v43 }
 0xbe3   : > { %v6245_v47 = vsel %vm6243_vm2, %v6240_v3, %v6185_v18 }
 0xbe4   : > { %v6061_v1 = vcombine.high %v6060_v60, %v6060_v60  ;;  %v6068_v40 = vrot.slane %v6060_v60, %v11831_v44 }
 0xbe6   : > { %v6075_v10 = vrot.slane %v6061_v1, %v11831_v44  ;;  %v6076_v59 = vcombine.high %v6068_v40, %v6068_v40  ;;  %v6201_v19 = vrot.slane %v6068_v40, %v12568_v23 }
 0xbe8   : > { %v6077_v16 = vcombine.high %v6075_v10, %v6075_v10  ;;  %v6205_v39 = vrot.slane %v6075_v10, %v12568_v23  ;;  %v6209_v6 = vrot.slane %v6076_v59, %v12568_v23  ;;  %v6249_v44 = vsel %vm6248_vm3, %v6244_v25, %v6201_v19 }
 0xbe9   : > { %6253 = vst [vmem:[%s9892_s22] sm:$0xff] %v6249_v44 }
 0xbea   : > { %v6213_v11 = vrot.slane %v6077_v16, %v12568_v23  ;;  %v6250_v15 = vsel %vm6248_vm3, %v6245_v47, %v6205_v39  ;;  %v6251_v34 = vsel %vm6248_vm3, %v6246_v35, %v6209_v6 }
 0xbeb   : > { %6254 = vst [vmem:[%s9892_s22 + $0x8] sm:$0xff] %v6250_v15  ;;  %6255 = vst [vmem:[%s9892_s22 + $0x10] sm:$0xff] %v6251_v34 }
 0xbec   : > { %v6252_v50 = vsel %vm6248_vm3, %v6247_v58, %v6213_v11 }
 0xbed   : > { %6256 = vst [vmem:[%s9892_s22 + $0x18] sm:$0xff] %v6252_v50 }
 0xbee PF: > { %p6528_p13 = scmp.lt.s32.totalorder %s9899_s25, %s9901_s26 }
 0xbef   : > { %v9756_v5 = vmov (!%p6528_p13), 0.0  }
 0xbf0   : > { %6260 = sbr.rel (%p6528_p13) target bundleno = 3063 (0xbf7), region = 114  ;;  %6261 = vst [vmem:[%s9892_s22] sm:$0xff] (!%p6528_p13), %v9756_v5  ;;  %6262 = vst [vmem:[%s9892_s22 + $0x8] sm:$0xff] (!%p6528_p13), %v9756_v5 }
 0xbf1   : > { %6263 = vst [vmem:[%s9892_s22 + $0x10] sm:$0xff] (!%p6528_p13), %v9756_v5  ;;  %6264 = vst [vmem:[%s9892_s22 + $0x18] sm:$0xff] (!%p6528_p13), %v9756_v5 }
 0xbf7 PF: > { %p6529_p0 = scmp.ne.s32.totalorder %s9741_s29, 1 }
 0xbf8   : > { %v6269_v23 = vld [vmem:[#allocation2] sm:$0xff] (!%p6529_p0)  }
 0xbf9   : > { %6268 = sbr.rel (%p6529_p0) target bundleno = 3072 (0xc00), region = 118  ;;  %6271 = vst [vmem:[#allocation7] sm:$0xff] (!%p6529_p0), %v6269_v23  }
 0xc00 PF: > { %6279 = sbr.rel (!%p9874_p6) target bundleno = 3079 (0xc07), region = 122  ;;  %s6284_s23 = scalar_lea.vmem (%p9874_p6), %s12002_s12, %s9899_s25  ;;  %v6318_v2 = vld [vmem:[%s9892_s22] sm:$0xff] (%p9874_p6)  ;;  %v6320_v55 = vld [vmem:[%s9892_s22 + $0x8] sm:$0xff] (%p9874_p6)  ;;  %v6322_v7 = vld [vmem:[%s9892_s22 + $0x10] sm:$0xff] (%p9874_p6) }
 0xc01   : > { %6319 = vst [vmem:[%s6284_s23] sm:$0xff] (%p9874_p6), %v6318_v2  ;;  %6321 = vst [vmem:[%s6284_s23 + $0x10] sm:$0xff] (%p9874_p6), %v6320_v55  ;;  %v6324_v21 = vld [vmem:[%s9892_s22 + $0x18] sm:$0xff] (%p9874_p6) }
 0xc02   : > { %6323 = vst [vmem:[%s6284_s23 + $0x20] sm:$0xff] (%p9874_p6), %v6322_v7  ;;  %6325 = vst [vmem:[%s6284_s23 + $0x30] sm:$0xff] (%p9874_p6), %v6324_v21 }
 0xc07 PF: > { %s9757_s29 = smov [#allocation7]  }
 0xc08   : > { %s6337_s19 = sshll.u32 %s9757_s29, 4  ;;  %s6338_s19 = int_to_ptr.vmem [resolvable:$true] %s6337_s19 }
 0xc09   : > { %s9681_s27 = scalar_lea.vmem %s6338_s19, 128  ;;  %p9688_p5 = scmp.lt.s32.totalorder %s6338_s19, %s6338_s19 }
 0xc0a   : > { %p9682_p1 = scmp.ne.s32.totalorder %s6338_s19, %s9681_s27  ;;  %p9689_p6 = scmp.lt.s32.totalorder %s9681_s27, %s9681_s27 }
 0xc0c   : > { %p9683_p2 = pnand %p9682_p1, %p9865_p4  ;;  %p9690_p7 = por %p9689_p6, %p9688_p5 }
 0xc0e   : > { %p9684_p3 = pneg %p9683_p2 }
 0xc10   : > { %p9691_p8 = pnand %p9690_p7, %p9684_p3 }
 0xc12   : > { %9694 = shalt.err (!%p9691_p8)
}
 0xc13   : > { %s9695_s22 = scalar_lea.hbm %s12003_s13, 128 }
 0xc14   : > { %p9696_p9 = scmp.ne.s32.totalorder %s12003_s13, %s9695_s22  ;;  %p9701_p12 = scmp.lt.u32.totalorder %s9695_s22, %s12003_s13 }
 0xc16   : > { %p9697_p10 = pnand %p9696_p9, %p9865_p4 }
 0xc18   : > { %p9698_p11 = pneg %p9697_p10 }
 0xc1a   : > { %p9703_p13 = pnand %p9701_p12, %p9698_p11 }
 0xc1c   : > { %9706 = shalt.err (!%p9703_p13)
}
 0xc1d   : > { %s9758_s4 = smov 64   ;;  %s9759_s0 = smov 4  }
 0xc1e   : > { %9465 = dma.vmem_to_hbm [thread:$0]  (%p9865_p4), %s6338_s19, 128, %s12003_s13, [#allocation8], %s9758_s4, %s9758_s4, %s9759_s0  }
 0xc1f   : > { %9728 = dma.done.wait (%p9865_p4), [#allocation8], 128  }
 0xc20   : > { %9730 = vsyncadd (%p9865_p4), [#allocation8], 4294967168 }
 0xc21 PF: > { %s26_s14 = sadd.s32 1, %s9749_s14   ;;  %s12569_s29 = sld [smem:[#allocation10_spill]] }
 0xc22   : > { %p23_p0 = scmp.ge.s32.totalorder %s26_s14, 4   ;;  %s12570_s30 = sld [smem:[#allocation11_spill]] }
 0xc23   : > { %s12571_s27 = smov %s9737_s28  ;;  %s12572_s28 = smov %s9879_s20 }
 0xc24   :  { %25 = sbr.rel (!%p23_p0) target bundleno = 8 (0x8), region = 208 }
 0xc2b   :  { %6360 = vsyncpa [#allocation8], 1 }
 0xc2c   :  { %6362 = vsyncpa [#allocation8 + $0x1], 1 }

</bundles_post_ra>
